<compile_context>
chip_gen: v7x
topology: tpu7x:2x2x1
jax: 0.10.0
libtpu: 0.0.40
codegen_flags: <defaults>
</compile_context>

<pallas_src>
import functools

import jax
import jax.numpy as jnp
import numpy as np
from jax.experimental import pallas as pl
from jax.experimental.pallas import tpu as pltpu

_DILATIONS = (3, 5, 7)
PAD = max(_DILATIONS)  # halo for the widest branch (3x3, dilation=7)


def _tap_offsets():
    """Distinct input taps: shared center + 8 off-center taps per dilation."""
    offs = [(0, 0)]
    for dil in _DILATIONS:
        for t in range(9):
            ky, kx = divmod(t, 3)
            if ky == 1 and kx == 1:
                continue
            offs.append(((ky - 1) * dil, (kx - 1) * dil))
    return tuple(offs)


# ------------------------------ Pallas kernel ------------------------------- #
def _simple_context_kernel(x_ref, wtap_ref, bbr_ref, wres_ref, bres_ref,
                           wcat_ref, bcat_ref, out_ref, cat_ref,
                           *, H, W, Cin, Cout, PAD, tap_offsets):
    HW = H * W
    Ccat = 4 * Cout
    bf16 = jnp.bfloat16
    f32 = jnp.float32

    def tap(ref, r0, c0, width):
        # 32-bit slice (robust unaligned sublane offsets), cast to bf16 at the MXU.
        return ref[r0:r0 + H, c0:c0 + W, :].reshape(HW, width).astype(bf16)

    # conv_cat 'same' padding: zero only the 1-pixel ring of the cat scratch
    # (the interior is fully overwritten below).  Done every step because the
    # scratch is per-core and uninitialized under megacore sharding.
    zrow = jnp.zeros((1, W + 2, Ccat), f32)
    zcol = jnp.zeros((H + 2, 1, Ccat), f32)
    cat_ref[0:1, :, :] = zrow
    cat_ref[H + 1:H + 2, :, :] = zrow
    cat_ref[:, 0:1, :] = zcol
    cat_ref[:, W + 1:W + 2, :] = zcol

    # ---- phase 1: all four branches into ONE register accumulator ------------
    # Each tap's weight was pre-placed by the wrapper into its branch's column
    # block of a (Cin, 4*Cout) matrix, so a plain sum of 25 matmuls yields the
    # concatenated [x0|x1|x2|x3] features directly (no VMEM read-modify-write,
    # no zero-init, no lane-offset stores).  The residual 1x1 shares the center
    # activation.
    xc = tap(x_ref, PAD, PAD, Cin)
    res = jnp.dot(xc, wres_ref[...], preferred_element_type=f32) + bres_ref[...]
    acc = jnp.dot(xc, wtap_ref[0], preferred_element_type=f32)
    for j in range(1, len(tap_offsets)):
        dy, dx = tap_offsets[j]
        sl = tap(x_ref, PAD + dy, PAD + dx, Cin)
        acc = acc + jnp.dot(sl, wtap_ref[j], preferred_element_type=f32)
    acc = acc + bbr_ref[...]
    cat_ref[1:1 + H, 1:1 + W, :] = acc.reshape(H, W, Ccat)

    # ---- phase 2: conv_cat (3x3, d=1) over the VMEM-resident packed cat -------
    acc2 = jnp.dot(tap(cat_ref, 0, 0, Ccat), wcat_ref[0],
                   preferred_element_type=f32)
    for t in range(1, 9):
        ky, kx = divmod(t, 3)
        acc2 = acc2 + jnp.dot(tap(cat_ref, ky, kx, Ccat), wcat_ref[t],
                              preferred_element_type=f32)
    y = jnp.maximum(acc2 + bcat_ref[...], 0.0) + res
    out_ref[...] = y.reshape(H, W, Cout).astype(out_ref.dtype)


# ------------------------------- JAX wrapper -------------------------------- #
def init_params(key, in_channel, out_channel):
    """Deterministic synthetic parameters; weights stored in HWIO layout."""
    ks = jax.random.split(key, 12)

    def w(k, kh, kw, cin, cout):
        fan_in = kh * kw * cin
        return jax.random.normal(k, (kh, kw, cin, cout), jnp.float32) / np.sqrt(fan_in)

    def b(k, cout):
        return 0.1 * jax.random.normal(k, (1, cout), jnp.float32)

    return dict(
        w0=w(ks[0], 1, 1, in_channel, out_channel), b0=b(ks[1], out_channel),
        w1=w(ks[2], 3, 3, in_channel, out_channel), b1=b(ks[3], out_channel),
        w2=w(ks[4], 3, 3, in_channel, out_channel), b2=b(ks[5], out_channel),
        w3=w(ks[6], 3, 3, in_channel, out_channel), b3=b(ks[7], out_channel),
        wcat=w(ks[8], 3, 3, 4 * out_channel, out_channel), bcat=b(ks[9], out_channel),
        wres=w(ks[10], 1, 1, in_channel, out_channel), bres=b(ks[11], out_channel),
    )


@jax.jit
def simple_context_forward(x_nchw, params):
    B, Cin, H, W = x_nchw.shape
    Cout = params["w0"].shape[-1]
    Ccat = 4 * Cout
    offs = _tap_offsets()
    Hp, Wp = H + 2 * PAD, W + 2 * PAD

    # NCHW -> NHWC (kept f32: in-kernel unaligned sublane slicing stays on the
    # 32-bit path), zero halo for 'same' dilated padding.
    # TODO(synk): synthesize the halo in-kernel to avoid the padded HBM copy.
    xh = jnp.transpose(x_nchw, (0, 2, 3, 1))
    xp = jnp.pad(xh, ((0, 0), (PAD, PAD), (PAD, PAD), (0, 0)))

    # Per-tap branch weights with output columns pre-placed into the packed
    # [x0|x1|x2|x3] concat layout (width 4*Cout).  Tap 0 is the shared center
    # activation: branch0's 1x1 plus the center tap of every dilated 3x3.
    wtap = jnp.zeros((len(offs), Cin, Ccat), jnp.float32)
    wtap = wtap.at[0, :, 0:Cout].set(params["w0"].reshape(Cin, Cout))
    names = ("w1", "w2", "w3")
    for bi, nm in enumerate(names):
        wtap = wtap.at[0, :, (bi + 1) * Cout:(bi + 2) * Cout].set(params[nm][1, 1])
    j = 1
    for bi, nm in enumerate(names):
        for t in range(9):
            ky, kx = divmod(t, 3)
            if ky == 1 and kx == 1:
                continue
            wtap = wtap.at[j, :, (bi + 1) * Cout:(bi + 2) * Cout].set(params[nm][ky, kx])
            j += 1
    wtap = wtap.astype(jnp.bfloat16)
    bbr = jnp.concatenate([params["b0"], params["b1"], params["b2"],
                           params["b3"]], axis=-1).astype(jnp.float32)      # (1, 4*Cout)

    wres = params["wres"].reshape(Cin, Cout).astype(jnp.bfloat16)
    bres = params["bres"].astype(jnp.float32)
    wcat = params["wcat"].reshape(9, Ccat, Cout).astype(jnp.bfloat16)
    bcat = params["bcat"].astype(jnp.float32)

    kernel = functools.partial(_simple_context_kernel, H=H, W=W, Cin=Cin,
                               Cout=Cout, PAD=PAD, tap_offsets=offs)

    out = pl.pallas_call(
        kernel,
        out_shape=jax.ShapeDtypeStruct((B, H, W, Cout), jnp.float32),
        grid=(B,),
        in_specs=[
            pl.BlockSpec((None, Hp, Wp, Cin), lambda b: (b, 0, 0, 0)),    # haloed x
            pl.BlockSpec((len(offs), Cin, Ccat), lambda b: (0, 0, 0)),    # branch taps
            pl.BlockSpec((1, Ccat), lambda b: (0, 0)),                    # b0..b3 packed
            pl.BlockSpec((Cin, Cout), lambda b: (0, 0)),                  # residual 1x1
            pl.BlockSpec((1, Cout), lambda b: (0, 0)),                    # bres
            pl.BlockSpec((9, Ccat, Cout), lambda b: (0, 0, 0)),           # conv_cat
            pl.BlockSpec((1, Cout), lambda b: (0, 0)),                    # bcat
        ],
        out_specs=pl.BlockSpec((None, H, W, Cout), lambda b: (b, 0, 0, 0)),
        scratch_shapes=[
            pltpu.VMEM((H + 2, W + 2, Ccat), jnp.float32),  # packed concat + zero ring
        ],
        compiler_params=pltpu.CompilerParams(
            dimension_semantics=("parallel",),              # shard images over TCs
            vmem_limit_bytes=48 * 1024 * 1024),
    )(xp, wtap, bbr, wres, bres, wcat, bcat)

    # Return NCHW like the PyTorch module (no channel-padding to strip anymore).
    return jnp.transpose(out, (0, 3, 1, 2))


# --------------------------- pure-JAX reference ----------------------------- #
def _conv_ref(x_nhwc, w_hwio, b, dilation=1, relu=False):
    k = w_hwio.shape[0]
    pad = dilation * (k - 1) // 2
    y = jax.lax.conv_general_dilated(
        x_nhwc, w_hwio, window_strides=(1, 1),
        padding=[(pad, pad), (pad, pad)], rhs_dilation=(dilation, dilation),
        dimension_numbers=("NHWC", "HWIO", "NHWC"))
    y = y + b.reshape(1, 1, 1, -1)
    return jnp.maximum(y, 0.0) if relu else y


def simple_context_reference(x_nchw, params):
    xh = jnp.transpose(x_nchw, (0, 2, 3, 1))
    x0 = _conv_ref(xh, params["w0"], params["b0"], 1)
    x1 = _conv_ref(xh, params["w1"], params["b1"], 3)
    x2 = _conv_ref(xh, params["w2"], params["b2"], 5)
    x3 = _conv_ref(xh, params["w3"], params["b3"], 7)
    xcat = jnp.concatenate([x0, x1, x2, x3], axis=-1)
    xcat = _conv_ref(xcat, params["wcat"], params["bcat"], 1, relu=True)
    y = xcat + _conv_ref(xh, params["wres"], params["bres"], 1)
    return jnp.transpose(y, (0, 3, 1, 2))


if __name__ == "__main__":
    key = jax.random.PRNGKey(0)
    kx_, kp = jax.random.split(key)

    B, Cin, Cout, H, W = 2, 4, 8, 16, 16
    x = jax.random.normal(kx_, (B, Cin, H, W), jnp.float32)
    params = init_params(kp, Cin, Cout)

    out = jax.block_until_ready(simple_context_forward(x, params))

    # The kernel runs the MXU in bf16 (f32 accumulation), so compare against the
    # f32 reference evaluated on bf16-rounded inputs/weights; the remaining
    # delta is the in-kernel bf16 cast of the concatenated features at conv_cat.
    def q(a):
        return a.astype(jnp.bfloat16).astype(jnp.float32)

    ref = simple_context_reference(q(x), jax.tree_util.tree_map(q, params))
    np.testing.assert_allclose(np.asarray(out), np.asarray(ref), rtol=3e-2, atol=3e-2)

    print("KERNEL_OK")
</pallas_src>

<mosaic_0001>
module attributes {stable_mosaic.version = 11 : i64} {
  func.func @_simple_context_kernel(%arg0: i32, %arg1: memref<1x30x30x4xf32, #tpu.memory_space<vmem>>, %arg2: memref<25x4x32xbf16, #tpu.memory_space<vmem>>, %arg3: memref<1x32xf32, #tpu.memory_space<vmem>>, %arg4: memref<4x8xbf16, #tpu.memory_space<vmem>>, %arg5: memref<1x8xf32, #tpu.memory_space<vmem>>, %arg6: memref<9x32x8xbf16, #tpu.memory_space<vmem>>, %arg7: memref<1x8xf32, #tpu.memory_space<vmem>>, %arg8: memref<1x16x16x8xf32, #tpu.memory_space<vmem>>, %arg9: memref<18x18x32xf32, #tpu.memory_space<vmem>>) attributes {dimension_semantics = [#tpu.dimension_semantics<parallel>], iteration_bounds = array<i64: 2>, scalar_prefetch = 0 : i64, scratch_operands = 1 : i64, tpu.core_type = #tpu.core_type<tc>, window_params = [{transform_indices = @transform_0, window_bounds = array<i64: 1, 30, 30, 4>}, {pipeline_mode = #tpu.pipeline_mode<synchronous>, transform_indices = @transform_1, window_bounds = array<i64: 25, 4, 32>}, {pipeline_mode = #tpu.pipeline_mode<synchronous>, transform_indices = @transform_2, window_bounds = array<i64: 1, 32>}, {pipeline_mode = #tpu.pipeline_mode<synchronous>, transform_indices = @transform_3, window_bounds = array<i64: 4, 8>}, {pipeline_mode = #tpu.pipeline_mode<synchronous>, transform_indices = @transform_4, window_bounds = array<i64: 1, 8>}, {pipeline_mode = #tpu.pipeline_mode<synchronous>, transform_indices = @transform_5, window_bounds = array<i64: 9, 32, 8>}, {pipeline_mode = #tpu.pipeline_mode<synchronous>, transform_indices = @transform_6, window_bounds = array<i64: 1, 8>}, {transform_indices = @transform_7, window_bounds = array<i64: 1, 16, 16, 8>}]} {
    %cst = arith.constant 0.000000e+00 : f32
    %0 = vector.broadcast %cst : f32 to vector<1x18x32xf32>
    %cst_0 = arith.constant 0.000000e+00 : f32
    %1 = vector.broadcast %cst_0 : f32 to vector<18x1x32xf32>
    %c0 = arith.constant 0 : index
    %c0_1 = arith.constant 0 : index
    %c0_2 = arith.constant 0 : index
    %2 = vector.load %arg9[%c0, %c0_1, %c0_2] : memref<18x18x32xf32, #tpu.memory_space<vmem>>, vector<1x18x32xf32>
    tpu.vector_store %arg9[%c0, %c0_1, %c0_2], %0 {strides = array<i32>} : memref<18x18x32xf32, #tpu.memory_space<vmem>>, vector<1x18x32xf32>,
    %c17 = arith.constant 17 : index
    %c0_3 = arith.constant 0 : index
    %c0_4 = arith.constant 0 : index
    %3 = vector.load %arg9[%c17, %c0_3, %c0_4] : memref<18x18x32xf32, #tpu.memory_space<vmem>>, vector<1x18x32xf32>
    tpu.vector_store %arg9[%c17, %c0_3, %c0_4], %0 {strides = array<i32>} : memref<18x18x32xf32, #tpu.memory_space<vmem>>, vector<1x18x32xf32>,
    %c0_5 = arith.constant 0 : index
    %c0_6 = arith.constant 0 : index
    %c0_7 = arith.constant 0 : index
    %4 = vector.load %arg9[%c0_5, %c0_6, %c0_7] : memref<18x18x32xf32, #tpu.memory_space<vmem>>, vector<18x1x32xf32>
    tpu.vector_store %arg9[%c0_5, %c0_6, %c0_7], %1 {strides = array<i32>} : memref<18x18x32xf32, #tpu.memory_space<vmem>>, vector<18x1x32xf32>,
    %c0_8 = arith.constant 0 : index
    %c17_9 = arith.constant 17 : index
    %c0_10 = arith.constant 0 : index
    %5 = vector.load %arg9[%c0_8, %c17_9, %c0_10] : memref<18x18x32xf32, #tpu.memory_space<vmem>>, vector<18x1x32xf32>
    tpu.vector_store %arg9[%c0_8, %c17_9, %c0_10], %1 {strides = array<i32>} : memref<18x18x32xf32, #tpu.memory_space<vmem>>, vector<18x1x32xf32>,
    %c0_11 = arith.constant 0 : index
    %c7 = arith.constant 7 : index
    %c7_12 = arith.constant 7 : index
    %c0_13 = arith.constant 0 : index
    %6 = vector.load %arg1[%c0_11, %c7, %c7_12, %c0_13] : memref<1x30x30x4xf32, #tpu.memory_space<vmem>>, vector<1x16x16x4xf32>
    %7 = vector.shape_cast %6 : vector<1x16x16x4xf32> to vector<16x16x4xf32>
    %8 = vector.shape_cast %7 : vector<16x16x4xf32> to vector<256x4xf32>
    %9 = arith.truncf %8 : vector<256x4xf32> to vector<256x4xbf16>
    %c0_14 = arith.constant 0 : index
    %c0_15 = arith.constant 0 : index
    %10 = vector.load %arg4[%c0_14, %c0_15] : memref<4x8xbf16, #tpu.memory_space<vmem>>, vector<4x8xbf16>
    %cst_16 = arith.constant dense<0.000000e+00> : vector<256x8xf32>
    %11 = tpu.matmul %9, %10, %cst_16 {dimension_numbers = #tpu.dot_dimension_numbers<[1], [0], [0], [1], [0, 0, 1, 1], [], []>} : vector<256x4xbf16>, vector<4x8xbf16>, vector<256x8xf32> -> vector<256x8xf32>
    %c0_17 = arith.constant 0 : index
    %c0_18 = arith.constant 0 : index
    %12 = vector.load %arg5[%c0_17, %c0_18] : memref<1x8xf32, #tpu.memory_space<vmem>>, vector<1x8xf32>
    %13 = vector.broadcast %12 : vector<1x8xf32> to vector<256x8xf32>
    %14 = arith.addf %11, %13 : vector<256x8xf32>
    %c0_19 = arith.constant 0 : index
    %c0_20 = arith.constant 0 : index
    %c0_21 = arith.constant 0 : index
    %15 = vector.load %arg2[%c0_19, %c0_20, %c0_21] : memref<25x4x32xbf16, #tpu.memory_space<vmem>>, vector<1x4x32xbf16>
    %16 = vector.shape_cast %15 : vector<1x4x32xbf16> to vector<4x32xbf16>
    %cst_22 = arith.constant dense<0.000000e+00> : vector<256x32xf32>
    %17 = tpu.matmul %9, %16, %cst_22 {dimension_numbers = #tpu.dot_dimension_numbers<[1], [0], [0], [1], [0, 0, 1, 1], [], []>} : vector<256x4xbf16>, vector<4x32xbf16>, vector<256x32xf32> -> vector<256x32xf32>
    %c0_23 = arith.constant 0 : index
    %c4 = arith.constant 4 : index
    %c4_24 = arith.constant 4 : index
    %c0_25 = arith.constant 0 : index
    %18 = vector.load %arg1[%c0_23, %c4, %c4_24, %c0_25] : memref<1x30x30x4xf32, #tpu.memory_space<vmem>>, vector<1x16x16x4xf32>
    %19 = vector.shape_cast %18 : vector<1x16x16x4xf32> to vector<16x16x4xf32>
    %20 = vector.shape_cast %19 : vector<16x16x4xf32> to vector<256x4xf32>
    %21 = arith.truncf %20 : vector<256x4xf32> to vector<256x4xbf16>
    %c1 = arith.constant 1 : index
    %c0_26 = arith.constant 0 : index
    %c0_27 = arith.constant 0 : index
    %22 = vector.load %arg2[%c1, %c0_26, %c0_27] : memref<25x4x32xbf16, #tpu.memory_space<vmem>>, vector<1x4x32xbf16>
    %23 = vector.shape_cast %22 : vector<1x4x32xbf16> to vector<4x32xbf16>
    %cst_28 = arith.constant dense<0.000000e+00> : vector<256x32xf32>
    %24 = tpu.matmul %21, %23, %cst_28 {dimension_numbers = #tpu.dot_dimension_numbers<[1], [0], [0], [1], [0, 0, 1, 1], [], []>} : vector<256x4xbf16>, vector<4x32xbf16>, vector<256x32xf32> -> vector<256x32xf32>
    %25 = arith.addf %17, %24 : vector<256x32xf32>
    %c0_29 = arith.constant 0 : index
    %c4_30 = arith.constant 4 : index
    %c7_31 = arith.constant 7 : index
    %c0_32 = arith.constant 0 : index
    %26 = vector.load %arg1[%c0_29, %c4_30, %c7_31, %c0_32] : memref<1x30x30x4xf32, #tpu.memory_space<vmem>>, vector<1x16x16x4xf32>
    %27 = vector.shape_cast %26 : vector<1x16x16x4xf32> to vector<16x16x4xf32>
    %28 = vector.shape_cast %27 : vector<16x16x4xf32> to vector<256x4xf32>
    %29 = arith.truncf %28 : vector<256x4xf32> to vector<256x4xbf16>
    %c2 = arith.constant 2 : index
    %c0_33 = arith.constant 0 : index
    %c0_34 = arith.constant 0 : index
    %30 = vector.load %arg2[%c2, %c0_33, %c0_34] : memref<25x4x32xbf16, #tpu.memory_space<vmem>>, vector<1x4x32xbf16>
    %31 = vector.shape_cast %30 : vector<1x4x32xbf16> to vector<4x32xbf16>
    %cst_35 = arith.constant dense<0.000000e+00> : vector<256x32xf32>
    %32 = tpu.matmul %29, %31, %cst_35 {dimension_numbers = #tpu.dot_dimension_numbers<[1], [0], [0], [1], [0, 0, 1, 1], [], []>} : vector<256x4xbf16>, vector<4x32xbf16>, vector<256x32xf32> -> vector<256x32xf32>
    %33 = arith.addf %25, %32 : vector<256x32xf32>
    %c0_36 = arith.constant 0 : index
    %c4_37 = arith.constant 4 : index
    %c10 = arith.constant 10 : index
    %c0_38 = arith.constant 0 : index
    %34 = vector.load %arg1[%c0_36, %c4_37, %c10, %c0_38] : memref<1x30x30x4xf32, #tpu.memory_space<vmem>>, vector<1x16x16x4xf32>
    %35 = vector.shape_cast %34 : vector<1x16x16x4xf32> to vector<16x16x4xf32>
    %36 = vector.shape_cast %35 : vector<16x16x4xf32> to vector<256x4xf32>
    %37 = arith.truncf %36 : vector<256x4xf32> to vector<256x4xbf16>
    %c3 = arith.constant 3 : index
    %c0_39 = arith.constant 0 : index
    %c0_40 = arith.constant 0 : index
    %38 = vector.load %arg2[%c3, %c0_39, %c0_40] : memref<25x4x32xbf16, #tpu.memory_space<vmem>>, vector<1x4x32xbf16>
    %39 = vector.shape_cast %38 : vector<1x4x32xbf16> to vector<4x32xbf16>
    %cst_41 = arith.constant dense<0.000000e+00> : vector<256x32xf32>
    %40 = tpu.matmul %37, %39, %cst_41 {dimension_numbers = #tpu.dot_dimension_numbers<[1], [0], [0], [1], [0, 0, 1, 1], [], []>} : vector<256x4xbf16>, vector<4x32xbf16>, vector<256x32xf32> -> vector<256x32xf32>
    %41 = arith.addf %33, %40 : vector<256x32xf32>
    %c0_42 = arith.constant 0 : index
    %c7_43 = arith.constant 7 : index
    %c4_44 = arith.constant 4 : index
    %c0_45 = arith.constant 0 : index
    %42 = vector.load %arg1[%c0_42, %c7_43, %c4_44, %c0_45] : memref<1x30x30x4xf32, #tpu.memory_space<vmem>>, vector<1x16x16x4xf32>
    %43 = vector.shape_cast %42 : vector<1x16x16x4xf32> to vector<16x16x4xf32>
    %44 = vector.shape_cast %43 : vector<16x16x4xf32> to vector<256x4xf32>
    %45 = arith.truncf %44 : vector<256x4xf32> to vector<256x4xbf16>
    %c4_46 = arith.constant 4 : index
    %c0_47 = arith.constant 0 : index
    %c0_48 = arith.constant 0 : index
    %46 = vector.load %arg2[%c4_46, %c0_47, %c0_48] : memref<25x4x32xbf16, #tpu.memory_space<vmem>>, vector<1x4x32xbf16>
    %47 = vector.shape_cast %46 : vector<1x4x32xbf16> to vector<4x32xbf16>
    %cst_49 = arith.constant dense<0.000000e+00> : vector<256x32xf32>
    %48 = tpu.matmul %45, %47, %cst_49 {dimension_numbers = #tpu.dot_dimension_numbers<[1], [0], [0], [1], [0, 0, 1, 1], [], []>} : vector<256x4xbf16>, vector<4x32xbf16>, vector<256x32xf32> -> vector<256x32xf32>
    %49 = arith.addf %41, %48 : vector<256x32xf32>
    %c0_50 = arith.constant 0 : index
    %c7_51 = arith.constant 7 : index
    %c10_52 = arith.constant 10 : index
    %c0_53 = arith.constant 0 : index
    %50 = vector.load %arg1[%c0_50, %c7_51, %c10_52, %c0_53] : memref<1x30x30x4xf32, #tpu.memory_space<vmem>>, vector<1x16x16x4xf32>
    %51 = vector.shape_cast %50 : vector<1x16x16x4xf32> to vector<16x16x4xf32>
    %52 = vector.shape_cast %51 : vector<16x16x4xf32> to vector<256x4xf32>
    %53 = arith.truncf %52 : vector<256x4xf32> to vector<256x4xbf16>
    %c5 = arith.constant 5 : index
    %c0_54 = arith.constant 0 : index
    %c0_55 = arith.constant 0 : index
    %54 = vector.load %arg2[%c5, %c0_54, %c0_55] : memref<25x4x32xbf16, #tpu.memory_space<vmem>>, vector<1x4x32xbf16>
    %55 = vector.shape_cast %54 : vector<1x4x32xbf16> to vector<4x32xbf16>
    %cst_56 = arith.constant dense<0.000000e+00> : vector<256x32xf32>
    %56 = tpu.matmul %53, %55, %cst_56 {dimension_numbers = #tpu.dot_dimension_numbers<[1], [0], [0], [1], [0, 0, 1, 1], [], []>} : vector<256x4xbf16>, vector<4x32xbf16>, vector<256x32xf32> -> vector<256x32xf32>
    %57 = arith.addf %49, %56 : vector<256x32xf32>
    %c0_57 = arith.constant 0 : index
    %c10_58 = arith.constant 10 : index
    %c4_59 = arith.constant 4 : index
    %c0_60 = arith.constant 0 : index
    %58 = vector.load %arg1[%c0_57, %c10_58, %c4_59, %c0_60] : memref<1x30x30x4xf32, #tpu.memory_space<vmem>>, vector<1x16x16x4xf32>
    %59 = vector.shape_cast %58 : vector<1x16x16x4xf32> to vector<16x16x4xf32>
    %60 = vector.shape_cast %59 : vector<16x16x4xf32> to vector<256x4xf32>
    %61 = arith.truncf %60 : vector<256x4xf32> to vector<256x4xbf16>
    %c6 = arith.constant 6 : index
    %c0_61 = arith.constant 0 : index
    %c0_62 = arith.constant 0 : index
    %62 = vector.load %arg2[%c6, %c0_61, %c0_62] : memref<25x4x32xbf16, #tpu.memory_space<vmem>>, vector<1x4x32xbf16>
    %63 = vector.shape_cast %62 : vector<1x4x32xbf16> to vector<4x32xbf16>
    %cst_63 = arith.constant dense<0.000000e+00> : vector<256x32xf32>
    %64 = tpu.matmul %61, %63, %cst_63 {dimension_numbers = #tpu.dot_dimension_numbers<[1], [0], [0], [1], [0, 0, 1, 1], [], []>} : vector<256x4xbf16>, vector<4x32xbf16>, vector<256x32xf32> -> vector<256x32xf32>
    %65 = arith.addf %57, %64 : vector<256x32xf32>
    %c0_64 = arith.constant 0 : index
    %c10_65 = arith.constant 10 : index
    %c7_66 = arith.constant 7 : index
    %c0_67 = arith.constant 0 : index
    %66 = vector.load %arg1[%c0_64, %c10_65, %c7_66, %c0_67] : memref<1x30x30x4xf32, #tpu.memory_space<vmem>>, vector<1x16x16x4xf32>
    %67 = vector.shape_cast %66 : vector<1x16x16x4xf32> to vector<16x16x4xf32>
    %68 = vector.shape_cast %67 : vector<16x16x4xf32> to vector<256x4xf32>
    %69 = arith.truncf %68 : vector<256x4xf32> to vector<256x4xbf16>
    %c7_68 = arith.constant 7 : index
    %c0_69 = arith.constant 0 : index
    %c0_70 = arith.constant 0 : index
    %70 = vector.load %arg2[%c7_68, %c0_69, %c0_70] : memref<25x4x32xbf16, #tpu.memory_space<vmem>>, vector<1x4x32xbf16>
    %71 = vector.shape_cast %70 : vector<1x4x32xbf16> to vector<4x32xbf16>
    %cst_71 = arith.constant dense<0.000000e+00> : vector<256x32xf32>
    %72 = tpu.matmul %69, %71, %cst_71 {dimension_numbers = #tpu.dot_dimension_numbers<[1], [0], [0], [1], [0, 0, 1, 1], [], []>} : vector<256x4xbf16>, vector<4x32xbf16>, vector<256x32xf32> -> vector<256x32xf32>
    %73 = arith.addf %65, %72 : vector<256x32xf32>
    %c0_72 = arith.constant 0 : index
    %c10_73 = arith.constant 10 : index
    %c10_74 = arith.constant 10 : index
    %c0_75 = arith.constant 0 : index
    %74 = vector.load %arg1[%c0_72, %c10_73, %c10_74, %c0_75] : memref<1x30x30x4xf32, #tpu.memory_space<vmem>>, vector<1x16x16x4xf32>
    %75 = vector.shape_cast %74 : vector<1x16x16x4xf32> to vector<16x16x4xf32>
    %76 = vector.shape_cast %75 : vector<16x16x4xf32> to vector<256x4xf32>
    %77 = arith.truncf %76 : vector<256x4xf32> to vector<256x4xbf16>
    %c8 = arith.constant 8 : index
    %c0_76 = arith.constant 0 : index
    %c0_77 = arith.constant 0 : index
    %78 = vector.load %arg2[%c8, %c0_76, %c0_77] : memref<25x4x32xbf16, #tpu.memory_space<vmem>>, vector<1x4x32xbf16>
    %79 = vector.shape_cast %78 : vector<1x4x32xbf16> to vector<4x32xbf16>
    %cst_78 = arith.constant dense<0.000000e+00> : vector<256x32xf32>
    %80 = tpu.matmul %77, %79, %cst_78 {dimension_numbers = #tpu.dot_dimension_numbers<[1], [0], [0], [1], [0, 0, 1, 1], [], []>} : vector<256x4xbf16>, vector<4x32xbf16>, vector<256x32xf32> -> vector<256x32xf32>
    %81 = arith.addf %73, %80 : vector<256x32xf32>
    %c0_79 = arith.constant 0 : index
    %c2_80 = arith.constant 2 : index
    %c2_81 = arith.constant 2 : index
    %c0_82 = arith.constant 0 : index
    %82 = vector.load %arg1[%c0_79, %c2_80, %c2_81, %c0_82] : memref<1x30x30x4xf32, #tpu.memory_space<vmem>>, vector<1x16x16x4xf32>
    %83 = vector.shape_cast %82 : vector<1x16x16x4xf32> to vector<16x16x4xf32>
    %84 = vector.shape_cast %83 : vector<16x16x4xf32> to vector<256x4xf32>
    %85 = arith.truncf %84 : vector<256x4xf32> to vector<256x4xbf16>
    %c9 = arith.constant 9 : index
    %c0_83 = arith.constant 0 : index
    %c0_84 = arith.constant 0 : index
    %86 = vector.load %arg2[%c9, %c0_83, %c0_84] : memref<25x4x32xbf16, #tpu.memory_space<vmem>>, vector<1x4x32xbf16>
    %87 = vector.shape_cast %86 : vector<1x4x32xbf16> to vector<4x32xbf16>
    %cst_85 = arith.constant dense<0.000000e+00> : vector<256x32xf32>
    %88 = tpu.matmul %85, %87, %cst_85 {dimension_numbers = #tpu.dot_dimension_numbers<[1], [0], [0], [1], [0, 0, 1, 1], [], []>} : vector<256x4xbf16>, vector<4x32xbf16>, vector<256x32xf32> -> vector<256x32xf32>
    %89 = arith.addf %81, %88 : vector<256x32xf32>
    %c0_86 = arith.constant 0 : index
    %c2_87 = arith.constant 2 : index
    %c7_88 = arith.constant 7 : index
    %c0_89 = arith.constant 0 : index
    %90 = vector.load %arg1[%c0_86, %c2_87, %c7_88, %c0_89] : memref<1x30x30x4xf32, #tpu.memory_space<vmem>>, vector<1x16x16x4xf32>
    %91 = vector.shape_cast %90 : vector<1x16x16x4xf32> to vector<16x16x4xf32>
    %92 = vector.shape_cast %91 : vector<16x16x4xf32> to vector<256x4xf32>
    %93 = arith.truncf %92 : vector<256x4xf32> to vector<256x4xbf16>
    %c10_90 = arith.constant 10 : index
    %c0_91 = arith.constant 0 : index
    %c0_92 = arith.constant 0 : index
    %94 = vector.load %arg2[%c10_90, %c0_91, %c0_92] : memref<25x4x32xbf16, #tpu.memory_space<vmem>>, vector<1x4x32xbf16>
    %95 = vector.shape_cast %94 : vector<1x4x32xbf16> to vector<4x32xbf16>
    %cst_93 = arith.constant dense<0.000000e+00> : vector<256x32xf32>
    %96 = tpu.matmul %93, %95, %cst_93 {dimension_numbers = #tpu.dot_dimension_numbers<[1], [0], [0], [1], [0, 0, 1, 1], [], []>} : vector<256x4xbf16>, vector<4x32xbf16>, vector<256x32xf32> -> vector<256x32xf32>
    %97 = arith.addf %89, %96 : vector<256x32xf32>
    %c0_94 = arith.constant 0 : index
    %c2_95 = arith.constant 2 : index
    %c12 = arith.constant 12 : index
    %c0_96 = arith.constant 0 : index
    %98 = vector.load %arg1[%c0_94, %c2_95, %c12, %c0_96] : memref<1x30x30x4xf32, #tpu.memory_space<vmem>>, vector<1x16x16x4xf32>
    %99 = vector.shape_cast %98 : vector<1x16x16x4xf32> to vector<16x16x4xf32>
    %100 = vector.shape_cast %99 : vector<16x16x4xf32> to vector<256x4xf32>
    %101 = arith.truncf %100 : vector<256x4xf32> to vector<256x4xbf16>
    %c11 = arith.constant 11 : index
    %c0_97 = arith.constant 0 : index
    %c0_98 = arith.constant 0 : index
    %102 = vector.load %arg2[%c11, %c0_97, %c0_98] : memref<25x4x32xbf16, #tpu.memory_space<vmem>>, vector<1x4x32xbf16>
    %103 = vector.shape_cast %102 : vector<1x4x32xbf16> to vector<4x32xbf16>
    %cst_99 = arith.constant dense<0.000000e+00> : vector<256x32xf32>
    %104 = tpu.matmul %101, %103, %cst_99 {dimension_numbers = #tpu.dot_dimension_numbers<[1], [0], [0], [1], [0, 0, 1, 1], [], []>} : vector<256x4xbf16>, vector<4x32xbf16>, vector<256x32xf32> -> vector<256x32xf32>
    %105 = arith.addf %97, %104 : vector<256x32xf32>
    %c0_100 = arith.constant 0 : index
    %c7_101 = arith.constant 7 : index
    %c2_102 = arith.constant 2 : index
    %c0_103 = arith.constant 0 : index
    %106 = vector.load %arg1[%c0_100, %c7_101, %c2_102, %c0_103] : memref<1x30x30x4xf32, #tpu.memory_space<vmem>>, vector<1x16x16x4xf32>
    %107 = vector.shape_cast %106 : vector<1x16x16x4xf32> to vector<16x16x4xf32>
    %108 = vector.shape_cast %107 : vector<16x16x4xf32> to vector<256x4xf32>
    %109 = arith.truncf %108 : vector<256x4xf32> to vector<256x4xbf16>
    %c12_104 = arith.constant 12 : index
    %c0_105 = arith.constant 0 : index
    %c0_106 = arith.constant 0 : index
    %110 = vector.load %arg2[%c12_104, %c0_105, %c0_106] : memref<25x4x32xbf16, #tpu.memory_space<vmem>>, vector<1x4x32xbf16>
    %111 = vector.shape_cast %110 : vector<1x4x32xbf16> to vector<4x32xbf16>
    %cst_107 = arith.constant dense<0.000000e+00> : vector<256x32xf32>
    %112 = tpu.matmul %109, %111, %cst_107 {dimension_numbers = #tpu.dot_dimension_numbers<[1], [0], [0], [1], [0, 0, 1, 1], [], []>} : vector<256x4xbf16>, vector<4x32xbf16>, vector<256x32xf32> -> vector<256x32xf32>
    %113 = arith.addf %105, %112 : vector<256x32xf32>
    %c0_108 = arith.constant 0 : index
    %c7_109 = arith.constant 7 : index
    %c12_110 = arith.constant 12 : index
    %c0_111 = arith.constant 0 : index
    %114 = vector.load %arg1[%c0_108, %c7_109, %c12_110, %c0_111] : memref<1x30x30x4xf32, #tpu.memory_space<vmem>>, vector<1x16x16x4xf32>
    %115 = vector.shape_cast %114 : vector<1x16x16x4xf32> to vector<16x16x4xf32>
    %116 = vector.shape_cast %115 : vector<16x16x4xf32> to vector<256x4xf32>
    %117 = arith.truncf %116 : vector<256x4xf32> to vector<256x4xbf16>
    %c13 = arith.constant 13 : index
    %c0_112 = arith.constant 0 : index
    %c0_113 = arith.constant 0 : index
    %118 = vector.load %arg2[%c13, %c0_112, %c0_113] : memref<25x4x32xbf16, #tpu.memory_space<vmem>>, vector<1x4x32xbf16>
    %119 = vector.shape_cast %118 : vector<1x4x32xbf16> to vector<4x32xbf16>
    %cst_114 = arith.constant dense<0.000000e+00> : vector<256x32xf32>
    %120 = tpu.matmul %117, %119, %cst_114 {dimension_numbers = #tpu.dot_dimension_numbers<[1], [0], [0], [1], [0, 0, 1, 1], [], []>} : vector<256x4xbf16>, vector<4x32xbf16>, vector<256x32xf32> -> vector<256x32xf32>
    %121 = arith.addf %113, %120 : vector<256x32xf32>
    %c0_115 = arith.constant 0 : index
    %c12_116 = arith.constant 12 : index
    %c2_117 = arith.constant 2 : index
    %c0_118 = arith.constant 0 : index
    %122 = vector.load %arg1[%c0_115, %c12_116, %c2_117, %c0_118] : memref<1x30x30x4xf32, #tpu.memory_space<vmem>>, vector<1x16x16x4xf32>
    %123 = vector.shape_cast %122 : vector<1x16x16x4xf32> to vector<16x16x4xf32>
    %124 = vector.shape_cast %123 : vector<16x16x4xf32> to vector<256x4xf32>
    %125 = arith.truncf %124 : vector<256x4xf32> to vector<256x4xbf16>
    %c14 = arith.constant 14 : index
    %c0_119 = arith.constant 0 : index
    %c0_120 = arith.constant 0 : index
    %126 = vector.load %arg2[%c14, %c0_119, %c0_120] : memref<25x4x32xbf16, #tpu.memory_space<vmem>>, vector<1x4x32xbf16>
    %127 = vector.shape_cast %126 : vector<1x4x32xbf16> to vector<4x32xbf16>
    %cst_121 = arith.constant dense<0.000000e+00> : vector<256x32xf32>
    %128 = tpu.matmul %125, %127, %cst_121 {dimension_numbers = #tpu.dot_dimension_numbers<[1], [0], [0], [1], [0, 0, 1, 1], [], []>} : vector<256x4xbf16>, vector<4x32xbf16>, vector<256x32xf32> -> vector<256x32xf32>
    %129 = arith.addf %121, %128 : vector<256x32xf32>
    %c0_122 = arith.constant 0 : index
    %c12_123 = arith.constant 12 : index
    %c7_124 = arith.constant 7 : index
    %c0_125 = arith.constant 0 : index
    %130 = vector.load %arg1[%c0_122, %c12_123, %c7_124, %c0_125] : memref<1x30x30x4xf32, #tpu.memory_space<vmem>>, vector<1x16x16x4xf32>
    %131 = vector.shape_cast %130 : vector<1x16x16x4xf32> to vector<16x16x4xf32>
    %132 = vector.shape_cast %131 : vector<16x16x4xf32> to vector<256x4xf32>
    %133 = arith.truncf %132 : vector<256x4xf32> to vector<256x4xbf16>
    %c15 = arith.constant 15 : index
    %c0_126 = arith.constant 0 : index
    %c0_127 = arith.constant 0 : index
    %134 = vector.load %arg2[%c15, %c0_126, %c0_127] : memref<25x4x32xbf16, #tpu.memory_space<vmem>>, vector<1x4x32xbf16>
    %135 = vector.shape_cast %134 : vector<1x4x32xbf16> to vector<4x32xbf16>
    %cst_128 = arith.constant dense<0.000000e+00> : vector<256x32xf32>
    %136 = tpu.matmul %133, %135, %cst_128 {dimension_numbers = #tpu.dot_dimension_numbers<[1], [0], [0], [1], [0, 0, 1, 1], [], []>} : vector<256x4xbf16>, vector<4x32xbf16>, vector<256x32xf32> -> vector<256x32xf32>
    %137 = arith.addf %129, %136 : vector<256x32xf32>
    %c0_129 = arith.constant 0 : index
    %c12_130 = arith.constant 12 : index
    %c12_131 = arith.constant 12 : index
    %c0_132 = arith.constant 0 : index
    %138 = vector.load %arg1[%c0_129, %c12_130, %c12_131, %c0_132] : memref<1x30x30x4xf32, #tpu.memory_space<vmem>>, vector<1x16x16x4xf32>
    %139 = vector.shape_cast %138 : vector<1x16x16x4xf32> to vector<16x16x4xf32>
    %140 = vector.shape_cast %139 : vector<16x16x4xf32> to vector<256x4xf32>
    %141 = arith.truncf %140 : vector<256x4xf32> to vector<256x4xbf16>
    %c16 = arith.constant 16 : index
    %c0_133 = arith.constant 0 : index
    %c0_134 = arith.constant 0 : index
    %142 = vector.load %arg2[%c16, %c0_133, %c0_134] : memref<25x4x32xbf16, #tpu.memory_space<vmem>>, vector<1x4x32xbf16>
    %143 = vector.shape_cast %142 : vector<1x4x32xbf16> to vector<4x32xbf16>
    %cst_135 = arith.constant dense<0.000000e+00> : vector<256x32xf32>
    %144 = tpu.matmul %141, %143, %cst_135 {dimension_numbers = #tpu.dot_dimension_numbers<[1], [0], [0], [1], [0, 0, 1, 1], [], []>} : vector<256x4xbf16>, vector<4x32xbf16>, vector<256x32xf32> -> vector<256x32xf32>
    %145 = arith.addf %137, %144 : vector<256x32xf32>
    %c0_136 = arith.constant 0 : index
    %c0_137 = arith.constant 0 : index
    %c0_138 = arith.constant 0 : index
    %c0_139 = arith.constant 0 : index
    %146 = vector.load %arg1[%c0_136, %c0_137, %c0_138, %c0_139] : memref<1x30x30x4xf32, #tpu.memory_space<vmem>>, vector<1x16x16x4xf32>
    %147 = vector.shape_cast %146 : vector<1x16x16x4xf32> to vector<16x16x4xf32>
    %148 = vector.shape_cast %147 : vector<16x16x4xf32> to vector<256x4xf32>
    %149 = arith.truncf %148 : vector<256x4xf32> to vector<256x4xbf16>
    %c17_140 = arith.constant 17 : index
    %c0_141 = arith.constant 0 : index
    %c0_142 = arith.constant 0 : index
    %150 = vector.load %arg2[%c17_140, %c0_141, %c0_142] : memref<25x4x32xbf16, #tpu.memory_space<vmem>>, vector<1x4x32xbf16>
    %151 = vector.shape_cast %150 : vector<1x4x32xbf16> to vector<4x32xbf16>
    %cst_143 = arith.constant dense<0.000000e+00> : vector<256x32xf32>
    %152 = tpu.matmul %149, %151, %cst_143 {dimension_numbers = #tpu.dot_dimension_numbers<[1], [0], [0], [1], [0, 0, 1, 1], [], []>} : vector<256x4xbf16>, vector<4x32xbf16>, vector<256x32xf32> -> vector<256x32xf32>
    %153 = arith.addf %145, %152 : vector<256x32xf32>
    %c0_144 = arith.constant 0 : index
    %c0_145 = arith.constant 0 : index
    %c7_146 = arith.constant 7 : index
    %c0_147 = arith.constant 0 : index
    %154 = vector.load %arg1[%c0_144, %c0_145, %c7_146, %c0_147] : memref<1x30x30x4xf32, #tpu.memory_space<vmem>>, vector<1x16x16x4xf32>
    %155 = vector.shape_cast %154 : vector<1x16x16x4xf32> to vector<16x16x4xf32>
    %156 = vector.shape_cast %155 : vector<16x16x4xf32> to vector<256x4xf32>
    %157 = arith.truncf %156 : vector<256x4xf32> to vector<256x4xbf16>
    %c18 = arith.constant 18 : index
    %c0_148 = arith.constant 0 : index
    %c0_149 = arith.constant 0 : index
    %158 = vector.load %arg2[%c18, %c0_148, %c0_149] : memref<25x4x32xbf16, #tpu.memory_space<vmem>>, vector<1x4x32xbf16>
    %159 = vector.shape_cast %158 : vector<1x4x32xbf16> to vector<4x32xbf16>
    %cst_150 = arith.constant dense<0.000000e+00> : vector<256x32xf32>
    %160 = tpu.matmul %157, %159, %cst_150 {dimension_numbers = #tpu.dot_dimension_numbers<[1], [0], [0], [1], [0, 0, 1, 1], [], []>} : vector<256x4xbf16>, vector<4x32xbf16>, vector<256x32xf32> -> vector<256x32xf32>
    %161 = arith.addf %153, %160 : vector<256x32xf32>
    %c0_151 = arith.constant 0 : index
    %c0_152 = arith.constant 0 : index
    %c14_153 = arith.constant 14 : index
    %c0_154 = arith.constant 0 : index
    %162 = vector.load %arg1[%c0_151, %c0_152, %c14_153, %c0_154] : memref<1x30x30x4xf32, #tpu.memory_space<vmem>>, vector<1x16x16x4xf32>
    %163 = vector.shape_cast %162 : vector<1x16x16x4xf32> to vector<16x16x4xf32>
    %164 = vector.shape_cast %163 : vector<16x16x4xf32> to vector<256x4xf32>
    %165 = arith.truncf %164 : vector<256x4xf32> to vector<256x4xbf16>
    %c19 = arith.constant 19 : index
    %c0_155 = arith.constant 0 : index
    %c0_156 = arith.constant 0 : index
    %166 = vector.load %arg2[%c19, %c0_155, %c0_156] : memref<25x4x32xbf16, #tpu.memory_space<vmem>>, vector<1x4x32xbf16>
    %167 = vector.shape_cast %166 : vector<1x4x32xbf16> to vector<4x32xbf16>
    %cst_157 = arith.constant dense<0.000000e+00> : vector<256x32xf32>
    %168 = tpu.matmul %165, %167, %cst_157 {dimension_numbers = #tpu.dot_dimension_numbers<[1], [0], [0], [1], [0, 0, 1, 1], [], []>} : vector<256x4xbf16>, vector<4x32xbf16>, vector<256x32xf32> -> vector<256x32xf32>
    %169 = arith.addf %161, %168 : vector<256x32xf32>
    %c0_158 = arith.constant 0 : index
    %c7_159 = arith.constant 7 : index
    %c0_160 = arith.constant 0 : index
    %c0_161 = arith.constant 0 : index
    %170 = vector.load %arg1[%c0_158, %c7_159, %c0_160, %c0_161] : memref<1x30x30x4xf32, #tpu.memory_space<vmem>>, vector<1x16x16x4xf32>
    %171 = vector.shape_cast %170 : vector<1x16x16x4xf32> to vector<16x16x4xf32>
    %172 = vector.shape_cast %171 : vector<16x16x4xf32> to vector<256x4xf32>
    %173 = arith.truncf %172 : vector<256x4xf32> to vector<256x4xbf16>
    %c20 = arith.constant 20 : index
    %c0_162 = arith.constant 0 : index
    %c0_163 = arith.constant 0 : index
    %174 = vector.load %arg2[%c20, %c0_162, %c0_163] : memref<25x4x32xbf16, #tpu.memory_space<vmem>>, vector<1x4x32xbf16>
    %175 = vector.shape_cast %174 : vector<1x4x32xbf16> to vector<4x32xbf16>
    %cst_164 = arith.constant dense<0.000000e+00> : vector<256x32xf32>
    %176 = tpu.matmul %173, %175, %cst_164 {dimension_numbers = #tpu.dot_dimension_numbers<[1], [0], [0], [1], [0, 0, 1, 1], [], []>} : vector<256x4xbf16>, vector<4x32xbf16>, vector<256x32xf32> -> vector<256x32xf32>
    %177 = arith.addf %169, %176 : vector<256x32xf32>
    %c0_165 = arith.constant 0 : index
    %c7_166 = arith.constant 7 : index
    %c14_167 = arith.constant 14 : index
    %c0_168 = arith.constant 0 : index
    %178 = vector.load %arg1[%c0_165, %c7_166, %c14_167, %c0_168] : memref<1x30x30x4xf32, #tpu.memory_space<vmem>>, vector<1x16x16x4xf32>
    %179 = vector.shape_cast %178 : vector<1x16x16x4xf32> to vector<16x16x4xf32>
    %180 = vector.shape_cast %179 : vector<16x16x4xf32> to vector<256x4xf32>
    %181 = arith.truncf %180 : vector<256x4xf32> to vector<256x4xbf16>
    %c21 = arith.constant 21 : index
    %c0_169 = arith.constant 0 : index
    %c0_170 = arith.constant 0 : index
    %182 = vector.load %arg2[%c21, %c0_169, %c0_170] : memref<25x4x32xbf16, #tpu.memory_space<vmem>>, vector<1x4x32xbf16>
    %183 = vector.shape_cast %182 : vector<1x4x32xbf16> to vector<4x32xbf16>
    %cst_171 = arith.constant dense<0.000000e+00> : vector<256x32xf32>
    %184 = tpu.matmul %181, %183, %cst_171 {dimension_numbers = #tpu.dot_dimension_numbers<[1], [0], [0], [1], [0, 0, 1, 1], [], []>} : vector<256x4xbf16>, vector<4x32xbf16>, vector<256x32xf32> -> vector<256x32xf32>
    %185 = arith.addf %177, %184 : vector<256x32xf32>
    %c0_172 = arith.constant 0 : index
    %c14_173 = arith.constant 14 : index
    %c0_174 = arith.constant 0 : index
    %c0_175 = arith.constant 0 : index
    %186 = vector.load %arg1[%c0_172, %c14_173, %c0_174, %c0_175] : memref<1x30x30x4xf32, #tpu.memory_space<vmem>>, vector<1x16x16x4xf32>
    %187 = vector.shape_cast %186 : vector<1x16x16x4xf32> to vector<16x16x4xf32>
    %188 = vector.shape_cast %187 : vector<16x16x4xf32> to vector<256x4xf32>
    %189 = arith.truncf %188 : vector<256x4xf32> to vector<256x4xbf16>
    %c22 = arith.constant 22 : index
    %c0_176 = arith.constant 0 : index
    %c0_177 = arith.constant 0 : index
    %190 = vector.load %arg2[%c22, %c0_176, %c0_177] : memref<25x4x32xbf16, #tpu.memory_space<vmem>>, vector<1x4x32xbf16>
    %191 = vector.shape_cast %190 : vector<1x4x32xbf16> to vector<4x32xbf16>
    %cst_178 = arith.constant dense<0.000000e+00> : vector<256x32xf32>
    %192 = tpu.matmul %189, %191, %cst_178 {dimension_numbers = #tpu.dot_dimension_numbers<[1], [0], [0], [1], [0, 0, 1, 1], [], []>} : vector<256x4xbf16>, vector<4x32xbf16>, vector<256x32xf32> -> vector<256x32xf32>
    %193 = arith.addf %185, %192 : vector<256x32xf32>
    %c0_179 = arith.constant 0 : index
    %c14_180 = arith.constant 14 : index
    %c7_181 = arith.constant 7 : index
    %c0_182 = arith.constant 0 : index
    %194 = vector.load %arg1[%c0_179, %c14_180, %c7_181, %c0_182] : memref<1x30x30x4xf32, #tpu.memory_space<vmem>>, vector<1x16x16x4xf32>
    %195 = vector.shape_cast %194 : vector<1x16x16x4xf32> to vector<16x16x4xf32>
    %196 = vector.shape_cast %195 : vector<16x16x4xf32> to vector<256x4xf32>
    %197 = arith.truncf %196 : vector<256x4xf32> to vector<256x4xbf16>
    %c23 = arith.constant 23 : index
    %c0_183 = arith.constant 0 : index
    %c0_184 = arith.constant 0 : index
    %198 = vector.load %arg2[%c23, %c0_183, %c0_184] : memref<25x4x32xbf16, #tpu.memory_space<vmem>>, vector<1x4x32xbf16>
    %199 = vector.shape_cast %198 : vector<1x4x32xbf16> to vector<4x32xbf16>
    %cst_185 = arith.constant dense<0.000000e+00> : vector<256x32xf32>
    %200 = tpu.matmul %197, %199, %cst_185 {dimension_numbers = #tpu.dot_dimension_numbers<[1], [0], [0], [1], [0, 0, 1, 1], [], []>} : vector<256x4xbf16>, vector<4x32xbf16>, vector<256x32xf32> -> vector<256x32xf32>
    %201 = arith.addf %193, %200 : vector<256x32xf32>
    %c0_186 = arith.constant 0 : index
    %c14_187 = arith.constant 14 : index
    %c14_188 = arith.constant 14 : index
    %c0_189 = arith.constant 0 : index
    %202 = vector.load %arg1[%c0_186, %c14_187, %c14_188, %c0_189] : memref<1x30x30x4xf32, #tpu.memory_space<vmem>>, vector<1x16x16x4xf32>
    %203 = vector.shape_cast %202 : vector<1x16x16x4xf32> to vector<16x16x4xf32>
    %204 = vector.shape_cast %203 : vector<16x16x4xf32> to vector<256x4xf32>
    %205 = arith.truncf %204 : vector<256x4xf32> to vector<256x4xbf16>
    %c24 = arith.constant 24 : index
    %c0_190 = arith.constant 0 : index
    %c0_191 = arith.constant 0 : index
    %206 = vector.load %arg2[%c24, %c0_190, %c0_191] : memref<25x4x32xbf16, #tpu.memory_space<vmem>>, vector<1x4x32xbf16>
    %207 = vector.shape_cast %206 : vector<1x4x32xbf16> to vector<4x32xbf16>
    %cst_192 = arith.constant dense<0.000000e+00> : vector<256x32xf32>
    %208 = tpu.matmul %205, %207, %cst_192 {dimension_numbers = #tpu.dot_dimension_numbers<[1], [0], [0], [1], [0, 0, 1, 1], [], []>} : vector<256x4xbf16>, vector<4x32xbf16>, vector<256x32xf32> -> vector<256x32xf32>
    %209 = arith.addf %201, %208 : vector<256x32xf32>
    %c0_193 = arith.constant 0 : index
    %c0_194 = arith.constant 0 : index
    %210 = vector.load %arg3[%c0_193, %c0_194] : memref<1x32xf32, #tpu.memory_space<vmem>>, vector<1x32xf32>
    %211 = vector.broadcast %210 : vector<1x32xf32> to vector<256x32xf32>
    %212 = arith.addf %209, %211 : vector<256x32xf32>
    %213 = vector.shape_cast %212 : vector<256x32xf32> to vector<16x16x32xf32>
    %c1_195 = arith.constant 1 : index
    %c1_196 = arith.constant 1 : index
    %c0_197 = arith.constant 0 : index
    %214 = vector.load %arg9[%c1_195, %c1_196, %c0_197] : memref<18x18x32xf32, #tpu.memory_space<vmem>>, vector<16x16x32xf32>
    tpu.vector_store %arg9[%c1_195, %c1_196, %c0_197], %213 {strides = array<i32>} : memref<18x18x32xf32, #tpu.memory_space<vmem>>, vector<16x16x32xf32>,
    %c0_198 = arith.constant 0 : index
    %c0_199 = arith.constant 0 : index
    %c0_200 = arith.constant 0 : index
    %215 = vector.load %arg9[%c0_198, %c0_199, %c0_200] : memref<18x18x32xf32, #tpu.memory_space<vmem>>, vector<16x16x32xf32>
    %216 = vector.shape_cast %215 : vector<16x16x32xf32> to vector<256x32xf32>
    %217 = arith.truncf %216 : vector<256x32xf32> to vector<256x32xbf16>
    %c0_201 = arith.constant 0 : index
    %c0_202 = arith.constant 0 : index
    %c0_203 = arith.constant 0 : index
    %218 = vector.load %arg6[%c0_201, %c0_202, %c0_203] : memref<9x32x8xbf16, #tpu.memory_space<vmem>>, vector<1x32x8xbf16>
    %219 = vector.shape_cast %218 : vector<1x32x8xbf16> to vector<32x8xbf16>
    %cst_204 = arith.constant dense<0.000000e+00> : vector<256x8xf32>
    %220 = tpu.matmul %217, %219, %cst_204 {dimension_numbers = #tpu.dot_dimension_numbers<[1], [0], [0], [1], [0, 0, 1, 1], [], []>} : vector<256x32xbf16>, vector<32x8xbf16>, vector<256x8xf32> -> vector<256x8xf32>
    %c0_205 = arith.constant 0 : index
    %c1_206 = arith.constant 1 : index
    %c0_207 = arith.constant 0 : index
    %221 = vector.load %arg9[%c0_205, %c1_206, %c0_207] : memref<18x18x32xf32, #tpu.memory_space<vmem>>, vector<16x16x32xf32>
    %222 = vector.shape_cast %221 : vector<16x16x32xf32> to vector<256x32xf32>
    %223 = arith.truncf %222 : vector<256x32xf32> to vector<256x32xbf16>
    %c1_208 = arith.constant 1 : index
    %c0_209 = arith.constant 0 : index
    %c0_210 = arith.constant 0 : index
    %224 = vector.load %arg6[%c1_208, %c0_209, %c0_210] : memref<9x32x8xbf16, #tpu.memory_space<vmem>>, vector<1x32x8xbf16>
    %225 = vector.shape_cast %224 : vector<1x32x8xbf16> to vector<32x8xbf16>
    %cst_211 = arith.constant dense<0.000000e+00> : vector<256x8xf32>
    %226 = tpu.matmul %223, %225, %cst_211 {dimension_numbers = #tpu.dot_dimension_numbers<[1], [0], [0], [1], [0, 0, 1, 1], [], []>} : vector<256x32xbf16>, vector<32x8xbf16>, vector<256x8xf32> -> vector<256x8xf32>
    %227 = arith.addf %220, %226 : vector<256x8xf32>
    %c0_212 = arith.constant 0 : index
    %c2_213 = arith.constant 2 : index
    %c0_214 = arith.constant 0 : index
    %228 = vector.load %arg9[%c0_212, %c2_213, %c0_214] : memref<18x18x32xf32, #tpu.memory_space<vmem>>, vector<16x16x32xf32>
    %229 = vector.shape_cast %228 : vector<16x16x32xf32> to vector<256x32xf32>
    %230 = arith.truncf %229 : vector<256x32xf32> to vector<256x32xbf16>
    %c2_215 = arith.constant 2 : index
    %c0_216 = arith.constant 0 : index
    %c0_217 = arith.constant 0 : index
    %231 = vector.load %arg6[%c2_215, %c0_216, %c0_217] : memref<9x32x8xbf16, #tpu.memory_space<vmem>>, vector<1x32x8xbf16>
    %232 = vector.shape_cast %231 : vector<1x32x8xbf16> to vector<32x8xbf16>
    %cst_218 = arith.constant dense<0.000000e+00> : vector<256x8xf32>
    %233 = tpu.matmul %230, %232, %cst_218 {dimension_numbers = #tpu.dot_dimension_numbers<[1], [0], [0], [1], [0, 0, 1, 1], [], []>} : vector<256x32xbf16>, vector<32x8xbf16>, vector<256x8xf32> -> vector<256x8xf32>
    %234 = arith.addf %227, %233 : vector<256x8xf32>
    %c1_219 = arith.constant 1 : index
    %c0_220 = arith.constant 0 : index
    %c0_221 = arith.constant 0 : index
    %235 = vector.load %arg9[%c1_219, %c0_220, %c0_221] : memref<18x18x32xf32, #tpu.memory_space<vmem>>, vector<16x16x32xf32>
    %236 = vector.shape_cast %235 : vector<16x16x32xf32> to vector<256x32xf32>
    %237 = arith.truncf %236 : vector<256x32xf32> to vector<256x32xbf16>
    %c3_222 = arith.constant 3 : index
    %c0_223 = arith.constant 0 : index
    %c0_224 = arith.constant 0 : index
    %238 = vector.load %arg6[%c3_222, %c0_223, %c0_224] : memref<9x32x8xbf16, #tpu.memory_space<vmem>>, vector<1x32x8xbf16>
    %239 = vector.shape_cast %238 : vector<1x32x8xbf16> to vector<32x8xbf16>
    %cst_225 = arith.constant dense<0.000000e+00> : vector<256x8xf32>
    %240 = tpu.matmul %237, %239, %cst_225 {dimension_numbers = #tpu.dot_dimension_numbers<[1], [0], [0], [1], [0, 0, 1, 1], [], []>} : vector<256x32xbf16>, vector<32x8xbf16>, vector<256x8xf32> -> vector<256x8xf32>
    %241 = arith.addf %234, %240 : vector<256x8xf32>
    %c1_226 = arith.constant 1 : index
    %c1_227 = arith.constant 1 : index
    %c0_228 = arith.constant 0 : index
    %242 = vector.load %arg9[%c1_226, %c1_227, %c0_228] : memref<18x18x32xf32, #tpu.memory_space<vmem>>, vector<16x16x32xf32>
    %243 = vector.shape_cast %242 : vector<16x16x32xf32> to vector<256x32xf32>
    %244 = arith.truncf %243 : vector<256x32xf32> to vector<256x32xbf16>
    %c4_229 = arith.constant 4 : index
    %c0_230 = arith.constant 0 : index
    %c0_231 = arith.constant 0 : index
    %245 = vector.load %arg6[%c4_229, %c0_230, %c0_231] : memref<9x32x8xbf16, #tpu.memory_space<vmem>>, vector<1x32x8xbf16>
    %246 = vector.shape_cast %245 : vector<1x32x8xbf16> to vector<32x8xbf16>
    %cst_232 = arith.constant dense<0.000000e+00> : vector<256x8xf32>
    %247 = tpu.matmul %244, %246, %cst_232 {dimension_numbers = #tpu.dot_dimension_numbers<[1], [0], [0], [1], [0, 0, 1, 1], [], []>} : vector<256x32xbf16>, vector<32x8xbf16>, vector<256x8xf32> -> vector<256x8xf32>
    %248 = arith.addf %241, %247 : vector<256x8xf32>
    %c1_233 = arith.constant 1 : index
    %c2_234 = arith.constant 2 : index
    %c0_235 = arith.constant 0 : index
    %249 = vector.load %arg9[%c1_233, %c2_234, %c0_235] : memref<18x18x32xf32, #tpu.memory_space<vmem>>, vector<16x16x32xf32>
    %250 = vector.shape_cast %249 : vector<16x16x32xf32> to vector<256x32xf32>
    %251 = arith.truncf %250 : vector<256x32xf32> to vector<256x32xbf16>
    %c5_236 = arith.constant 5 : index
    %c0_237 = arith.constant 0 : index
    %c0_238 = arith.constant 0 : index
    %252 = vector.load %arg6[%c5_236, %c0_237, %c0_238] : memref<9x32x8xbf16, #tpu.memory_space<vmem>>, vector<1x32x8xbf16>
    %253 = vector.shape_cast %252 : vector<1x32x8xbf16> to vector<32x8xbf16>
    %cst_239 = arith.constant dense<0.000000e+00> : vector<256x8xf32>
    %254 = tpu.matmul %251, %253, %cst_239 {dimension_numbers = #tpu.dot_dimension_numbers<[1], [0], [0], [1], [0, 0, 1, 1], [], []>} : vector<256x32xbf16>, vector<32x8xbf16>, vector<256x8xf32> -> vector<256x8xf32>
    %255 = arith.addf %248, %254 : vector<256x8xf32>
    %c2_240 = arith.constant 2 : index
    %c0_241 = arith.constant 0 : index
    %c0_242 = arith.constant 0 : index
    %256 = vector.load %arg9[%c2_240, %c0_241, %c0_242] : memref<18x18x32xf32, #tpu.memory_space<vmem>>, vector<16x16x32xf32>
    %257 = vector.shape_cast %256 : vector<16x16x32xf32> to vector<256x32xf32>
    %258 = arith.truncf %257 : vector<256x32xf32> to vector<256x32xbf16>
    %c6_243 = arith.constant 6 : index
    %c0_244 = arith.constant 0 : index
    %c0_245 = arith.constant 0 : index
    %259 = vector.load %arg6[%c6_243, %c0_244, %c0_245] : memref<9x32x8xbf16, #tpu.memory_space<vmem>>, vector<1x32x8xbf16>
    %260 = vector.shape_cast %259 : vector<1x32x8xbf16> to vector<32x8xbf16>
    %cst_246 = arith.constant dense<0.000000e+00> : vector<256x8xf32>
    %261 = tpu.matmul %258, %260, %cst_246 {dimension_numbers = #tpu.dot_dimension_numbers<[1], [0], [0], [1], [0, 0, 1, 1], [], []>} : vector<256x32xbf16>, vector<32x8xbf16>, vector<256x8xf32> -> vector<256x8xf32>
    %262 = arith.addf %255, %261 : vector<256x8xf32>
    %c2_247 = arith.constant 2 : index
    %c1_248 = arith.constant 1 : index
    %c0_249 = arith.constant 0 : index
    %263 = vector.load %arg9[%c2_247, %c1_248, %c0_249] : memref<18x18x32xf32, #tpu.memory_space<vmem>>, vector<16x16x32xf32>
    %264 = vector.shape_cast %263 : vector<16x16x32xf32> to vector<256x32xf32>
    %265 = arith.truncf %264 : vector<256x32xf32> to vector<256x32xbf16>
    %c7_250 = arith.constant 7 : index
    %c0_251 = arith.constant 0 : index
    %c0_252 = arith.constant 0 : index
    %266 = vector.load %arg6[%c7_250, %c0_251, %c0_252] : memref<9x32x8xbf16, #tpu.memory_space<vmem>>, vector<1x32x8xbf16>
    %267 = vector.shape_cast %266 : vector<1x32x8xbf16> to vector<32x8xbf16>
    %cst_253 = arith.constant dense<0.000000e+00> : vector<256x8xf32>
    %268 = tpu.matmul %265, %267, %cst_253 {dimension_numbers = #tpu.dot_dimension_numbers<[1], [0], [0], [1], [0, 0, 1, 1], [], []>} : vector<256x32xbf16>, vector<32x8xbf16>, vector<256x8xf32> -> vector<256x8xf32>
    %269 = arith.addf %262, %268 : vector<256x8xf32>
    %c2_254 = arith.constant 2 : index
    %c2_255 = arith.constant 2 : index
    %c0_256 = arith.constant 0 : index
    %270 = vector.load %arg9[%c2_254, %c2_255, %c0_256] : memref<18x18x32xf32, #tpu.memory_space<vmem>>, vector<16x16x32xf32>
    %271 = vector.shape_cast %270 : vector<16x16x32xf32> to vector<256x32xf32>
    %272 = arith.truncf %271 : vector<256x32xf32> to vector<256x32xbf16>
    %c8_257 = arith.constant 8 : index
    %c0_258 = arith.constant 0 : index
    %c0_259 = arith.constant 0 : index
    %273 = vector.load %arg6[%c8_257, %c0_258, %c0_259] : memref<9x32x8xbf16, #tpu.memory_space<vmem>>, vector<1x32x8xbf16>
    %274 = vector.shape_cast %273 : vector<1x32x8xbf16> to vector<32x8xbf16>
    %cst_260 = arith.constant dense<0.000000e+00> : vector<256x8xf32>
    %275 = tpu.matmul %272, %274, %cst_260 {dimension_numbers = #tpu.dot_dimension_numbers<[1], [0], [0], [1], [0, 0, 1, 1], [], []>} : vector<256x32xbf16>, vector<32x8xbf16>, vector<256x8xf32> -> vector<256x8xf32>
    %276 = arith.addf %269, %275 : vector<256x8xf32>
    %c0_261 = arith.constant 0 : index
    %c0_262 = arith.constant 0 : index
    %277 = vector.load %arg7[%c0_261, %c0_262] : memref<1x8xf32, #tpu.memory_space<vmem>>, vector<1x8xf32>
    %278 = vector.broadcast %277 : vector<1x8xf32> to vector<256x8xf32>
    %279 = arith.addf %276, %278 : vector<256x8xf32>
    %cst_263 = arith.constant 0.000000e+00 : f32
    %280 = vector.broadcast %cst_263 : f32 to vector<256x8xf32>
    %281 = arith.maximumf %279, %280 : vector<256x8xf32>
    %282 = arith.addf %281, %14 : vector<256x8xf32>
    %283 = vector.shape_cast %282 : vector<256x8xf32> to vector<16x16x8xf32>
    %c0_264 = arith.constant 0 : index
    %c0_265 = arith.constant 0 : index
    %c0_266 = arith.constant 0 : index
    %c0_267 = arith.constant 0 : index
    %284 = vector.load %arg8[%c0_264, %c0_265, %c0_266, %c0_267] : memref<1x16x16x8xf32, #tpu.memory_space<vmem>>, vector<1x16x16x8xf32>
    %285 = vector.shape_cast %284 : vector<1x16x16x8xf32> to vector<16x16x8xf32>
    %286 = vector.shape_cast %283 : vector<16x16x8xf32> to vector<1x16x16x8xf32>
    tpu.vector_store %arg8[%c0_264, %c0_265, %c0_266, %c0_267], %286 {strides = array<i32>} : memref<1x16x16x8xf32, #tpu.memory_space<vmem>>, vector<1x16x16x8xf32>,
    return
  }
  func.func @transform_0(%arg0: i32) -> (i32, i32, i32, i32) {
    %c0_i32 = arith.constant 0 : i32
    %c0_i32_0 = arith.constant 0 : i32
    %c0_i32_1 = arith.constant 0 : i32
    %c0_i32_2 = arith.constant 0 : i32
    return %arg0, %c0_i32, %c0_i32_0, %c0_i32_1 : i32, i32, i32, i32
  }
  func.func @transform_1(%arg0: i32) -> (i32, i32, i32) {
    %c0_i32 = arith.constant 0 : i32
    %c0_i32_0 = arith.constant 0 : i32
    %c0_i32_1 = arith.constant 0 : i32
    %c0_i32_2 = arith.constant 0 : i32
    return %c0_i32, %c0_i32_0, %c0_i32_1 : i32, i32, i32
  }
  func.func @transform_2(%arg0: i32) -> (i32, i32) {
    %c0_i32 = arith.constant 0 : i32
    %c0_i32_0 = arith.constant 0 : i32
    %c0_i32_1 = arith.constant 0 : i32
    return %c0_i32, %c0_i32_0 : i32, i32
  }
  func.func @transform_3(%arg0: i32) -> (i32, i32) {
    %c0_i32 = arith.constant 0 : i32
    %c0_i32_0 = arith.constant 0 : i32
    %c0_i32_1 = arith.constant 0 : i32
    return %c0_i32, %c0_i32_0 : i32, i32
  }
  func.func @transform_4(%arg0: i32) -> (i32, i32) {
    %c0_i32 = arith.constant 0 : i32
    %c0_i32_0 = arith.constant 0 : i32
    %c0_i32_1 = arith.constant 0 : i32
    return %c0_i32, %c0_i32_0 : i32, i32
  }
  func.func @transform_5(%arg0: i32) -> (i32, i32, i32) {
    %c0_i32 = arith.constant 0 : i32
    %c0_i32_0 = arith.constant 0 : i32
    %c0_i32_1 = arith.constant 0 : i32
    %c0_i32_2 = arith.constant 0 : i32
    return %c0_i32, %c0_i32_0, %c0_i32_1 : i32, i32, i32
  }
  func.func @transform_6(%arg0: i32) -> (i32, i32) {
    %c0_i32 = arith.constant 0 : i32
    %c0_i32_0 = arith.constant 0 : i32
    %c0_i32_1 = arith.constant 0 : i32
    return %c0_i32, %c0_i32_0 : i32, i32
  }
  func.func @transform_7(%arg0: i32) -> (i32, i32, i32, i32) {
    %c0_i32 = arith.constant 0 : i32
    %c0_i32_0 = arith.constant 0 : i32
    %c0_i32_1 = arith.constant 0 : i32
    %c0_i32_2 = arith.constant 0 : i32
    return %arg0, %c0_i32, %c0_i32_0, %c0_i32_1 : i32, i32, i32, i32
  }
}

</mosaic_0001>

<bundles_post_ra>
// kernel: simple_context_forward.1
= control target key start
LH: loop header
LB: loop body
LE: loop exit
PB: predicated region body
PF: predicated region fallthrough
CT: control target
= control target key end

     0   :  { %s15039_s24 = smov 0   ;;  %s17706_s0 = inlined_call_operand.vmem [shape: f32[2,30,30,4], index: 0, kind: input, shape index: {}]   ;;  %s17707_s1 = inlined_call_operand.vmem [shape: bf16[25,4,32], index: 1, kind: input, shape index: {}]   ;;  %s17708_s2 = inlined_call_operand.vmem [shape: f32[1,32], index: 2, kind: input, shape index: {}]   ;;  %s17709_s3 = inlined_call_operand.vmem [shape: bf16[4,8], index: 3, kind: input, shape index: {}]   ;;  %s17710_s4 = inlined_call_operand.vmem [shape: f32[1,8], index: 4, kind: input, shape index: {}]   ;;  %s17711_s5 = inlined_call_operand.vmem [shape: bf16[9,32,8], index: 5, kind: input, shape index: {}]   ;;  %s17712_s6 = inlined_call_operand.vmem [shape: f32[1,8], index: 6, kind: input, shape index: {}]   ;;  %s17713_s7 = inlined_call_operand.vmem [shape: f32[2,16,16,8], index: 7, kind: output, shape index: {}]  }
   0x1 LB: > { %s10744_s25 = sadd.s32 4294967295, %s14996_s24   ;;  %p10748_p0 = scmp.ge.s32.totalorder %s14996_s24, 1  ;;  %s14996_s24 = sphi %s15039_s24, %s17_s24  }
   0x2   : > { %p237_p1 = scmp.lt.s32.totalorder %s14996_s24, 3 }
   0x4   : > { %p238_p2 = pnand %p10748_p0, %p237_p1 }
   0x6   : > { %241 = sbr.rel (%p238_p2) target bundleno = 2098 (0x832), region = 48 }
   0xd   : > { %vm432_vm0 = vcmask 1041408   ;;  %v11143_v0 = vld [vmem:[%s17707_s1 + $0xe] sm:$0x3]  ;;  %p269_p3 = scmp.lt.s32.totalorder %s10744_s25, 1  ;;  %v11192_v2 = vld [vmem:[%s17707_s1 + $0x10] sm:$0x3] }
   0xe   : > { %14943 = vmatprep.subr.msk.bf16.mxu1 %vm432_vm0, %v11143_v0  ;;  %v15052_v1 = vsel %vm432_vm0, %v11143_v0, 0  ;;  %v375_v3 = vld [vmem:[%s17709_s3] sm:$0x3]  ;;  %vm383_vm1 = vcmask 31744   ;;  %v2889_v13 = vsel %vm432_vm0, %v11192_v2, 0  ;;  %vm280_vm2 = vcmask 261120  }
   0xf   : > { %17730 = vst [vmem:[#allocation3_spill] sm:$0xff] %v15052_v1  ;;  %13909 = vmatpush3.bf16.msra.mxu1 %v15052_v1  ;;  %s17815_s25 = smov (!%p269_p3, %s10744_s25), 1  ;;  %14934 = vmatprep.subr.msk.bf16.mxu0 %vm432_vm0, %v375_v3  ;;  %v434_v4 = vsel %vm432_vm0, %v375_v3, 0  ;;  %v15090_v15 = vld [vmem:[%s17707_s1 + $0x12] sm:$0x3]  ;;  %vm289_vm3 = vcmask 253952  }
  0x10   : > { %14944 = vmatprep.subr.msk.bf16.mxu1 %vm432_vm0, %v11192_v2  ;;  %s14961_s9 = smul.u32 960, %s17815_s25  ;;  %12701 = vmatpush3.bf16.msra.mxu0 %v434_v4  ;;  %v10833_v57 = vld [vmem:[%s17707_s1 + $0x2] sm:$0x3]  ;;  %v3184_v62 = vsel %vm432_vm0, %v15090_v15, 0  ;;  %v15181_v63 = vld [vmem:[%s17707_s1 + $0x14] sm:$0x3] }
  0x11   : > { %14935 = vmatprep.subr.msk.bf16.mxu0 %vm432_vm0, %v10833_v57  ;;  %v698_v60 = vsel %vm432_vm0, %v10833_v57, 0  ;;  %vm283_vm4 = vcmask 254976   ;;  %s12095_s21 = sshll.u32 %s17815_s25, 8  ;;  %vm10656_vm5 = vcmask 64512  }
  0x12   : > { %s15070_s12 = scalar_lea.vmem %s17706_s0, %s14961_s9  ;;  %s17548_s25 = scalar_lea.vmem %s17713_s7, %s12095_s21 }
  0x13   : > { %v11127_v5 = vld [vmem:[%s15070_s12 + $0x247] sm:$0xff]  ;;  %v11128_v6 = vld [vmem:[%s15070_s12 + $0x24f] sm:$0xff] }
  0x14   : > { %v11129_v7 = vld [vmem:[%s15070_s12 + $0x267] sm:$0xff]  ;;  %v15075_v8 = vpack.c.bf16 %v11128_v6, %v11127_v5  ;;  %v11130_v9 = vld [vmem:[%s15070_s12 + $0x26f] sm:$0xff] }
  0x15   : > { %v11131_v10 = vld [vmem:[%s15070_s12 + $0x287] sm:$0xff]  ;;  %v11132_v11 = vld [vmem:[%s15070_s12 + $0x28f] sm:$0xff]  ;;  %v15080_v12 = vpack.c.bf16 %v11130_v9, %v11129_v7 }
  0x16   : > { %v15083_v14 = vpack.c.bf16 %v11132_v11, %v11131_v10  ;;  %12990 = vmatprep.mubr.msk.bf16.mxu1 %vm383_vm1, %v15075_v8  ;;  %v11133_v16 = vld [vmem:[%s15070_s12 + $0x2a7] sm:$0xff]  ;;  %v11134_v17 = vld [vmem:[%s15070_s12 + $0x2af] sm:$0xff] }
  0x17   : > { %12991 = vmatmul.mubr.msk.bf16.vlgmr.msra.gmra.mrb[0].mxu1 %vm383_vm1, %v15080_v12  ;;  %v11135_v18 = vld [vmem:[%s15070_s12 + $0x2c7] sm:$0xff]  ;;  %v11136_v19 = vld [vmem:[%s15070_s12 + $0x2cf] sm:$0xff]  ;;  %v15102_v20 = vpack.c.bf16 %v11134_v17, %v11133_v16 }
  0x18   : > { %13007 = vmatpush3.bf16.msra.mxu1 %v2889_v13  ;;  %12994 = vmatprep.mubr.msk.bf16.mxu1 %vm383_vm1, %v15083_v14  ;;  %v15104_v21 = vpack.c.bf16 %v11136_v19, %v11135_v18  ;;  %v11137_v22 = vld [vmem:[%s15070_s12 + $0x2e7] sm:$0xff]  ;;  %v11138_v23 = vld [vmem:[%s15070_s12 + $0x2ef] sm:$0xff] }
  0x19   : > { %14945 = vmatprep.subr.msk.bf16.mxu1 %vm432_vm0, %v15090_v15  ;;  %v11139_v24 = vld [vmem:[%s15070_s12 + $0x307] sm:$0xff]  ;;  %v11140_v25 = vld [vmem:[%s15070_s12 + $0x30f] sm:$0xff]  ;;  %v2541_v26 = vpack.c.bf16 %v11138_v23, %v11137_v22 }
  0x1a   : > { %v10752_v27 = vld [vmem:[%s15070_s12 + $0xe7] sm:$0xff]  ;;  %v10753_v28 = vld [vmem:[%s15070_s12 + $0xef] sm:$0xff]  ;;  %v2542_v30 = vpack.c.bf16 %v11140_v25, %v11139_v24 }
  0x1b   : > { %v10754_v29 = vld [vmem:[%s15070_s12 + $0x107] sm:$0xff]  ;;  %v15117_v31 = vpack.c.bf16 %v10753_v28, %v10752_v27  ;;  %v10755_v32 = vld [vmem:[%s15070_s12 + $0x10f] sm:$0xff] }
  0x1c   : > { %v15120_v33 = vpack.c.bf16 %v10755_v32, %v10754_v29  ;;  %v10756_v34 = vld [vmem:[%s15070_s12 + $0x127] sm:$0xff]  ;;  %v10757_v35 = vld [vmem:[%s15070_s12 + $0x12f] sm:$0xff] }
  0x1d   : > { %12702 = vmatprep.mubr.msk.bf16.mxu0 %vm383_vm1, %v15117_v31  ;;  %v11141_v36 = vld [vmem:[%s15070_s12 + $0x327] sm:$0xff]  ;;  %v11142_v37 = vld [vmem:[%s15070_s12 + $0x32f] sm:$0xff]  ;;  %v15131_v38 = vpack.c.bf16 %v10757_v35, %v10756_v34 }
  0x1e   : > { %12703 = vmatmul.mubr.msk.bf16.vlgmr.msra.gmra.mrb[0].mxu0 %vm383_vm1, %v15120_v33  ;;  %v15135_v39 = vld [vmem:[%s15070_s12 + $0x14a] sm:$0xff]  ;;  %v11161_v42 = vld [vmem:[%s15070_s12 + $0x152] sm:$0xff]  ;;  %v2543_v45 = vpack.c.bf16 %v11142_v37, %v11141_v36 }
  0x1f   : > { %12995 = vmatmul.mubr.msk.bf16.gmra.mrb[4].mxu1 %vm383_vm1, %v15102_v20  ;;  %v10758_v40 = vld [vmem:[%s15070_s12 + $0x147] sm:$0xff]  ;;  %v10759_v41 = vld [vmem:[%s15070_s12 + $0x14f] sm:$0xff]  ;;  %12706 = vmatprep.mubr.msk.bf16.mxu0 %vm383_vm1, %v15131_v38  ;;  %v2822_v47 = vpack.c.bf16 %v11161_v42, %v15135_v39 }
  0x20   : > { %12998 = vmatprep.mubr.msk.bf16.mxu1 %vm383_vm1, %v15104_v21  ;;  %v10760_v43 = vld [vmem:[%s15070_s12 + $0x167] sm:$0xff]  ;;  %v10761_v44 = vld [vmem:[%s15070_s12 + $0x16f] sm:$0xff]  ;;  %v15144_v46 = vpack.c.bf16 %v10759_v41, %v10758_v40  ;;  %12735 = vmatpush3.bf16.msra.mxu0 %v698_v60 }
  0x21   : > { %v15147_v48 = vpack.c.bf16 %v10761_v44, %v10760_v43  ;;  %v15151_v49 = vld [vmem:[%s15070_s12 + $0x16a] sm:$0xff]  ;;  %v11163_v50 = vld [vmem:[%s15070_s12 + $0x172] sm:$0xff] }
  0x22   : > { %v10762_v51 = vld [vmem:[%s15070_s12 + $0x187] sm:$0xff]  ;;  %v10763_v52 = vld [vmem:[%s15070_s12 + $0x18f] sm:$0xff]  ;;  %v2823_v58 = vpack.c.bf16 %v11163_v50, %v15151_v49 }
  0x23   : > { %v15162_v53 = vld [vmem:[%s15070_s12 + $0x18a] sm:$0xff]  ;;  %v11165_v54 = vld [vmem:[%s15070_s12 + $0x192] sm:$0xff]  ;;  %v15171_v59 = vpack.c.bf16 %v10763_v52, %v10762_v51 }
  0x24   : > { %v10764_v55 = vld [vmem:[%s15070_s12 + $0x1a7] sm:$0xff]  ;;  %v10765_v56 = vld [vmem:[%s15070_s12 + $0x1af] sm:$0xff]  ;;  %v2824_v61 = vpack.c.bf16 %v11165_v54, %v15162_v53 }
  0x25   : > { %v15183_v0 = vpack.c.bf16 %v10765_v56, %v10764_v55  ;;  %v15186_v2 = vld [vmem:[%s15070_s12 + $0x1aa] sm:$0xff]  ;;  %v11167_v3 = vld [vmem:[%s15070_s12 + $0x1b2] sm:$0xff] }
  0x26   : > { %12707 = vmatmul.mubr.msk.bf16.gmra.mrb[4].mxu0 %vm383_vm1, %v15144_v46  ;;  %v15194_v4 = vld [vmem:[%s15070_s12 + $0x1ca] sm:$0xff]  ;;  %v11169_v7 = vld [vmem:[%s15070_s12 + $0x1d2] sm:$0xff]  ;;  %v2825_v11 = vpack.c.bf16 %v11167_v3, %v15186_v2 }
  0x27   : > { %12999 = vmatmul.mubr.msk.bf16.gmra.mrb[8].mxu1 %vm383_vm1, %v2541_v26  ;;  %12710 = vmatprep.mubr.msk.bf16.mxu0 %vm383_vm1, %v15147_v48  ;;  %v10766_v5 = vld [vmem:[%s15070_s12 + $0x1c7] sm:$0xff]  ;;  %v10767_v6 = vld [vmem:[%s15070_s12 + $0x1cf] sm:$0xff]  ;;  %v2826_v15 = vpack.c.bf16 %v11169_v7, %v15194_v4 }
  0x28   : > { %13002 = vmatprep.mubr.msk.bf16.mxu1 %vm383_vm1, %v2542_v30  ;;  %v10768_v9 = vld [vmem:[%s15070_s12 + $0x1e7] sm:$0xff]  ;;  %v10769_v10 = vld [vmem:[%s15070_s12 + $0x1ef] sm:$0xff]  ;;  %v15206_v13 = vpack.c.bf16 %v10767_v6, %v10766_v5 }
  0x29   : > { %v15209_v16 = vpack.c.bf16 %v10769_v10, %v10768_v9  ;;  %v15212_v17 = vld [vmem:[%s15070_s12 + $0x1ea] sm:$0xff]  ;;  %v11171_v18 = vld [vmem:[%s15070_s12 + $0x1f2] sm:$0xff] }
  0x2a   : > { %v15217_v19 = vld [vmem:[%s15070_s12 + $0x20a] sm:$0xff]  ;;  %v11173_v22 = vld [vmem:[%s15070_s12 + $0x212] sm:$0xff]  ;;  %v2827_v27 = vpack.c.bf16 %v11171_v18, %v15212_v17 }
  0x2b   : > { %v10770_v23 = vld [vmem:[%s15070_s12 + $0x207] sm:$0xff]  ;;  %v10771_v24 = vld [vmem:[%s15070_s12 + $0x20f] sm:$0xff]  ;;  %v2828_v29 = vpack.c.bf16 %v11173_v22, %v15217_v19 }
  0x2c   : > { %v10772_v25 = vld [vmem:[%s15070_s12 + $0x227] sm:$0xff]  ;;  %v10773_v26 = vld [vmem:[%s15070_s12 + $0x22f] sm:$0xff]  ;;  %v15230_v28 = vpack.c.bf16 %v10771_v24, %v10770_v23 }
  0x2d   : > { %v15233_v30 = vpack.c.bf16 %v10773_v26, %v10772_v25  ;;  %v15240_v32 = vld [vmem:[%s15070_s12 + $0x22a] sm:$0xff]  ;;  %v11175_v34 = vld [vmem:[%s15070_s12 + $0x232] sm:$0xff]  ;;  %v11209_v25 = vld [vmem:[%s15070_s12 + $0x42] sm:$0xff] }
  0x2e   : > { %12711 = vmatmul.mubr.msk.bf16.gmra.mrb[8].mxu0 %vm383_vm1, %v15171_v59  ;;  %v15246_v35 = vld [vmem:[%s15070_s12 + $0x24a] sm:$0xff]  ;;  %v11177_v36 = vld [vmem:[%s15070_s12 + $0x252] sm:$0xff]  ;;  %v2829_v37 = vpack.c.bf16 %v11175_v34, %v15240_v32 }
  0x2f   : > { %13003 = vmatmul.mubr.msk.bf16.gmra.mrb[12].mxu1 %vm383_vm1, %v2543_v45  ;;  %12714 = vmatprep.mubr.msk.bf16.mxu0 %vm383_vm1, %v15183_v0  ;;  %v2830_v40 = vpack.c.bf16 %v11177_v36, %v15246_v35  ;;  %v15256_v41 = vld [vmem:[%s15070_s12 + $0x26a] sm:$0xff]  ;;  %v11179_v42 = vld [vmem:[%s15070_s12 + $0x272] sm:$0xff] }
  0x30   : > { %13008 = vmatprep.mubr.msk.bf16.mxu1 %vm383_vm1, %v2822_v47  ;;  %v15262_v43 = vld [vmem:[%s15070_s12 + $0x28a] sm:$0xff]  ;;  %v11181_v44 = vld [vmem:[%s15070_s12 + $0x292] sm:$0xff]  ;;  %v2831_v45 = vpack.c.bf16 %v11179_v42, %v15256_v41 }
  0x31   : > { %v2832_v47 = vpack.c.bf16 %v11181_v44, %v15262_v43  ;;  %v15272_v50 = vld [vmem:[%s15070_s12 + $0x2aa] sm:$0xff]  ;;  %v11183_v51 = vld [vmem:[%s15070_s12 + $0x2b2] sm:$0xff] }
  0x32   : > { %v15276_v52 = vld [vmem:[%s15070_s12 + $0x2ca] sm:$0xff]  ;;  %v11185_v54 = vld [vmem:[%s15070_s12 + $0x2d2] sm:$0xff]  ;;  %v2833_v57 = vpack.c.bf16 %v11183_v51, %v15272_v50 }
  0x33   : > { %17731 = vst [vmem:[#allocation4_spill] sm:$0xff] %v15276_v52  ;;  %v10801_v55 = vld [vmem:[%s15070_s12 + $0x84] sm:$0xff]  ;;  %v15283_v56 = vld [vmem:[%s15070_s12 + $0x8c] sm:$0xff] }
  0x34   : > { %v631_v60 = vpack.c.bf16 %v15283_v56, %v10801_v55  ;;  %v11188_v3 = vld [vmem:[%s15070_s12 + $0x30a] sm:$0xff]  ;;  %v11189_v7 = vld [vmem:[%s15070_s12 + $0x312] sm:$0xff] }
  0x35   : > { %v10803_v5 = vld [vmem:[%s15070_s12 + $0xa4] sm:$0xff]  ;;  %v15298_v6 = vld [vmem:[%s15070_s12 + $0xac] sm:$0xff]  ;;  %v2836_v18 = vpack.c.bf16 %v11189_v7, %v11188_v3 }
  0x36   : > { %12715 = vmatmul.mubr.msk.bf16.gmra.mrb[12].mxu0 %vm383_vm1, %v15206_v13  ;;  %v10805_v9 = vld [vmem:[%s15070_s12 + $0xc4] sm:$0xff]  ;;  %v15303_v10 = vld [vmem:[%s15070_s12 + $0xcc] sm:$0xff] }
  0x37   : > { %13009 = vmatmul.mubr.msk.bf16.vlgmr.msra.gmra.mrb[16].mxu1 %vm383_vm1, %v2823_v58  ;;  %12718 = vmatprep.mubr.msk.bf16.mxu0 %vm383_vm1, %v15209_v16  ;;  %v2834_v58 = vpack.c.bf16 %v11185_v54, %v15276_v52  ;;  %v633_v22 = vpack.c.bf16 %v15303_v10, %v10805_v9  ;;  %v11190_v23 = vld [vmem:[%s15070_s12 + $0x32a] sm:$0xff]  ;;  %v11191_v24 = vld [vmem:[%s15070_s12 + $0x332] sm:$0xff]  ;;  %v3478_v9 = vsel %vm432_vm0, %v15181_v63, 0 }
  0x38   : > { %13041 = vmatpush3.bf16.msra.mxu1 %v3184_v62  ;;  %13012 = vmatprep.mubr.msk.bf16.mxu1 %vm383_vm1, %v2824_v61  ;;  %v11186_v61 = vld [vmem:[%s15070_s12 + $0x2ea] sm:$0xff]  ;;  %v11187_v62 = vld [vmem:[%s15070_s12 + $0x2f2] sm:$0xff] }
  0x39   : > { %14946 = vmatprep.subr.msk.bf16.mxu1 %vm432_vm0, %v15181_v63  ;;  %v10807_v26 = vld [vmem:[%s15070_s12 + $0xe4] sm:$0xff]  ;;  %v15321_v36 = vld [vmem:[%s15070_s12 + $0x10c] sm:$0xff] }
  0x3a   : > { %v10809_v34 = vld [vmem:[%s15070_s12 + $0x104] sm:$0xff]  ;;  %v15342_v55 = vld [vmem:[%s15070_s12 + $0x12c] sm:$0xff] }
  0x3b   : > { %v15327_v44 = vpack.c.bf16 %v15321_v36, %v10809_v34  ;;  %v11212_v51 = vld [vmem:[%s15070_s12 + $0x6a] sm:$0xff]  ;;  %v11217_v63 = vld [vmem:[%s15070_s12 + $0xc2] sm:$0xff] }
  0x3c   : > { %v10811_v54 = vld [vmem:[%s15070_s12 + $0x124] sm:$0xff] }
  0x3d   : > { %17732 = vst [vmem:[#allocation5_spill] sm:$0xff] %v15327_v44 }
  0x3e   : > { %12719 = vmatmul.mubr.msk.bf16.gmra.mrb[16].mxu0 %vm383_vm1, %v15230_v28 }
  0x3f   : > { %13013 = vmatmul.mubr.msk.bf16.gmra.mrb[20].mxu1 %vm383_vm1, %v2825_v11  ;;  %12722 = vmatprep.mubr.msk.bf16.mxu0 %vm383_vm1, %v15233_v30  ;;  %v2835_v11 = vpack.c.bf16 %v11187_v62, %v11186_v61  ;;  %v10813_v61 = vld [vmem:[%s15070_s12 + $0x144] sm:$0xff]  ;;  %v15352_v62 = vld [vmem:[%s15070_s12 + $0x14c] sm:$0xff] }
  0x40   : > { %13016 = vmatprep.mubr.msk.bf16.mxu1 %vm383_vm1, %v2826_v15  ;;  %v632_v15 = vpack.c.bf16 %v15298_v6, %v10803_v5  ;;  %v15355_v5 = vpack.c.bf16 %v15342_v55, %v10811_v54  ;;  %v11221_v54 = vld [vmem:[%s15070_s12 + $0x102] sm:$0xff] }
  0x42   : > { %17733 = vst [vmem:[#allocation6_spill] sm:$0xff] %v15355_v5 }
  0x46   : > { %12723 = vmatmul.mubr.msk.bf16.gmra.mrb[20].mxu0 %vm383_vm1, %v15075_v8 }
  0x47   : > { %13017 = vmatmul.mubr.msk.bf16.gmra.mrb[24].mxu1 %vm383_vm1, %v2827_v27  ;;  %12726 = vmatprep.mubr.msk.bf16.mxu0 %vm383_vm1, %v15080_v12  ;;  %v15316_v27 = vld [vmem:[%s15070_s12 + $0xec] sm:$0xff] }
  0x48   : > { %13020 = vmatprep.mubr.msk.bf16.mxu1 %vm383_vm1, %v2828_v29  ;;  %v11210_v29 = vld [vmem:[%s15070_s12 + $0x4a] sm:$0xff] }
  0x49   : > { %v3117_v42 = vpack.c.bf16 %v11210_v29, %v11209_v25  ;;  %v15382_v25 = vld [vmem:[%s15070_s12 + $0xca] sm:$0xff] }
  0x4a   : > { %v15390_v29 = vld [vmem:[%s15070_s12 + $0x18c] sm:$0xff] }
  0x4e   : > { %12727 = vmatmul.mubr.msk.bf16.gmra.mrb[24].mxu0 %vm383_vm1, %v15083_v14 }
  0x4f   : > { %13021 = vmatmul.mubr.msk.bf16.gmra.mrb[28].mxu1 %vm383_vm1, %v2829_v37  ;;  %12730 = vmatprep.mubr.msk.bf16.mxu0 %vm383_vm1, %v15102_v20  ;;  %v2837_v37 = vpack.c.bf16 %v11191_v24, %v11190_v23  ;;  %v10815_v23 = vld [vmem:[%s15070_s12 + $0x164] sm:$0xff]  ;;  %v15379_v24 = vld [vmem:[%s15070_s12 + $0x16c] sm:$0xff] }
  0x50   : > { %13024 = vmatprep.mubr.msk.bf16.mxu1 %vm383_vm1, %v2830_v40  ;;  %v15324_v40 = vpack.c.bf16 %v15316_v27, %v10807_v26  ;;  %v10817_v26 = vld [vmem:[%s15070_s12 + $0x184] sm:$0xff] }
  0x56   : > { %12731 = vmatmul.mubr.msk.bf16.gmra.mrb[28].mxu0 %vm383_vm1, %v15104_v21 }
  0x57   : > { %13025 = vmatmul.mubr.msk.bf16.gmra.mrb[0].mxu1 %vm383_vm1, %v2831_v45  ;;  %12736 = vmatprep.mubr.msk.bf16.mxu0 %vm383_vm1, %v631_v60  ;;  %v11211_v45 = vld [vmem:[%s15070_s12 + $0x62] sm:$0xff]  ;;  %v15347_v60 = vld [vmem:[%s15070_s12 + $0x8a] sm:$0xff] }
  0x58   : > { %13028 = vmatprep.mubr.msk.bf16.mxu1 %vm383_vm1, %v2832_v47  ;;  %v597_v47 = vld [vmem:[%s17707_s1] sm:$0x3]  ;;  %v3118_v3 = vpack.c.bf16 %v11212_v51, %v11211_v45  ;;  %v15398_v45 = vpack.c.bf16 %v15390_v29, %v10817_v26  ;;  %v15403_v51 = vld [vmem:[%s15070_s12 + $0xea] sm:$0xff]  ;;  %v11223_v26 = vld [vmem:[%s15070_s12 + $0x122] sm:$0xff] }
  0x59   : > { %14936 = vmatprep.subr.msk.bf16.mxu0 %vm432_vm0, %v597_v47 }
  0x5a   : > { %17736 = vst [vmem:[#allocation9_spill] sm:$0xff] %v15398_v45 }
  0x5e   : > { %12737 = vmatmul.mubr.msk.bf16.vlgmr.msra.gmra.mrb[32].mxu0 %vm383_vm1, %v632_v15  ;;  %v15366_v15 = vld [vmem:[%s17707_s1 + $0x16] sm:$0x3] }
  0x5f   : > { %13029 = vmatmul.mubr.msk.bf16.gmra.mrb[4].mxu1 %vm383_vm1, %v2833_v57  ;;  %12740 = vmatprep.mubr.msk.bf16.mxu0 %vm383_vm1, %v633_v22  ;;  %v862_v57 = vsel %vm432_vm0, %v597_v47, 0  ;;  %v15371_v22 = vld [vmem:[%s15070_s12 + $0xaa] sm:$0xff]  ;;  %v11219_v47 = vld [vmem:[%s15070_s12 + $0xe2] sm:$0xff] }
  0x60   : > { %13032 = vmatprep.mubr.msk.bf16.mxu1 %vm383_vm1, %v2834_v58  ;;  %v11213_v58 = vld [vmem:[%s15070_s12 + $0x82] sm:$0xff]  ;;  %12769 = vmatpush3.bf16.msra.mxu0 %v862_v57 }
  0x61   : > { %v3119_v7 = vpack.c.bf16 %v15347_v60, %v11213_v58  ;;  %v10819_v57 = vld [vmem:[%s15070_s12 + $0x1a4] sm:$0xff]  ;;  %v15413_v58 = vld [vmem:[%s15070_s12 + $0x1ac] sm:$0xff] }
  0x66   : > { %12741 = vmatmul.mubr.msk.bf16.gmra.mrb[36].mxu0 %vm383_vm1, %v15324_v40 }
  0x67   : > { %13033 = vmatmul.mubr.msk.bf16.gmra.mrb[8].mxu1 %vm383_vm1, %v2835_v11  ;;  %12744 = vmatprep.mubr.msk.bf16.mxu0 %vm383_vm1, %v15327_v44  ;;  %v15361_v11 = vpack.c.bf16 %v15352_v62, %v10813_v61  ;;  %v15416_v61 = vld [vmem:[%s15070_s12 + $0x10a] sm:$0xff] }
  0x68   : > { %13036 = vmatprep.mubr.msk.bf16.mxu1 %vm383_vm1, %v2836_v18  ;;  %v11215_v18 = vld [vmem:[%s15070_s12 + $0xa2] sm:$0xff] }
  0x69   : > { %17734 = vst [vmem:[#allocation7_spill] sm:$0xff] %v15361_v11  ;;  %v3120_v34 = vpack.c.bf16 %v15371_v22, %v11215_v18  ;;  %v15426_v18 = vpack.c.bf16 %v15413_v58, %v10819_v57  ;;  %v10825_v57 = vld [vmem:[%s15070_s12 + $0x204] sm:$0xff] }
  0x6a   : > { %v11264_v44 = vld [vmem:[%s15070_s12 + $0xa7] sm:$0xff] }
  0x6b   : > { %17737 = vst [vmem:[#allocation10_spill] sm:$0xff] %v15426_v18 }
  0x6e   : > { %12745 = vmatmul.mubr.msk.bf16.gmra.mrb[40].mxu0 %vm383_vm1, %v15355_v5  ;;  %v11388_v5 = vld [vmem:[%s17707_s1 + $0x18] sm:$0x3] }
  0x6f   : > { %13037 = vmatmul.mubr.msk.bf16.gmra.mrb[12].mxu1 %vm383_vm1, %v2837_v37  ;;  %12748 = vmatprep.mubr.msk.bf16.mxu0 %vm383_vm1, %v15361_v11  ;;  %v15394_v37 = vpack.c.bf16 %v15379_v24, %v10815_v23 }
  0x70   : > { %13042 = vmatprep.mubr.msk.bf16.mxu1 %vm383_vm1, %v3117_v42  ;;  %v3121_v42 = vpack.c.bf16 %v15382_v25, %v11217_v63  ;;  %v15429_v63 = vpack.c.bf16 %v15416_v61, %v11221_v54  ;;  %v11225_v54 = vld [vmem:[%s15070_s12 + $0x142] sm:$0xff] }
  0x71   : > { %17735 = vst [vmem:[#allocation8_spill] sm:$0xff] %v15394_v37 }
  0x76   : > { %12749 = vmatmul.mubr.msk.bf16.gmra.mrb[44].mxu0 %vm383_vm1, %v15394_v37  ;;  %v15483_v37 = vld [vmem:[%s15070_s12 + $0x24c] sm:$0xff] }
  0x77   : > { %13043 = vmatmul.mubr.msk.bf16.vlgmr.msra.gmra.mrb[16].mxu1 %vm383_vm1, %v3118_v3  ;;  %12752 = vmatprep.mubr.msk.bf16.mxu0 %vm383_vm1, %v15398_v45  ;;  %v10821_v3 = vld [vmem:[%s15070_s12 + $0x1c4] sm:$0xff]  ;;  %v15462_v45 = vpack.c.bf16 %v15135_v39, %v11225_v54  ;;  %17741 = vst [vmem:[#allocation14_spill] sm:$0xff] %v15483_v37 }
  0x78   : > { %13075 = vmatpush3.bf16.msra.mxu1 %v3478_v9  ;;  %13046 = vmatprep.mubr.msk.bf16.mxu1 %vm383_vm1, %v3119_v7  ;;  %v15420_v7 = vld [vmem:[%s15070_s12 + $0x1cc] sm:$0xff]  ;;  %v15423_v9 = vpack.c.bf16 %v15403_v51, %v11219_v47  ;;  %v10827_v39 = vld [vmem:[%s15070_s12 + $0x224] sm:$0xff] }
  0x79   : > { %14947 = vmatprep.subr.msk.bf16.mxu1 %vm432_vm0, %v15366_v15  ;;  %v15432_v23 = vpack.c.bf16 %v15420_v7, %v10821_v3  ;;  %v15448_v47 = vld [vmem:[%s15070_s12 + $0x1ec] sm:$0xff]  ;;  %v11229_v54 = vld [vmem:[%s15070_s12 + $0x182] sm:$0xff] }
  0x7a   : > { %v15453_v3 = vld [vmem:[%s15070_s12 + $0x20c] sm:$0xff]  ;;  %v15492_v52 = vpack.c.bf16 %v15162_v53, %v11229_v54  ;;  %v10831_v53 = vld [vmem:[%s15070_s12 + $0x264] sm:$0xff] }
  0x7b   : > { %17738 = vst [vmem:[#allocation11_spill] sm:$0xff] %v15432_v23 }
  0x7e   : > { %12753 = vmatmul.mubr.msk.bf16.gmra.mrb[48].mxu0 %vm383_vm1, %v15426_v18 }
  0x7f   : > { %13047 = vmatmul.mubr.msk.bf16.gmra.mrb[20].mxu1 %vm383_vm1, %v3120_v34  ;;  %v15442_v34 = vld [vmem:[%s15070_s12 + $0x12a] sm:$0xff]  ;;  %12756 = vmatprep.mubr.msk.bf16.mxu0 %vm383_vm1, %v15432_v23  ;;  %v15465_v23 = vpack.c.bf16 %v15453_v3, %v10825_v57 }
  0x80   : > { %13050 = vmatprep.mubr.msk.bf16.mxu1 %vm383_vm1, %v3121_v42  ;;  %v10823_v42 = vld [vmem:[%s15070_s12 + $0x1e4] sm:$0xff]  ;;  %v15456_v1 = vpack.c.bf16 %v15442_v34, %v11223_v26 }
  0x81   : > { %v15459_v18 = vpack.c.bf16 %v15448_v47, %v10823_v42  ;;  %17740 = vst [vmem:[#allocation13_spill] sm:$0xff] %v15465_v23  ;;  %v11227_v26 = vld [vmem:[%s15070_s12 + $0x162] sm:$0xff]  ;;  %v15478_v42 = vld [vmem:[%s15070_s12 + $0x22c] sm:$0xff] }
  0x82   : > { %v10829_v57 = vld [vmem:[%s15070_s12 + $0x244] sm:$0xff]  ;;  %v15489_v11 = vpack.c.bf16 %v15478_v42, %v10827_v39 }
  0x83   : > { %17739 = vst [vmem:[#allocation12_spill] sm:$0xff] %v15459_v18  ;;  %v11233_v39 = vld [vmem:[%s15070_s12 + $0x1c2] sm:$0xff] }
  0x84   : > { %17742 = vst [vmem:[#allocation15_spill] sm:$0xff] %v15489_v11 }
  0x86   : > { %12757 = vmatmul.mubr.msk.bf16.gmra.mrb[52].mxu0 %vm383_vm1, %v15459_v18  ;;  %v15486_v18 = vpack.c.bf16 %v15151_v49, %v11227_v26  ;;  %v11231_v49 = vld [vmem:[%s15070_s12 + $0x1a2] sm:$0xff]  ;;  %v15508_v26 = vld [vmem:[%s15070_s12 + $0x26c] sm:$0xff] }
  0x87   : > { %13051 = vmatmul.mubr.msk.bf16.gmra.mrb[24].mxu1 %vm383_vm1, %v15423_v9  ;;  %12760 = vmatprep.mubr.msk.bf16.mxu0 %vm383_vm1, %v15465_v23  ;;  %v15495_v23 = vpack.c.bf16 %v15483_v37, %v10829_v57  ;;  %17744 = vst [vmem:[#allocation17_spill] sm:$0xff] %v15508_v26  ;;  %v15512_v54 = vpack.c.bf16 %v15186_v2, %v11231_v49  ;;  %v11237_v2 = vld [vmem:[%s15070_s12 + $0x202] sm:$0xff] }
  0x88   : > { %13054 = vmatprep.mubr.msk.bf16.mxu1 %vm383_vm1, %v15429_v63  ;;  %v15515_v57 = vpack.c.bf16 %v15508_v26, %v10831_v53  ;;  %v15518_v37 = vpack.c.bf16 %v15194_v4, %v11233_v39  ;;  %v15534_v4 = vpack.c.bf16 %v15217_v19, %v11237_v2  ;;  %v11239_v53 = vld [vmem:[%s15070_s12 + $0x222] sm:$0xff] }
  0x89   : > { %17743 = vst [vmem:[#allocation16_spill] sm:$0xff] %v15495_v23  ;;  %v15548_v19 = vpack.c.bf16 %v15240_v32, %v11239_v53  ;;  %v10898_v2 = vld [vmem:[%s17707_s1 + $0x4] sm:$0x3]  ;;  %v11260_v26 = vld [vmem:[%s15070_s12 + $0x67] sm:$0xff] }
  0x8a   : > { %17745 = vst [vmem:[#allocation18_spill] sm:$0xff] %v15515_v57  ;;  %v1124_v32 = vsel %vm432_vm0, %v10898_v2, 0  ;;  %v11262_v53 = vld [vmem:[%s15070_s12 + $0x87] sm:$0xff]  ;;  %14937 = vmatprep.subr.msk.bf16.mxu0 %vm432_vm0, %v10898_v2  ;;  %v11265_v2 = vld [vmem:[%s15070_s12 + $0xaf] sm:$0xff] }
  0x8e   : > { %12761 = vmatmul.mubr.msk.bf16.gmra.mrb[56].mxu0 %vm383_vm1, %v15489_v11 }
  0x8f   : > { %13055 = vmatmul.mubr.msk.bf16.gmra.mrb[28].mxu1 %vm383_vm1, %v15456_v1  ;;  %12764 = vmatprep.mubr.msk.bf16.mxu0 %vm383_vm1, %v15495_v23  ;;  %v11235_v23 = vld [vmem:[%s15070_s12 + $0x1e2] sm:$0xff] }
  0x90   : > { %13058 = vmatprep.mubr.msk.bf16.mxu1 %vm383_vm1, %v15462_v45  ;;  %v15531_v49 = vpack.c.bf16 %v15212_v17, %v11235_v23  ;;  %v11258_v17 = vld [vmem:[%s15070_s12 + $0x47] sm:$0xff]  ;;  %v11259_v23 = vld [vmem:[%s15070_s12 + $0x4f] sm:$0xff] }
  0x91   : > { %v3411_v39 = vpack.c.bf16 %v11259_v23, %v11258_v17  ;;  %v11263_v17 = vld [vmem:[%s15070_s12 + $0x8f] sm:$0xff] }
  0x92   : > { %v3413_v11 = vpack.c.bf16 %v11263_v17, %v11262_v53  ;;  %v11312_v53 = vld [vmem:[%s15070_s12 + $0x94] sm:$0xff] }
  0x93   : > { %v3707_v17 = vpack.c.bf16 %v11312_v53, %v15283_v56 }
  0x96   : > { %12765 = vmatmul.mubr.msk.bf16.gmra.mrb[60].mxu0 %vm383_vm1, %v15515_v57  ;;  %v11261_v57 = vld [vmem:[%s15070_s12 + $0x6f] sm:$0xff] }
  0x97   : > { %13059 = vmatmul.mubr.msk.bf16.gmra.mrb[0].mxu1 %vm383_vm1, %v15486_v18  ;;  %12770 = vmatprep.mubr.msk.bf16.mxu0 %vm383_vm1, %v15117_v31  ;;  %v3412_v23 = vpack.c.bf16 %v11261_v57, %v11260_v26  ;;  %v11267_v26 = vld [vmem:[%s15070_s12 + $0xcf] sm:$0xff] }
  0x98   : > { %13062 = vmatprep.mubr.msk.bf16.mxu1 %vm383_vm1, %v15492_v52 }
  0x9e   : > { %12771 = vmatmul.mubr.msk.bf16.vlgmr.msra.gmra.mrb[32].mxu0 %vm383_vm1, %v15120_v33 }
  0x9f   : > { %13063 = vmatmul.mubr.msk.bf16.gmra.mrb[4].mxu1 %vm383_vm1, %v15512_v54  ;;  %12774 = vmatprep.mubr.msk.bf16.mxu0 %vm383_vm1, %v15131_v38 }
  0xa0   : > { %13066 = vmatprep.mubr.msk.bf16.mxu1 %vm383_vm1, %v15518_v37  ;;  %12803 = vmatpush3.bf16.msra.mxu0 %v1124_v32  ;;  %v11266_v32 = vld [vmem:[%s15070_s12 + $0xc7] sm:$0xff] }
  0xa1   : > { %v3415_v57 = vpack.c.bf16 %v11267_v26, %v11266_v32  ;;  %v11320_v32 = vld [vmem:[%s15070_s12 + $0x114] sm:$0xff] }
  0xa6   : > { %12775 = vmatmul.mubr.msk.bf16.gmra.mrb[36].mxu0 %vm383_vm1, %v15144_v46 }
  0xa7   : > { %13067 = vmatmul.mubr.msk.bf16.gmra.mrb[8].mxu1 %vm383_vm1, %v15531_v49  ;;  %12778 = vmatprep.mubr.msk.bf16.mxu0 %vm383_vm1, %v15147_v48 }
  0xa8   : > { %13070 = vmatprep.mubr.msk.bf16.mxu1 %vm383_vm1, %v15534_v4 }
  0xae   : > { %12779 = vmatmul.mubr.msk.bf16.gmra.mrb[40].mxu0 %vm383_vm1, %v15171_v59 }
  0xaf   : > { %13071 = vmatmul.mubr.msk.bf16.gmra.mrb[12].mxu1 %vm383_vm1, %v15548_v19  ;;  %12782 = vmatprep.mubr.msk.bf16.mxu0 %vm383_vm1, %v15183_v0 }
  0xb0   : > { %13076 = vmatprep.mubr.msk.bf16.mxu1 %vm383_vm1, %v3411_v39  ;;  %v3772_v39 = vsel %vm432_vm0, %v15366_v15, 0  ;;  %v3414_v15 = vpack.c.bf16 %v11265_v2, %v11264_v44  ;;  %v11310_v44 = vld [vmem:[%s15070_s12 + $0x74] sm:$0xff] }
  0xb1   : > { %v11316_v2 = vld [vmem:[%s15070_s12 + $0xd4] sm:$0xff] }
  0xb6   : > { %12783 = vmatmul.mubr.msk.bf16.gmra.mrb[44].mxu0 %vm383_vm1, %v15206_v13 }
  0xb7   : > { %13077 = vmatmul.mubr.msk.bf16.vlgmr.msra.gmra.mrb[16].mxu1 %vm383_vm1, %v3412_v23  ;;  %12786 = vmatprep.mubr.msk.bf16.mxu0 %vm383_vm1, %v15209_v16  ;;  %v4066_v23 = vsel %vm432_vm0, %v11388_v5, 0 }
  0xb8   : > { %13109 = vmatpush3.bf16.msra.mxu1 %v3772_v39  ;;  %13080 = vmatprep.mubr.msk.bf16.mxu1 %vm383_vm1, %v3413_v11  ;;  %v15647_v39 = vld [vmem:[%s17707_s1 + $0x1a] sm:$0x3] }
  0xb9   : > { %14948 = vmatprep.subr.msk.bf16.mxu1 %vm432_vm0, %v11388_v5  ;;  %v3709_v5 = vpack.c.bf16 %v11316_v2, %v15303_v10 }
  0xbe   : > { %12787 = vmatmul.mubr.msk.bf16.gmra.mrb[48].mxu0 %vm383_vm1, %v15230_v28 }
  0xbf   : > { %13081 = vmatmul.mubr.msk.bf16.gmra.mrb[20].mxu1 %vm383_vm1, %v3414_v15  ;;  %12790 = vmatprep.mubr.msk.bf16.mxu0 %vm383_vm1, %v15233_v30 }
  0xc0   : > { %13084 = vmatprep.mubr.msk.bf16.mxu1 %vm383_vm1, %v3415_v57 }
  0xc6   : > { %12791 = vmatmul.mubr.msk.bf16.gmra.mrb[52].mxu0 %vm383_vm1, %v15075_v8  ;;  %v11307_v8 = vld [vmem:[%s15070_s12 + $0x4c] sm:$0xff] }
  0xc7   : > { %13085 = vmatmul.mubr.msk.bf16.gmra.mrb[24].mxu1 %vm383_vm1, %v15117_v31  ;;  %12794 = vmatprep.mubr.msk.bf16.mxu0 %vm383_vm1, %v15080_v12  ;;  %v11308_v12 = vld [vmem:[%s15070_s12 + $0x54] sm:$0xff] }
  0xc8   : > { %13088 = vmatprep.mubr.msk.bf16.mxu1 %vm383_vm1, %v15120_v33 }
  0xce   : > { %12795 = vmatmul.mubr.msk.bf16.gmra.mrb[56].mxu0 %vm383_vm1, %v15083_v14  ;;  %v3705_v14 = vpack.c.bf16 %v11308_v12, %v11307_v8 }
  0xcf   : > { %13089 = vmatmul.mubr.msk.bf16.gmra.mrb[28].mxu1 %vm383_vm1, %v15131_v38  ;;  %12798 = vmatprep.mubr.msk.bf16.mxu0 %vm383_vm1, %v15102_v20  ;;  %v10947_v20 = vld [vmem:[%s17707_s1 + $0x6] sm:$0x3] }
  0xd0   : > { %13092 = vmatprep.mubr.msk.bf16.mxu1 %vm383_vm1, %v15144_v46  ;;  %14938 = vmatprep.subr.msk.bf16.mxu0 %vm432_vm0, %v10947_v20 }
  0xd6   : > { %12799 = vmatmul.mubr.msk.bf16.gmra.mrb[60].mxu0 %vm383_vm1, %v15104_v21  ;;  %v11309_v21 = vld [vmem:[%s15070_s12 + $0x6c] sm:$0xff] }
  0xd7   : > { %13093 = vmatmul.mubr.msk.bf16.gmra.mrb[0].mxu1 %vm383_vm1, %v15147_v48  ;;  %12804 = vmatprep.mubr.msk.bf16.mxu0 %vm383_vm1, %v3413_v11  ;;  %v1418_v11 = vsel %vm432_vm0, %v10947_v20, 0  ;;  %v10918_v20 = vld [vmem:[%s15070_s12 + $0xb2] sm:$0xff] }
  0xd8   : > { %13096 = vmatprep.mubr.msk.bf16.mxu1 %vm383_vm1, %v15171_v59 }
  0xde   : > { %12805 = vmatmul.mubr.msk.bf16.vlgmr.msra.gmra.mrb[32].mxu0 %vm383_vm1, %v3414_v15  ;;  %v11332_v15 = vld [vmem:[%s15070_s12 + $0x1d4] sm:$0xff] }
  0xdf   : > { %13097 = vmatmul.mubr.msk.bf16.gmra.mrb[4].mxu1 %vm383_vm1, %v15183_v0  ;;  %12808 = vmatprep.mubr.msk.bf16.mxu0 %vm383_vm1, %v3415_v57  ;;  %v10916_v57 = vld [vmem:[%s15070_s12 + $0x92] sm:$0xff] }
  0xe0   : > { %13100 = vmatprep.mubr.msk.bf16.mxu1 %vm383_vm1, %v15206_v13  ;;  %12837 = vmatpush3.bf16.msra.mxu0 %v1418_v11 }
  0xe6   : > { %12809 = vmatmul.mubr.msk.bf16.gmra.mrb[36].mxu0 %vm383_vm1, %v15117_v31  ;;  %v3706_v31 = vpack.c.bf16 %v11310_v44, %v11309_v21  ;;  %v10920_v21 = vld [vmem:[%s15070_s12 + $0xd2] sm:$0xff]  ;;  %v1352_v44 = vpack.c.bf16 %v10918_v20, %v15371_v22  ;;  %v15897_v20 = vld [vmem:[%s15070_s12 + $0x26a] sm:$0xff] }
  0xe7   : > { %13101 = vmatmul.mubr.msk.bf16.gmra.mrb[8].mxu1 %vm383_vm1, %v15209_v16  ;;  %12812 = vmatprep.mubr.msk.bf16.mxu0 %vm383_vm1, %v15120_v33  ;;  %v11314_v33 = vld [vmem:[%s15070_s12 + $0xb4] sm:$0xff]  ;;  %v1353_v53 = vpack.c.bf16 %v10920_v21, %v15382_v25  ;;  %v15901_v21 = vld [vmem:[%s15070_s12 + $0x262] sm:$0xff] }
  0xe8   : > { %13104 = vmatprep.mubr.msk.bf16.mxu1 %vm383_vm1, %v15230_v28  ;;  %v3708_v56 = vpack.c.bf16 %v11314_v33, %v15298_v6  ;;  %v15673_v6 = vpack.c.bf16 %v11320_v32, %v15321_v36  ;;  %v10894_v36 = vld [vmem:[%s15070_s12 + $0x247] sm:$0xff]  ;;  %v15760_v22 = vld [vmem:[%s15070_s12 + $0xf2] sm:$0xff] }
  0xe9   : > { %v10928_v33 = vld [vmem:[%s15070_s12 + $0x152] sm:$0xff] }
  0xee   : > { %12813 = vmatmul.mubr.msk.bf16.gmra.mrb[40].mxu0 %vm383_vm1, %v15131_v38  ;;  %v11318_v38 = vld [vmem:[%s15070_s12 + $0xf4] sm:$0xff] }
  0xef   : > { %13105 = vmatmul.mubr.msk.bf16.gmra.mrb[12].mxu1 %vm383_vm1, %v15233_v30  ;;  %12816 = vmatprep.mubr.msk.bf16.mxu0 %vm383_vm1, %v15144_v46  ;;  %v15670_v46 = vpack.c.bf16 %v11318_v38, %v15316_v27  ;;  %v15811_v38 = vld [vmem:[%s15070_s12 + $0x18a] sm:$0xff] }
  0xf0   : > { %13110 = vmatprep.mubr.msk.bf16.mxu1 %vm383_vm1, %v3705_v14  ;;  %v1351_v14 = vpack.c.bf16 %v10916_v57, %v15347_v60  ;;  %v15876_v57 = vld [vmem:[%s15070_s12 + $0x24a] sm:$0xff] }
  0xf6   : > { %12817 = vmatmul.mubr.msk.bf16.gmra.mrb[44].mxu0 %vm383_vm1, %v15147_v48  ;;  %v11322_v48 = vld [vmem:[%s15070_s12 + $0x134] sm:$0xff] }
  0xf7   : > { %13111 = vmatmul.mubr.msk.bf16.vlgmr.msra.gmra.mrb[16].mxu1 %vm383_vm1, %v3706_v31  ;;  %12820 = vmatprep.mubr.msk.bf16.mxu0 %vm383_vm1, %v15171_v59  ;;  %v11324_v59 = vld [vmem:[%s15070_s12 + $0x154] sm:$0xff]  ;;  %v15686_v10 = vpack.c.bf16 %v11322_v48, %v15342_v55 }
  0xf8   : > { %13143 = vmatpush3.bf16.msra.mxu1 %v4066_v23  ;;  %13114 = vmatprep.mubr.msk.bf16.mxu1 %vm383_vm1, %v3707_v17  ;;  %v15689_v27 = vpack.c.bf16 %v11324_v59, %v15352_v62  ;;  %v10895_v55 = vld [vmem:[%s15070_s12 + $0x24f] sm:$0xff]  ;;  %v10996_v23 = vld [vmem:[%s17707_s1 + $0x8] sm:$0x3] }
  0xf9   : > { %14949 = vmatprep.subr.msk.bf16.mxu1 %vm432_vm0, %v15647_v39  ;;  %v11338_v31 = vld [vmem:[%s15070_s12 + $0x234] sm:$0xff]  ;;  %14939 = vmatprep.subr.msk.bf16.mxu0 %vm432_vm0, %v10996_v23 }
  0xfa   : > { %v15766_v25 = vpack.c.bf16 %v11338_v31, %v15478_v42  ;;  %v10927_v42 = vld [vmem:[%s15070_s12 + $0x14a] sm:$0xff]  ;;  %v10934_v59 = vld [vmem:[%s15070_s12 + $0x1b2] sm:$0xff]  ;;  %v15920_v31 = vld [vmem:[%s15070_s12 + $0x2a2] sm:$0xff] }
  0xfe   : > { %12821 = vmatmul.mubr.msk.bf16.gmra.mrb[48].mxu0 %vm383_vm1, %v15183_v0  ;;  %v11326_v0 = vld [vmem:[%s15070_s12 + $0x174] sm:$0xff] }
  0xff   : > { %13115 = vmatmul.mubr.msk.bf16.gmra.mrb[20].mxu1 %vm383_vm1, %v3708_v56  ;;  %12824 = vmatprep.mubr.msk.bf16.mxu0 %vm383_vm1, %v15206_v13  ;;  %v11328_v13 = vld [vmem:[%s15070_s12 + $0x194] sm:$0xff]  ;;  %v15704_v62 = vpack.c.bf16 %v11326_v0, %v15379_v24  ;;  %v10896_v24 = vld [vmem:[%s15070_s12 + $0x267] sm:$0xff]  ;;  %v15792_v56 = vpack.c.bf16 %v10928_v33, %v10927_v42 }
 0x100   : > { %13118 = vmatprep.mubr.msk.bf16.mxu1 %vm383_vm1, %v3709_v5  ;;  %v15707_v26 = vpack.c.bf16 %v11328_v13, %v15390_v29  ;;  %v10897_v29 = vld [vmem:[%s15070_s12 + $0x26f] sm:$0xff]  ;;  %v15797_v5 = vld [vmem:[%s17707_s1 + $0x1c] sm:$0x3] }
 0x101   : > { %v15727_v12 = vpack.c.bf16 %v10897_v29, %v10896_v24  ;;  %v15832_v0 = vld [vmem:[%s15070_s12 + $0x1ca] sm:$0xff]  ;;  %v10936_v13 = vld [vmem:[%s15070_s12 + $0x1d2] sm:$0xff] }
 0x102   : > { %v10940_v24 = vld [vmem:[%s15070_s12 + $0x212] sm:$0xff] }
 0x103   : > { %v17750_v42 = vld [vmem:[#allocation8_spill] sm:$0xff] }
 0x106   : > { %12825 = vmatmul.mubr.msk.bf16.gmra.mrb[52].mxu0 %vm383_vm1, %v15209_v16  ;;  %v15709_v16 = vpack.c.bf16 %v10895_v55, %v10894_v36  ;;  %v10938_v55 = vld [vmem:[%s15070_s12 + $0x1f2] sm:$0xff] }
 0x107   : > { %13119 = vmatmul.mubr.msk.bf16.gmra.mrb[24].mxu1 %vm383_vm1, %v15670_v46  ;;  %12828 = vmatprep.mubr.msk.bf16.mxu0 %vm383_vm1, %v15230_v28  ;;  %v11330_v28 = vld [vmem:[%s15070_s12 + $0x1b4] sm:$0xff] }
 0x108   : > { %13122 = vmatprep.mubr.msk.bf16.mxu1 %vm383_vm1, %v15673_v6  ;;  %v15725_v8 = vpack.c.bf16 %v11330_v28, %v15413_v58  ;;  %v11334_v58 = vld [vmem:[%s15070_s12 + $0x1f4] sm:$0xff]  ;;  %v15854_v28 = vld [vmem:[%s15070_s12 + $0x20a] sm:$0xff] }
 0x109   : > { %v15745_v60 = vpack.c.bf16 %v11334_v58, %v15448_v47  ;;  %v15763_v47 = vld [vmem:[%s15070_s12 + $0x112] sm:$0xff]  ;;  %v15861_v29 = vpack.c.bf16 %v10940_v24, %v15854_v28 }
 0x10a   : > { %v1355_v17 = vpack.c.bf16 %v15763_v47, %v15416_v61  ;;  %v1712_v61 = vsel %vm432_vm0, %v10996_v23, 0  ;;  %v17747_v23 = vld [vmem:[#allocation6_spill] sm:$0xff]  ;;  %v16011_v24 = vld [vmem:[%s15070_s12 + $0x274] sm:$0xff] }
 0x10e   : > { %12829 = vmatmul.mubr.msk.bf16.gmra.mrb[56].mxu0 %vm383_vm1, %v15233_v30  ;;  %v15730_v30 = vpack.c.bf16 %v11332_v15, %v15420_v7  ;;  %v11336_v7 = vld [vmem:[%s15070_s12 + $0x214] sm:$0xff] }
 0x10f   : > { %13123 = vmatmul.mubr.msk.bf16.gmra.mrb[28].mxu1 %vm383_vm1, %v15686_v10  ;;  %12832 = vmatprep.mubr.msk.bf16.mxu0 %vm383_vm1, %v15709_v16  ;;  %v15749_v11 = vpack.c.bf16 %v11336_v7, %v15453_v3  ;;  %v1354_v3 = vpack.c.bf16 %v15760_v22, %v15403_v51  ;;  %v15782_v51 = vld [vmem:[%s15070_s12 + $0x132] sm:$0xff] }
 0x110   : > { %13126 = vmatprep.mubr.msk.bf16.mxu1 %vm383_vm1, %v15689_v27  ;;  %v1356_v2 = vpack.c.bf16 %v15782_v51, %v15442_v34  ;;  %v10929_v34 = vld [vmem:[%s15070_s12 + $0x16a] sm:$0xff]  ;;  %v10942_v15 = vld [vmem:[%s15070_s12 + $0x232] sm:$0xff] }
 0x111   : > { %v10946_v7 = vld [vmem:[%s15070_s12 + $0x272] sm:$0xff] }
 0x116   : > { %12833 = vmatmul.mubr.msk.bf16.gmra.mrb[60].mxu0 %vm383_vm1, %v15727_v12 }
 0x117   : > { %13127 = vmatmul.mubr.msk.bf16.gmra.mrb[0].mxu1 %vm383_vm1, %v15704_v62  ;;  %12838 = vmatprep.mubr.msk.bf16.mxu0 %vm383_vm1, %v1351_v14  ;;  %v10944_v14 = vld [vmem:[%s15070_s12 + $0x252] sm:$0xff] }
 0x118   : > { %13130 = vmatprep.mubr.msk.bf16.mxu1 %vm383_vm1, %v15707_v26 }
 0x11e   : > { %12839 = vmatmul.mubr.msk.bf16.vlgmr.msra.gmra.mrb[32].mxu0 %vm383_vm1, %v1352_v44  ;;  %v15906_v44 = vpack.c.bf16 %v10946_v7, %v15897_v20 }
 0x11f   : > { %13131 = vmatmul.mubr.msk.bf16.gmra.mrb[4].mxu1 %vm383_vm1, %v15725_v8  ;;  %12842 = vmatprep.mubr.msk.bf16.mxu0 %vm383_vm1, %v1353_v53  ;;  %v15915_v53 = vld [vmem:[%s15070_s12 + $0x282] sm:$0xff] }
 0x120   : > { %13134 = vmatprep.mubr.msk.bf16.mxu1 %vm383_vm1, %v15730_v30  ;;  %12871 = vmatpush3.bf16.msra.mxu0 %v1712_v61 }
 0x126   : > { %12843 = vmatmul.mubr.msk.bf16.gmra.mrb[36].mxu0 %vm383_vm1, %v1354_v3  ;;  %v17746_v3 = vld [vmem:[#allocation5_spill] sm:$0xff] }
 0x127   : > { %13135 = vmatmul.mubr.msk.bf16.gmra.mrb[8].mxu1 %vm383_vm1, %v15745_v60  ;;  %12846 = vmatprep.mubr.msk.bf16.mxu0 %vm383_vm1, %v1355_v17  ;;  %v15931_v17 = vld [vmem:[%s15070_s12 + $0x2c2] sm:$0xff] }
 0x128   : > { %13138 = vmatprep.mubr.msk.bf16.mxu1 %vm383_vm1, %v15749_v11 }
 0x12e   : > { %12847 = vmatmul.mubr.msk.bf16.gmra.mrb[40].mxu0 %vm383_vm1, %v1356_v2  ;;  %v4655_v2 = vsel %vm432_vm0, %v15797_v5, 0 }
 0x12f   : > { %13139 = vmatmul.mubr.msk.bf16.gmra.mrb[12].mxu1 %vm383_vm1, %v15766_v25  ;;  %12850 = vmatprep.mubr.msk.bf16.mxu0 %vm383_vm1, %v15792_v56 }
 0x130   : > { %13144 = vmatprep.mubr.msk.bf16.mxu1 %vm383_vm1, %v15423_v9  ;;  %v4360_v9 = vsel %vm432_vm0, %v15647_v39, 0  ;;  %v10930_v39 = vld [vmem:[%s15070_s12 + $0x172] sm:$0xff] }
 0x131   : > { %v15814_v32 = vpack.c.bf16 %v10930_v39, %v10929_v34  ;;  %v17754_v34 = vld [vmem:[#allocation12_spill] sm:$0xff]  ;;  %v10992_v39 = vld [vmem:[%s15070_s12 + $0x2a4] sm:$0xff] }
 0x136   : > { %12851 = vmatmul.mubr.msk.bf16.gmra.mrb[44].mxu0 %vm383_vm1, %v15814_v32 }
 0x137   : > { %13145 = vmatmul.mubr.msk.bf16.vlgmr.msra.gmra.mrb[16].mxu1 %vm383_vm1, %v15429_v63  ;;  %v10932_v63 = vld [vmem:[%s15070_s12 + $0x192] sm:$0xff] }
 0x138   : > { %13177 = vmatpush3.bf16.msra.mxu1 %v4360_v9  ;;  %13148 = vmatprep.mubr.msk.bf16.mxu1 %vm383_vm1, %v15456_v1  ;;  %v15817_v48 = vpack.c.bf16 %v10932_v63, %v15811_v38  ;;  %v15828_v1 = vld [vmem:[%s15070_s12 + $0x1aa] sm:$0xff]  ;;  %v15954_v9 = vld [vmem:[%s17707_s1 + $0x1e] sm:$0x3] }
 0x139   : > { %14950 = vmatprep.subr.msk.bf16.mxu1 %vm432_vm0, %v15797_v5  ;;  %v15836_v36 = vpack.c.bf16 %v10934_v59, %v15828_v1  ;;  %v17752_v5 = vld [vmem:[#allocation10_spill] sm:$0xff] }
 0x13a   : > { %12854 = vmatprep.mubr.msk.bf16.mxu0 %vm383_vm1, %v15817_v48  ;;  %v11431_v63 = vld [vmem:[%s15070_s12 + $0x28c] sm:$0xff] }
 0x13b   : > { %v11433_v59 = vld [vmem:[%s15070_s12 + $0x2ac] sm:$0xff] }
 0x13e   : > { %12855 = vmatmul.mubr.msk.bf16.gmra.mrb[48].mxu0 %vm383_vm1, %v15836_v36 }
 0x13f   : > { %13149 = vmatmul.mubr.msk.bf16.gmra.mrb[20].mxu1 %vm383_vm1, %v15462_v45  ;;  %v15839_v45 = vpack.c.bf16 %v10936_v13, %v15832_v0 }
 0x140   : > { %13152 = vmatprep.mubr.msk.bf16.mxu1 %vm383_vm1, %v15486_v18  ;;  %v15850_v18 = vld [vmem:[%s15070_s12 + $0x1ea] sm:$0xff] }
 0x141   : > { %12858 = vmatprep.mubr.msk.bf16.mxu0 %vm383_vm1, %v15839_v45 }
 0x147   : > { %13153 = vmatmul.mubr.msk.bf16.gmra.mrb[24].mxu1 %vm383_vm1, %v15492_v52  ;;  %v15858_v52 = vpack.c.bf16 %v10938_v55, %v15850_v18  ;;  %v15996_v55 = vpack.c.bf16 %v11433_v59, %v10992_v39 }
 0x148   : > { %13156 = vmatprep.mubr.msk.bf16.mxu1 %vm383_vm1, %v15512_v54  ;;  %v15872_v54 = vld [vmem:[%s15070_s12 + $0x22a] sm:$0xff] }
 0x149   : > { %12859 = vmatmul.mubr.msk.bf16.gmra.mrb[52].mxu0 %vm383_vm1, %v15858_v52  ;;  %v15880_v58 = vpack.c.bf16 %v10942_v15, %v15872_v54  ;;  %v11013_v15 = vld [vmem:[%s15070_s12 + $0xea] sm:$0xff] }
 0x14a   : > { %12862 = vmatprep.mubr.msk.bf16.mxu0 %vm383_vm1, %v15861_v29 }
 0x14f   : > { %13157 = vmatmul.mubr.msk.bf16.gmra.mrb[28].mxu1 %vm383_vm1, %v15518_v37  ;;  %v15883_v37 = vpack.c.bf16 %v10944_v14, %v15876_v57  ;;  %v17759_v14 = vld [vmem:[#allocation14_spill] sm:$0xff] }
 0x150   : > { %13160 = vmatprep.mubr.msk.bf16.mxu1 %vm383_vm1, %v15531_v49  ;;  %v15892_v49 = vld [vmem:[%s15070_s12 + $0x242] sm:$0xff] }
 0x151   : > { %12863 = vmatmul.mubr.msk.bf16.gmra.mrb[56].mxu0 %vm383_vm1, %v15880_v58 }
 0x152   : > { %12866 = vmatprep.mubr.msk.bf16.mxu0 %vm383_vm1, %v15883_v37 }
 0x157   : > { %13161 = vmatmul.mubr.msk.bf16.gmra.mrb[0].mxu1 %vm383_vm1, %v15534_v4  ;;  %v4010_v4 = vpack.c.bf16 %v15246_v35, %v15892_v49  ;;  %v4012_v35 = vpack.c.bf16 %v15262_v43, %v15915_v53  ;;  %v17749_v43 = vld [vmem:[#allocation7_spill] sm:$0xff] }
 0x158   : > { %13164 = vmatprep.mubr.msk.bf16.mxu1 %vm383_vm1, %v15548_v19  ;;  %v4011_v19 = vpack.c.bf16 %v15256_v41, %v15901_v21  ;;  %v4013_v41 = vpack.c.bf16 %v15272_v50, %v15920_v31  ;;  %v11045_v50 = vld [vmem:[%s17707_s1 + $0xa] sm:$0x3] }
 0x159   : > { %12867 = vmatmul.mubr.msk.bf16.gmra.mrb[60].mxu0 %vm383_vm1, %v15906_v44  ;;  %v2006_v33 = vsel %vm432_vm0, %v11045_v50, 0  ;;  %14940 = vmatprep.subr.msk.bf16.mxu0 %vm432_vm0, %v11045_v50 }
 0x15a   : > { %12872 = vmatprep.mubr.msk.bf16.mxu0 %vm383_vm1, %v15324_v40  ;;  %v17748_v40 = vld [vmem:[#allocation4_spill] sm:$0xff] }
 0x15b   : > { %v4014_v61 = vpack.c.bf16 %v17748_v40, %v15931_v17  ;;  %v11017_v40 = vld [vmem:[%s15070_s12 + $0x12a] sm:$0xff] }
 0x15c   : > { %v1941_v50 = vpack.c.bf16 %v15782_v51, %v11017_v40  ;;  %v11094_v51 = vld [vmem:[%s17707_s1 + $0xc] sm:$0x3] }
 0x15f   : > { %13165 = vmatmul.mubr.msk.bf16.gmra.mrb[4].mxu1 %vm383_vm1, %v4010_v4 }
 0x160   : > { %13168 = vmatprep.mubr.msk.bf16.mxu1 %vm383_vm1, %v4011_v19  ;;  %v17760_v19 = vld [vmem:[#allocation17_spill] sm:$0xff] }
 0x161   : > { %12873 = vmatmul.mubr.msk.bf16.vlgmr.msra.gmra.mrb[32].mxu0 %vm383_vm1, %v17746_v3  ;;  %v11015_v3 = vld [vmem:[%s15070_s12 + $0x10a] sm:$0xff] }
 0x162   : > { %12876 = vmatprep.mubr.msk.bf16.mxu0 %vm383_vm1, %v17747_v23  ;;  %12905 = vmatpush3.bf16.msra.mxu0 %v2006_v33  ;;  %v11434_v23 = vld [vmem:[%s15070_s12 + $0x2b4] sm:$0xff]  ;;  %v11454_v33 = vld [vmem:[%s15070_s12 + $0x182] sm:$0xff] }
 0x163   : > { %14941 = vmatprep.subr.msk.bf16.mxu0 %vm432_vm0, %v11094_v51 }
 0x167   : > { %13169 = vmatmul.mubr.msk.bf16.gmra.mrb[8].mxu1 %vm383_vm1, %v4012_v35  ;;  %v1939_v35 = vpack.c.bf16 %v15760_v22, %v11013_v15  ;;  %v1940_v22 = vpack.c.bf16 %v15763_v47, %v11015_v3  ;;  %v4588_v47 = vpack.c.bf16 %v15811_v38, %v11454_v33  ;;  %v2301_v38 = vsel %vm432_vm0, %v11094_v51, 0  ;;  %v11480_v15 = vld [vmem:[%s15070_s12 + $0x322] sm:$0xff]  ;;  %v11504_v51 = vld [vmem:[%s15070_s12 + $0x18f] sm:$0xff] }
 0x168   : > { %13172 = vmatprep.mubr.msk.bf16.mxu1 %vm383_vm1, %v4013_v41  ;;  %v11432_v41 = vld [vmem:[%s15070_s12 + $0x294] sm:$0xff]  ;;  %v11068_v33 = vld [vmem:[%s15070_s12 + $0x1a4] sm:$0xff] }
 0x169   : > { %12877 = vmatmul.mubr.msk.bf16.gmra.mrb[36].mxu0 %vm383_vm1, %v17749_v43  ;;  %v16034_v43 = vpack.c.bf16 %v11434_v23, %v11433_v59  ;;  %v16142_v23 = vld [vmem:[%s15070_s12 + $0x18c] sm:$0xff] }
 0x16a   : > { %12880 = vmatprep.mubr.msk.bf16.mxu0 %vm383_vm1, %v17750_v42  ;;  %v11436_v42 = vld [vmem:[%s15070_s12 + $0x2d4] sm:$0xff] }
 0x16f   : > { %13173 = vmatmul.mubr.msk.bf16.gmra.mrb[12].mxu1 %vm383_vm1, %v4014_v61  ;;  %v16031_v61 = vpack.c.bf16 %v11432_v41, %v11431_v63 }
 0x170   : > { %13178 = vmatprep.mubr.msk.bf16.mxu1 %vm383_vm1, %v15670_v46  ;;  %v17751_v46 = vld [vmem:[#allocation9_spill] sm:$0xff] }
 0x171   : > { %12881 = vmatmul.mubr.msk.bf16.gmra.mrb[40].mxu0 %vm383_vm1, %v17751_v46  ;;  %v11456_v46 = vld [vmem:[%s15070_s12 + $0x1a2] sm:$0xff] }
 0x172   : > { %12884 = vmatprep.mubr.msk.bf16.mxu0 %vm383_vm1, %v17752_v5  ;;  %v11458_v5 = vld [vmem:[%s15070_s12 + $0x1c2] sm:$0xff] }
 0x177   : > { %13179 = vmatmul.mubr.msk.bf16.vlgmr.msra.gmra.mrb[16].mxu1 %vm383_vm1, %v15673_v6  ;;  %v17753_v6 = vld [vmem:[#allocation11_spill] sm:$0xff] }
 0x178   : > { %13211 = vmatpush3.bf16.msra.mxu1 %v4655_v2  ;;  %13182 = vmatprep.mubr.msk.bf16.mxu1 %vm383_vm1, %v15686_v10  ;;  %v17755_v10 = vld [vmem:[#allocation13_spill] sm:$0xff] }
 0x179   : > { %14951 = vmatprep.subr.msk.bf16.mxu1 %vm432_vm0, %v15954_v9  ;;  %12885 = vmatmul.mubr.msk.bf16.gmra.mrb[44].mxu0 %vm383_vm1, %v17753_v6  ;;  %v14989_v6 = vld [vmem:[%s17707_s1 + $0xe] sm:$0x3] }
 0x17a   : > { %12888 = vmatprep.mubr.msk.bf16.mxu0 %vm383_vm1, %v17754_v34  ;;  %v4590_v34 = vpack.c.bf16 %v15832_v0, %v11458_v5  ;;  %v16157_v5 = vld [vmem:[%s15070_s12 + $0x1ac] sm:$0xff] }
 0x17f   : > { %13183 = vmatmul.mubr.msk.bf16.gmra.mrb[20].mxu1 %vm383_vm1, %v15689_v27  ;;  %v17756_v27 = vld [vmem:[#allocation15_spill] sm:$0xff] }
 0x180   : > { %13186 = vmatprep.mubr.msk.bf16.mxu1 %vm383_vm1, %v15704_v62  ;;  %v17757_v62 = vld [vmem:[#allocation16_spill] sm:$0xff] }
 0x181   : > { %12889 = vmatmul.mubr.msk.bf16.gmra.mrb[48].mxu0 %vm383_vm1, %v17755_v10  ;;  %v16073_v10 = vld [vmem:[%s17707_s1 + $0x20] sm:$0x3] }
 0x182   : > { %12892 = vmatprep.mubr.msk.bf16.mxu0 %vm383_vm1, %v17756_v27  ;;  %v11462_v27 = vld [vmem:[%s15070_s12 + $0x202] sm:$0xff] }
 0x187   : > { %13187 = vmatmul.mubr.msk.bf16.gmra.mrb[24].mxu1 %vm383_vm1, %v15707_v26  ;;  %v17758_v26 = vld [vmem:[#allocation18_spill] sm:$0xff] }
 0x188   : > { %13190 = vmatprep.mubr.msk.bf16.mxu1 %vm383_vm1, %v15725_v8  ;;  %v10990_v8 = vld [vmem:[%s15070_s12 + $0x284] sm:$0xff] }
 0x189   : > { %12893 = vmatmul.mubr.msk.bf16.gmra.mrb[52].mxu0 %vm383_vm1, %v17757_v62  ;;  %v15994_v13 = vpack.c.bf16 %v11431_v63, %v10990_v8  ;;  %v11478_v62 = vld [vmem:[%s15070_s12 + $0x302] sm:$0xff]  ;;  %v11063_v8 = vld [vmem:[%s15070_s12 + $0x14c] sm:$0xff] }
 0x18a   : > { %12896 = vmatprep.mubr.msk.bf16.mxu0 %vm383_vm1, %v17758_v26  ;;  %v11479_v26 = vld [vmem:[%s15070_s12 + $0x30a] sm:$0xff] }
 0x18b   : > { %v4600_v59 = vpack.c.bf16 %v11479_v26, %v11478_v62  ;;  %v16211_v62 = vld [vmem:[%s15070_s12 + $0x22c] sm:$0xff] }
 0x18f   : > { %13191 = vmatmul.mubr.msk.bf16.gmra.mrb[28].mxu1 %vm383_vm1, %v15730_v30  ;;  %v16005_v30 = vld [vmem:[%s15070_s12 + $0x254] sm:$0xff] }
 0x190   : > { %13194 = vmatprep.mubr.msk.bf16.mxu1 %vm383_vm1, %v15745_v60  ;;  %v10994_v60 = vld [vmem:[%s15070_s12 + $0x2c4] sm:$0xff]  ;;  %v4304_v7 = vpack.c.bf16 %v16005_v30, %v17759_v14 }
 0x191   : > { %12897 = vmatmul.mubr.msk.bf16.gmra.mrb[56].mxu0 %vm383_vm1, %v15994_v13  ;;  %v11064_v14 = vld [vmem:[%s15070_s12 + $0x164] sm:$0xff] }
 0x192   : > { %12900 = vmatprep.mubr.msk.bf16.mxu0 %vm383_vm1, %v15996_v55 }
 0x197   : > { %13195 = vmatmul.mubr.msk.bf16.gmra.mrb[0].mxu1 %vm383_vm1, %v15749_v11  ;;  %v11435_v11 = vld [vmem:[%s15070_s12 + $0x2cc] sm:$0xff] }
 0x198   : > { %13198 = vmatprep.mubr.msk.bf16.mxu1 %vm383_vm1, %v15766_v25  ;;  %v16017_v4 = vpack.c.bf16 %v11435_v11, %v10994_v60  ;;  %v4305_v25 = vpack.c.bf16 %v16011_v24, %v17760_v19  ;;  %v16045_v2 = vpack.c.bf16 %v11436_v42, %v11435_v11  ;;  %v11481_v11 = vld [vmem:[%s15070_s12 + $0x32a] sm:$0xff]  ;;  %v11482_v19 = vld [vmem:[%s15070_s12 + $0x342] sm:$0xff] }
 0x199   : > { %v4601_v41 = vpack.c.bf16 %v11481_v11, %v11480_v15  ;;  %v11485_v42 = vld [vmem:[%s15070_s12 + $0x36a] sm:$0xff] }
 0x19a   : > { %12901 = vmatmul.mubr.msk.bf16.gmra.mrb[60].mxu0 %vm383_vm1, %v16017_v4  ;;  %v16232_v15 = vld [vmem:[%s15070_s12 + $0x26c] sm:$0xff] }
 0x19b   : > { %12906 = vmatprep.mubr.msk.bf16.mxu0 %vm383_vm1, %v1939_v35  ;;  %v11066_v35 = vld [vmem:[%s15070_s12 + $0x184] sm:$0xff] }
 0x19f   : > { %13199 = vmatmul.mubr.msk.bf16.gmra.mrb[4].mxu1 %vm383_vm1, %v4304_v7  ;;  %v11065_v7 = vld [vmem:[%s15070_s12 + $0x16c] sm:$0xff] }
 0x1a0   : > { %13202 = vmatprep.mubr.msk.bf16.mxu1 %vm383_vm1, %v4305_v25  ;;  %v11483_v25 = vld [vmem:[%s15070_s12 + $0x34a] sm:$0xff]  ;;  %v2235_v3 = vpack.c.bf16 %v11065_v7, %v11064_v14 }
 0x1a1   : > { %v4602_v40 = vpack.c.bf16 %v11483_v25, %v11482_v19  ;;  %v11519_v7 = vld [vmem:[%s15070_s12 + $0x287] sm:$0xff]  ;;  %v11520_v19 = vld [vmem:[%s15070_s12 + $0x28f] sm:$0xff] }
 0x1a2   : > { %12907 = vmatmul.mubr.msk.bf16.vlgmr.msra.gmra.mrb[32].mxu0 %vm383_vm1, %v1940_v22  ;;  %v2236_v22 = vpack.c.bf16 %v16142_v23, %v11066_v35  ;;  %v4890_v25 = vpack.c.bf16 %v11520_v19, %v11519_v7  ;;  %v11521_v35 = vld [vmem:[%s15070_s12 + $0x2a7] sm:$0xff]  ;;  %v11618_v19 = vld [vmem:[%s17707_s1 + $0x24] sm:$0x3] }
 0x1a3   : > { %12910 = vmatprep.mubr.msk.bf16.mxu0 %vm383_vm1, %v1941_v50  ;;  %12939 = vmatpush3.bf16.msra.mxu0 %v2301_v38  ;;  %v11484_v50 = vld [vmem:[%s15070_s12 + $0x362] sm:$0xff]  ;;  %v17761_v38 = vld [vmem:[#allocation3_spill] sm:$0xff] }
 0x1a4   : > { %14942 = vmatprep.subr.msk.bf16.mxu0 %vm432_vm0, %v14989_v6  ;;  %v2237_v6 = vpack.c.bf16 %v16157_v5, %v11068_v33  ;;  %v11525_v33 = vld [vmem:[%s15070_s12 + $0x2e7] sm:$0xff] }
 0x1a7   : > { %13203 = vmatmul.mubr.msk.bf16.gmra.mrb[8].mxu1 %vm383_vm1, %v16031_v61 }
 0x1a8   : > { %13206 = vmatprep.mubr.msk.bf16.mxu1 %vm383_vm1, %v16034_v43 }
 0x1aa   : > { %12911 = vmatmul.mubr.msk.bf16.gmra.mrb[36].mxu0 %vm383_vm1, %v15792_v56  ;;  %v4589_v56 = vpack.c.bf16 %v15828_v1, %v11456_v46  ;;  %v11460_v1 = vld [vmem:[%s15070_s12 + $0x1e2] sm:$0xff] }
 0x1ab   : > { %12914 = vmatprep.mubr.msk.bf16.mxu0 %vm383_vm1, %v15814_v32  ;;  %v4949_v32 = vsel %vm432_vm0, %v15954_v9, 0  ;;  %v4591_v0 = vpack.c.bf16 %v15850_v18, %v11460_v1  ;;  %v4592_v9 = vpack.c.bf16 %v15854_v28, %v11462_v27  ;;  %v4594_v18 = vpack.c.bf16 %v15876_v57, %v15892_v49  ;;  %v11475_v57 = vld [vmem:[%s15070_s12 + $0x2ca] sm:$0xff] }
 0x1ac   : > { %v4595_v28 = vpack.c.bf16 %v15897_v20, %v15901_v21  ;;  %v4598_v21 = vpack.c.bf16 %v11475_v57, %v15931_v17  ;;  %v11062_v17 = vld [vmem:[%s15070_s12 + $0x144] sm:$0xff] }
 0x1ad   : > { %v2234_v60 = vpack.c.bf16 %v11063_v8, %v11062_v17  ;;  %v11070_v46 = vld [vmem:[%s15070_s12 + $0x1c4] sm:$0xff]  ;;  %v16217_v17 = vld [vmem:[%s15070_s12 + $0x24c] sm:$0xff] }
 0x1ae   : > { %v11505_v27 = vld [vmem:[%s15070_s12 + $0x1a7] sm:$0xff] }
 0x1af   : > { %13207 = vmatmul.mubr.msk.bf16.gmra.mrb[12].mxu1 %vm383_vm1, %v16045_v2 }
 0x1b0   : > { %13212 = vmatprep.mubr.msk.bf16.mxu1 %vm383_vm1, %v4588_v47  ;;  %v11503_v47 = vld [vmem:[%s15070_s12 + $0x187] sm:$0xff] }
 0x1b2   : > { %12915 = vmatmul.mubr.msk.bf16.gmra.mrb[40].mxu0 %vm383_vm1, %v15817_v48  ;;  %v11464_v48 = vld [vmem:[%s15070_s12 + $0x222] sm:$0xff] }
 0x1b3   : > { %12918 = vmatprep.mubr.msk.bf16.mxu0 %vm383_vm1, %v15836_v36  ;;  %v4593_v36 = vpack.c.bf16 %v15872_v54, %v11464_v48  ;;  %v11040_v54 = vld [vmem:[%s15070_s12 + $0x292] sm:$0xff]  ;;  %v11507_v48 = vld [vmem:[%s15070_s12 + $0x1c7] sm:$0xff] }
 0x1b7   : > { %13213 = vmatmul.mubr.msk.bf16.vlgmr.msra.gmra.mrb[16].mxu1 %vm383_vm1, %v4589_v56  ;;  %v4603_v56 = vpack.c.bf16 %v11485_v42, %v11484_v50  ;;  %v16264_v50 = vld [vmem:[%s15070_s12 + $0x30c] sm:$0xff] }
 0x1b8   : > { %13245 = vmatpush3.bf16.msra.mxu1 %v4949_v32  ;;  %13216 = vmatprep.mubr.msk.bf16.mxu1 %vm383_vm1, %v4590_v34  ;;  %v16161_v34 = vld [vmem:[%s15070_s12 + $0x1cc] sm:$0xff]  ;;  %v16163_v32 = vpack.c.bf16 %v11504_v51, %v11503_v47 }
 0x1b9   : > { %14952 = vmatprep.subr.msk.bf16.mxu1 %vm432_vm0, %v16073_v10  ;;  %v2238_v1 = vpack.c.bf16 %v16161_v34, %v11070_v46  ;;  %v11526_v47 = vld [vmem:[%s15070_s12 + $0x2ef] sm:$0xff]  ;;  %v11527_v51 = vld [vmem:[%s15070_s12 + $0x307] sm:$0xff] }
 0x1ba   : > { %12919 = vmatmul.mubr.msk.bf16.gmra.mrb[44].mxu0 %vm383_vm1, %v15839_v45  ;;  %v11471_v45 = vld [vmem:[%s15070_s12 + $0x28a] sm:$0xff] }
 0x1bb   : > { %12922 = vmatprep.mubr.msk.bf16.mxu0 %vm383_vm1, %v15858_v52  ;;  %v4596_v52 = vpack.c.bf16 %v11471_v45, %v15915_v53  ;;  %v1952_v20 = vpack.c.bf16 %v11040_v54, %v11471_v45  ;;  %v11476_v53 = vld [vmem:[%s15070_s12 + $0x2e2] sm:$0xff]  ;;  %v16186_v54 = vld [vmem:[%s15070_s12 + $0x20c] sm:$0xff] }
 0x1bc   : > { %v11074_v45 = vld [vmem:[%s15070_s12 + $0x204] sm:$0xff] }
 0x1bd   : > { %v11092_v46 = vld [vmem:[%s15070_s12 + $0x324] sm:$0xff] }
 0x1bf   : > { %13217 = vmatmul.mubr.msk.bf16.gmra.mrb[20].mxu1 %vm383_vm1, %v4591_v0  ;;  %v11506_v0 = vld [vmem:[%s15070_s12 + $0x1af] sm:$0xff] }
 0x1c0   : > { %13220 = vmatprep.mubr.msk.bf16.mxu1 %vm383_vm1, %v4592_v9  ;;  %v11072_v9 = vld [vmem:[%s15070_s12 + $0x1e4] sm:$0xff] }
 0x1c2   : > { %12923 = vmatmul.mubr.msk.bf16.gmra.mrb[48].mxu0 %vm383_vm1, %v15861_v29  ;;  %v11473_v29 = vld [vmem:[%s15070_s12 + $0x2aa] sm:$0xff] }
 0x1c3   : > { %12926 = vmatprep.mubr.msk.bf16.mxu0 %vm383_vm1, %v15880_v58  ;;  %v11042_v58 = vld [vmem:[%s15070_s12 + $0x2b2] sm:$0xff]  ;;  %v4597_v49 = vpack.c.bf16 %v11473_v29, %v15920_v31 }
 0x1c4   : > { %v11044_v31 = vld [vmem:[%s15070_s12 + $0x2d2] sm:$0xff] }
 0x1c5   : > { %v1954_v63 = vpack.c.bf16 %v11044_v31, %v11475_v57  ;;  %v5243_v57 = vsel %vm432_vm0, %v16073_v10, 0  ;;  %v11076_v10 = vld [vmem:[%s15070_s12 + $0x224] sm:$0xff] }
 0x1c6   : > { %v2241_v26 = vpack.c.bf16 %v16211_v62, %v11076_v10 }
 0x1c7   : > { %13221 = vmatmul.mubr.msk.bf16.gmra.mrb[24].mxu1 %vm383_vm1, %v4593_v36  ;;  %v11508_v36 = vld [vmem:[%s15070_s12 + $0x1cf] sm:$0xff] }
 0x1c8   : > { %13224 = vmatprep.mubr.msk.bf16.mxu1 %vm383_vm1, %v4594_v18  ;;  %v16177_v18 = vld [vmem:[%s15070_s12 + $0x1ec] sm:$0xff] }
 0x1ca   : > { %12927 = vmatmul.mubr.msk.bf16.gmra.mrb[52].mxu0 %vm383_vm1, %v15883_v37  ;;  %v1953_v37 = vpack.c.bf16 %v11042_v58, %v11473_v29  ;;  %v16183_v29 = vpack.c.bf16 %v11508_v36, %v11507_v48  ;;  %v2240_v58 = vpack.c.bf16 %v16186_v54, %v11074_v45  ;;  %v11529_v36 = vld [vmem:[%s15070_s12 + $0x327] sm:$0xff]  ;;  %v11530_v45 = vld [vmem:[%s15070_s12 + $0x32f] sm:$0xff] }
 0x1cb   : > { %12930 = vmatprep.mubr.msk.bf16.mxu0 %vm383_vm1, %v15906_v44  ;;  %v11477_v44 = vld [vmem:[%s15070_s12 + $0x2ea] sm:$0xff] }
 0x1cc   : > { %v4599_v39 = vpack.c.bf16 %v11477_v44, %v11476_v53  ;;  %v11512_v53 = vld [vmem:[%s15070_s12 + $0x20f] sm:$0xff]  ;;  %v11078_v44 = vld [vmem:[%s15070_s12 + $0x244] sm:$0xff] }
 0x1cf   : > { %13225 = vmatmul.mubr.msk.bf16.gmra.mrb[28].mxu1 %vm383_vm1, %v4595_v28  ;;  %v16180_v28 = vpack.c.bf16 %v11506_v0, %v11505_v27  ;;  %v4893_v27 = vpack.c.bf16 %v11526_v47, %v11525_v33  ;;  %v5831_v47 = vsel %vm432_vm0, %v11618_v19, 0 }
 0x1d0   : > { %13228 = vmatprep.mubr.msk.bf16.mxu1 %vm383_vm1, %v4596_v52  ;;  %v2239_v52 = vpack.c.bf16 %v16177_v18, %v11072_v9 }
 0x1d2   : > { %12931 = vmatmul.mubr.msk.bf16.gmra.mrb[56].mxu0 %vm383_vm1, %v1952_v20  ;;  %v11509_v20 = vld [vmem:[%s15070_s12 + $0x1e7] sm:$0xff] }
 0x1d3   : > { %12934 = vmatprep.mubr.msk.bf16.mxu0 %vm383_vm1, %v1953_v37  ;;  %v11511_v37 = vld [vmem:[%s15070_s12 + $0x207] sm:$0xff] }
 0x1d4   : > { %v16219_v8 = vpack.c.bf16 %v11512_v53, %v11511_v37  ;;  %v11533_v53 = vld [vmem:[%s15070_s12 + $0x367] sm:$0xff] }
 0x1d7   : > { %13229 = vmatmul.mubr.msk.bf16.gmra.mrb[0].mxu1 %vm383_vm1, %v4597_v49  ;;  %v16194_v49 = vld [vmem:[%s17707_s1 + $0x22] sm:$0x3] }
 0x1d8   : > { %13232 = vmatprep.mubr.msk.bf16.mxu1 %vm383_vm1, %v4598_v21  ;;  %v11510_v21 = vld [vmem:[%s15070_s12 + $0x1ef] sm:$0xff] }
 0x1d9   : > { %v16213_v31 = vpack.c.bf16 %v11510_v21, %v11509_v20  ;;  %v11532_v20 = vld [vmem:[%s15070_s12 + $0x34f] sm:$0xff]  ;;  %v4895_v21 = vpack.c.bf16 %v11530_v45, %v11529_v36  ;;  %v16392_v36 = vpop.f32.mrb[0].mxu0  ;;  %v5450_v45 = vld [vmem:[%s15070_s12 + $0xc0] sm:$0xff] }
 0x1da   : > { %12935 = vmatmul.mubr.msk.bf16.gmra.mrb[60].mxu0 %vm383_vm1, %v1954_v63  ;;  %v11513_v63 = vld [vmem:[%s15070_s12 + $0x227] sm:$0xff] }
 0x1db   : > { %12940 = vmatprep.mubr.msk.bf16.mxu0 %vm383_vm1, %v2234_v60  ;;  %v11080_v60 = vld [vmem:[%s15070_s12 + $0x264] sm:$0xff] }
 0x1dc   : > { %v2243_v14 = vpack.c.bf16 %v16232_v15, %v11080_v60  ;;  %v11557_v60 = vld [vmem:[%s15070_s12 + $0x1d4] sm:$0xff] }
 0x1dd   : > { %v5178_v7 = vpack.c.bf16 %v11557_v60, %v16161_v34 }
 0x1df   : > { %13233 = vmatmul.mubr.msk.bf16.gmra.mrb[4].mxu1 %vm383_vm1, %v4599_v39  ;;  %v2242_v39 = vpack.c.bf16 %v16217_v17, %v11078_v44  ;;  %v11534_v44 = vld [vmem:[%s15070_s12 + $0x36f] sm:$0xff] }
 0x1e0   : > { %13236 = vmatprep.mubr.msk.bf16.mxu1 %vm383_vm1, %v4600_v59  ;;  %v11514_v59 = vld [vmem:[%s15070_s12 + $0x22f] sm:$0xff] }
 0x1e1   : > { %v16234_v11 = vpack.c.bf16 %v11514_v59, %v11513_v63  ;;  %v11555_v59 = vld [vmem:[%s15070_s12 + $0x1b4] sm:$0xff] }
 0x1e2   : > { %12941 = vmatmul.mubr.msk.bf16.vlgmr.msra.gmra.mrb[32].mxu0 %vm383_vm1, %v2235_v3  ;;  %v11524_v3 = vld [vmem:[%s15070_s12 + $0x2cf] sm:$0xff] }
 0x1e3   : > { %12944 = vmatprep.mubr.msk.bf16.mxu0 %vm383_vm1, %v2236_v22  ;;  %12973 = vmatpush3.bf16.msra.mxu0 %v17761_v38  ;;  %v11528_v38 = vld [vmem:[%s15070_s12 + $0x30f] sm:$0xff] }
 0x1e4   : > { %v4894_v9 = vpack.c.bf16 %v11528_v38, %v11527_v51  ;;  %v16378_v51 = vld [vmem:[%s17707_s1 + $0x26] sm:$0x3]  ;;  %v5445_v38 = vld [vmem:[%s15070_s12 + $0x68] sm:$0xff] }
 0x1e7   : > { %13237 = vmatmul.mubr.msk.bf16.gmra.mrb[8].mxu1 %vm383_vm1, %v4601_v41  ;;  %v11522_v41 = vld [vmem:[%s15070_s12 + $0x2af] sm:$0xff] }
 0x1e8   : > { %13240 = vmatprep.mubr.msk.bf16.mxu1 %vm383_vm1, %v4602_v40  ;;  %v11090_v40 = vld [vmem:[%s15070_s12 + $0x304] sm:$0xff] }
 0x1ea   : > { %12945 = vmatmul.mubr.msk.bf16.gmra.mrb[36].mxu0 %vm383_vm1, %v2237_v6  ;;  %v11112_v6 = vld [vmem:[%s15070_s12 + $0x14f] sm:$0xff] }
 0x1eb   : > { %12948 = vmatprep.mubr.msk.bf16.mxu0 %vm383_vm1, %v2238_v1  ;;  %v16279_v1 = vld [vmem:[%s15070_s12 + $0x32c] sm:$0xff] }
 0x1ec   : > { %v2249_v0 = vpack.c.bf16 %v16279_v1, %v11092_v46  ;;  %v5444_v46 = vld [vmem:[%s15070_s12 + $0x60] sm:$0xff] }
 0x1ef   : > { %13241 = vmatmul.mubr.msk.bf16.gmra.mrb[12].mxu1 %vm383_vm1, %v4603_v56  ;;  %v11111_v56 = vld [vmem:[%s15070_s12 + $0x147] sm:$0xff] }
 0x1f0   : > { %13246 = vmatprep.mubr.msk.bf16.mxu1 %vm383_vm1, %v16163_v32  ;;  %v16282_v48 = vpack.c.bf16 %v11112_v6, %v11111_v56  ;;  %v5446_v56 = vld [vmem:[%s15070_s12 + $0x80] sm:$0xff]  ;;  %v5447_v6 = vld [vmem:[%s15070_s12 + $0x88] sm:$0xff] }
 0x1f2   : > { %12949 = vmatmul.mubr.msk.bf16.gmra.mrb[40].mxu0 %vm383_vm1, %v2239_v52  ;;  %v11113_v52 = vld [vmem:[%s15070_s12 + $0x167] sm:$0xff] }
 0x1f3   : > { %12952 = vmatprep.mubr.msk.bf16.mxu0 %vm383_vm1, %v2240_v58  ;;  %v11531_v58 = vld [vmem:[%s15070_s12 + $0x347] sm:$0xff] }
 0x1f4   : > { %v4896_v37 = vpack.c.bf16 %v11532_v20, %v11531_v58  ;;  %v16397_v20 = vpop.f32.mrb[1].mxu0 }
 0x1f7   : > { %13247 = vmatmul.mubr.msk.bf16.vlgmr.msra.gmra.mrb[16].mxu1 %vm383_vm1, %v16180_v28 }
 0x1f8   : > { %13279 = vmatpush3.bf16.msra.mxu1 %v5243_v57  ;;  %13250 = vmatprep.mubr.msk.bf16.mxu1 %vm383_vm1, %v16183_v29  ;;  %v11114_v57 = vld [vmem:[%s15070_s12 + $0x16f] sm:$0xff] }
 0x1f9   : > { %14953 = vmatprep.subr.msk.bf16.mxu1 %vm432_vm0, %v16194_v49  ;;  %v16295_v10 = vpack.c.bf16 %v11114_v57, %v11113_v52  ;;  %v5451_v52 = vld [vmem:[%s15070_s12 + $0xc8] sm:$0xff] }
 0x1fa   : > { %12953 = vmatmul.mubr.msk.bf16.gmra.mrb[44].mxu0 %vm383_vm1, %v2241_v26  ;;  %v11553_v26 = vld [vmem:[%s15070_s12 + $0x194] sm:$0xff]  ;;  %v5476_v58 = vpack.c.bf16 %v5451_v52, %v5450_v45 }
 0x1fb   : > { %12956 = vmatprep.mubr.msk.bf16.mxu0 %vm383_vm1, %v2242_v39  ;;  %v4897_v39 = vpack.c.bf16 %v11534_v44, %v11533_v53  ;;  %v5176_v63 = vpack.c.bf16 %v11553_v26, %v16142_v23  ;;  %v5537_v23 = vsel %vm432_vm0, %v16194_v49, 0  ;;  %v16402_v53 = vpop.f32.mrb[2].mxu0  ;;  %v5454_v44 = vld [vmem:[%s15070_s12 + $0x100] sm:$0xff]  ;;  %v5455_v26 = vld [vmem:[%s15070_s12 + $0x108] sm:$0xff] }
 0x1fc   : > { %v16412_v60 = vpack.c.bf16 %v5455_v26, %v5454_v44  ;;  %v5736_v44 = vld [vmem:[%s15070_s12 + $0x47] sm:$0xff]  ;;  %v5737_v26 = vld [vmem:[%s15070_s12 + $0x4f] sm:$0xff] }
 0x1ff   : > { %13251 = vmatmul.mubr.msk.bf16.gmra.mrb[20].mxu1 %vm383_vm1, %v16213_v31 }
 0x200   : > { %13254 = vmatprep.mubr.msk.bf16.mxu1 %vm383_vm1, %v16219_v8 }
 0x202   : > { %12957 = vmatmul.mubr.msk.bf16.gmra.mrb[48].mxu0 %vm383_vm1, %v2243_v14  ;;  %v5177_v14 = vpack.c.bf16 %v11555_v59, %v16157_v5  ;;  %v11561_v5 = vld [vmem:[%s15070_s12 + $0x214] sm:$0xff] }
 0x203   : > { %12960 = vmatprep.mubr.msk.bf16.mxu0 %vm383_vm1, %v15994_v13  ;;  %v11523_v13 = vld [vmem:[%s15070_s12 + $0x2c7] sm:$0xff]  ;;  %v5180_v49 = vpack.c.bf16 %v11561_v5, %v16186_v54  ;;  %v11577_v54 = vld [vmem:[%s15070_s12 + $0x314] sm:$0xff] }
 0x204   : > { %v4892_v42 = vpack.c.bf16 %v11524_v3, %v11523_v13  ;;  %v5438_v13 = vld [vmem:[%s15070_s12] sm:$0xff]  ;;  %v5439_v3 = vld [vmem:[%s15070_s12 + $0x8] sm:$0xff] }
 0x205   : > { %v5459_v5 = vld [vmem:[%s15070_s12 + $0x148] sm:$0xff] }
 0x207   : > { %13255 = vmatmul.mubr.msk.bf16.gmra.mrb[24].mxu1 %vm383_vm1, %v16234_v11 }
 0x208   : > { %13258 = vmatprep.mubr.msk.bf16.mxu1 %vm383_vm1, %v15709_v16  ;;  %v11088_v16 = vld [vmem:[%s15070_s12 + $0x2e4] sm:$0xff] }
 0x20a   : > { %12961 = vmatmul.mubr.msk.bf16.gmra.mrb[52].mxu0 %vm383_vm1, %v15996_v55  ;;  %v4891_v55 = vpack.c.bf16 %v11522_v41, %v11521_v35  ;;  %v11563_v35 = vld [vmem:[%s15070_s12 + $0x234] sm:$0xff] }
 0x20b   : > { %12964 = vmatprep.mubr.msk.bf16.mxu0 %vm383_vm1, %v16017_v4  ;;  %v2248_v4 = vpack.c.bf16 %v16264_v50, %v11090_v40  ;;  %v5181_v41 = vpack.c.bf16 %v11563_v35, %v16211_v62 }
 0x20f   : > { %13259 = vmatmul.mubr.msk.bf16.gmra.mrb[28].mxu1 %vm383_vm1, %v15727_v12  ;;  %v16260_v12 = vld [vmem:[%s15070_s12 + $0x2ec] sm:$0xff] }
 0x210   : > { %13262 = vmatprep.mubr.msk.bf16.mxu1 %vm383_vm1, %v4890_v25  ;;  %v2247_v22 = vpack.c.bf16 %v16260_v12, %v11088_v16  ;;  %v11559_v25 = vld [vmem:[%s15070_s12 + $0x1f4] sm:$0xff] }
 0x211   : > { %v5179_v34 = vpack.c.bf16 %v11559_v25, %v16177_v18  ;;  %v5183_v18 = vpack.c.bf16 %v16011_v24, %v16232_v15  ;;  %v5188_v24 = vpack.c.bf16 %v11577_v54, %v16264_v50  ;;  %v11583_v16 = vld [vmem:[%s15070_s12 + $0x374] sm:$0xff]  ;;  %v5442_v50 = vld [vmem:[%s15070_s12 + $0x40] sm:$0xff] }
 0x212   : > { %12965 = vmatmul.mubr.msk.bf16.gmra.mrb[56].mxu0 %vm383_vm1, %v2247_v22  ;;  %v5441_v22 = vld [vmem:[%s15070_s12 + $0x28] sm:$0xff]  ;;  %v5458_v25 = vld [vmem:[%s15070_s12 + $0x140] sm:$0xff] }
 0x213   : > { %12968 = vmatprep.mubr.msk.bf16.mxu0 %vm383_vm1, %v2248_v4 }
 0x217   : > { %13263 = vmatmul.mubr.msk.bf16.gmra.mrb[0].mxu1 %vm383_vm1, %v4891_v55  ;;  %v5440_v55 = vld [vmem:[%s15070_s12 + $0x20] sm:$0xff] }
 0x218   : > { %13266 = vmatprep.mubr.msk.bf16.mxu1 %vm383_vm1, %v4892_v42  ;;  %v5443_v42 = vld [vmem:[%s15070_s12 + $0x48] sm:$0xff]  ;;  %v5471_v4 = vpack.c.bf16 %v5441_v22, %v5440_v55 }
 0x219   : > { %v5472_v33 = vpack.c.bf16 %v5443_v42, %v5442_v50 }
 0x21a   : > { %12969 = vmatmul.mubr.msk.bf16.gmra.mrb[60].mxu0 %vm383_vm1, %v2249_v0  ;;  %v5448_v0 = vld [vmem:[%s15070_s12 + $0xa0] sm:$0xff] }
 0x21b   : > { %12974 = vmatprep.mubr.msk.bf16.mxu0 %vm383_vm1, %v16282_v48 }
 0x21f   : > { %13267 = vmatmul.mubr.msk.bf16.gmra.mrb[4].mxu1 %vm383_vm1, %v4893_v27  ;;  %v5474_v27 = vpack.c.bf16 %v5447_v6, %v5446_v56 }
 0x220   : > { %13270 = vmatprep.mubr.msk.bf16.mxu1 %vm383_vm1, %v4894_v9  ;;  %v5449_v9 = vld [vmem:[%s15070_s12 + $0xa8] sm:$0xff] }
 0x221   : > { %v5475_v57 = vpack.c.bf16 %v5449_v9, %v5448_v0 }
 0x222   : > { %12975 = vmatmul.mubr.msk.bf16.vlgmr.msra.gmra.mrb[32].mxu0 %vm383_vm1, %v16295_v10 }
 0x223   : > { %12978 = vmatprep.mubr.msk.bf16.mxu0 %vm383_vm1, %v16163_v32 }
 0x227   : > { %13271 = vmatmul.mubr.msk.bf16.gmra.mrb[8].mxu1 %vm383_vm1, %v4895_v21  ;;  %v5452_v21 = vld [vmem:[%s15070_s12 + $0xe0] sm:$0xff] }
 0x228   : > { %13274 = vmatprep.mubr.msk.bf16.mxu1 %vm383_vm1, %v4896_v37  ;;  %v5453_v37 = vld [vmem:[%s15070_s12 + $0xe8] sm:$0xff] }
 0x229   : > { %v16410_v59 = vpack.c.bf16 %v5453_v37, %v5452_v21  ;;  %v5735_v21 = vld [vmem:[%s15070_s12 + $0x2f] sm:$0xff] }
 0x22a   : > { %12979 = vmatmul.mubr.msk.bf16.gmra.mrb[36].mxu0 %vm383_vm1, %v16180_v28 }
 0x22b   : > { %12982 = vmatprep.mubr.msk.bf16.mxu0 %vm383_vm1, %v16183_v29 }
 0x22f   : > { %13275 = vmatmul.mubr.msk.bf16.gmra.mrb[12].mxu1 %vm383_vm1, %v4897_v39  ;;  %v16406_v39 = vpop.f32.mrb[3].mxu0 }
 0x230   : > { %13280 = vmatprep.mubr.msk.bf16.mxu1 %vm383_vm1, %v5176_v63  ;;  %v16408_v63 = vpop.f32.mrb[4].mxu0 }
 0x232   : > { %12983 = vmatmul.mubr.msk.bf16.gmra.mrb[40].mxu0 %vm383_vm1, %v16213_v31 }
 0x233   : > { %12986 = vmatprep.mubr.msk.bf16.mxu0 %vm383_vm1, %v16219_v8  ;;  %v5182_v8 = vpack.c.bf16 %v16005_v30, %v16217_v17  ;;  %v11575_v30 = vld [vmem:[%s15070_s12 + $0x2f4] sm:$0xff] }
 0x234   : > { %v5187_v62 = vpack.c.bf16 %v11575_v30, %v16260_v12  ;;  %v11581_v17 = vld [vmem:[%s15070_s12 + $0x354] sm:$0xff]  ;;  %v5470_v12 = vpack.c.bf16 %v5439_v3, %v5438_v13  ;;  %v5461_v30 = vld [vmem:[%s15070_s12 + $0x168] sm:$0xff]  ;;  %v5466_v3 = vld [vmem:[%s15070_s12 + $0x1c0] sm:$0xff] }
 0x237   : > { %13281 = vmatmul.mubr.msk.bf16.vlgmr.msra.gmra.mrb[16].mxu1 %vm383_vm1, %v5177_v14  ;;  %v16416_v14 = vpop.f32.mrb[5].mxu0 }
 0x238   : > { %13313 = vmatpush3.bf16.msra.mxu1 %v5537_v23  ;;  %13284 = vmatprep.mubr.msk.bf16.mxu1 %vm383_vm1, %v5178_v7  ;;  %v5456_v7 = vld [vmem:[%s15070_s12 + $0x120] sm:$0xff]  ;;  %v5457_v23 = vld [vmem:[%s15070_s12 + $0x128] sm:$0xff] }
 0x239   : > { %14954 = vmatprep.subr.msk.bf16.mxu1 %vm432_vm0, %v11618_v19  ;;  %v16422_v19 = vpop.f32.mrb[6].mxu0  ;;  %v16430_v35 = vpack.c.bf16 %v5457_v23, %v5456_v7 }
 0x23a   : > { %12987 = vmatmul.mubr.msk.bf16.gmra.mrb[44].mxu0 %vm383_vm1, %v16234_v11  ;;  %v11582_v11 = vld [vmem:[%s15070_s12 + $0x36c] sm:$0xff]  ;;  %17762 = vst [vmem:[#allocation5_spill] sm:$0xff] %v16422_v19 }
 0x23b   : > { %v5191_v40 = vpack.c.bf16 %v11583_v16, %v11582_v11  ;;  %v5464_v11 = vld [vmem:[%s15070_s12 + $0x1a0] sm:$0xff]  ;;  %v5465_v16 = vld [vmem:[%s15070_s12 + $0x1a8] sm:$0xff] }
 0x23c   : > { %v16470_v22 = vpack.c.bf16 %v5465_v16, %v5464_v11  ;;  %v16526_v11 = vld [vmem:[%s17707_s1 + $0x28] sm:$0x3] }
 0x23d   : > { %v5738_v16 = vld [vmem:[%s15070_s12 + $0x67] sm:$0xff] }
 0x23f   : > { %13285 = vmatmul.mubr.msk.bf16.gmra.mrb[20].mxu1 %vm383_vm1, %v5179_v34  ;;  %v16426_v34 = vpop.f32.mrb[7].mxu0 }
 0x240   : > { %13288 = vmatprep.mubr.msk.bf16.mxu1 %vm383_vm1, %v5180_v49  ;;  %17763 = vst [vmem:[#allocation6_spill] sm:$0xff] %v16426_v34  ;;  %v16428_v49 = vpop.f32.mrb[8].mxu0 }
 0x241   : > { %17764 = vst [vmem:[#allocation4_spill] sm:$0xff] %v16428_v49  ;;  %v6055_v49 = vld [vmem:[%s15070_s12 + $0x1d6] sm:$0xff] }
 0x247   : > { %13289 = vmatmul.mubr.msk.bf16.gmra.mrb[24].mxu1 %vm383_vm1, %v5181_v41  ;;  %v16432_v41 = vpack.c.bf16 %v5459_v5, %v5458_v25 }
 0x248   : > { %13292 = vmatprep.mubr.msk.bf16.mxu1 %vm383_vm1, %v5182_v8  ;;  %v16436_v8 = vpop.f32.mrb[9].mxu0 }
 0x249   : > { %17765 = vst [vmem:[#allocation7_spill] sm:$0xff] %v16436_v8  ;;  %v16442_v54 = vpop.f32.mrb[10].mxu0  ;;  %v6054_v8 = vld [vmem:[%s15070_s12 + $0x1ce] sm:$0xff] }
 0x24a   : > { %17766 = vst [vmem:[#allocation8_spill] sm:$0xff] %v16442_v54  ;;  %v6053_v54 = vld [vmem:[%s15070_s12 + $0x1b6] sm:$0xff]  ;;  %v16699_v19 = vpack.c.bf16 %v6055_v49, %v6054_v8  ;;  %v11782_v8 = vld [vmem:[%s17707_s1 + $0x2c] sm:$0x3] }
 0x24f   : > { %13293 = vmatmul.mubr.msk.bf16.gmra.mrb[28].mxu1 %vm383_vm1, %v5183_v18  ;;  %v5460_v18 = vld [vmem:[%s15070_s12 + $0x160] sm:$0xff] }
 0x250   : > { %13296 = vmatprep.mubr.msk.bf16.mxu1 %vm383_vm1, %v16031_v61  ;;  %v11579_v61 = vld [vmem:[%s15070_s12 + $0x334] sm:$0xff] }
 0x257   : > { %13297 = vmatmul.mubr.msk.bf16.gmra.mrb[0].mxu1 %vm383_vm1, %v16034_v43  ;;  %v11580_v43 = vld [vmem:[%s15070_s12 + $0x34c] sm:$0xff] }
 0x258   : > { %13300 = vmatprep.mubr.msk.bf16.mxu1 %vm383_vm1, %v16045_v2  ;;  %v5189_v2 = vpack.c.bf16 %v11579_v61, %v16279_v1  ;;  %v5190_v15 = vpack.c.bf16 %v11581_v17, %v11580_v43  ;;  %v5473_v1 = vpack.c.bf16 %v5445_v38, %v5444_v46  ;;  %v16446_v61 = vpop.f32.mrb[11].mxu0  ;;  %v16450_v17 = vpack.c.bf16 %v5461_v30, %v5460_v18  ;;  %v5732_v46 = vld [vmem:[%s15070_s12 + $0x7] sm:$0xff]  ;;  %v5733_v38 = vld [vmem:[%s15070_s12 + $0xf] sm:$0xff] }
 0x259   : > { %17767 = vst [vmem:[#allocation9_spill] sm:$0xff] %v16446_v61  ;;  %v16448_v43 = vpop.f32.mrb[12].mxu0  ;;  %v5764_v0 = vpack.c.bf16 %v5733_v38, %v5732_v46  ;;  %v5766_v18 = vpack.c.bf16 %v5737_v26, %v5736_v44  ;;  %v5742_v46 = vld [vmem:[%s15070_s12 + $0xa7] sm:$0xff]  ;;  %v5743_v38 = vld [vmem:[%s15070_s12 + $0xaf] sm:$0xff] }
 0x25a   : > { %17768 = vst [vmem:[#allocation10_spill] sm:$0xff] %v16448_v43  ;;  %v5746_v26 = vld [vmem:[%s15070_s12 + $0xe7] sm:$0xff]  ;;  %v6051_v43 = vld [vmem:[%s15070_s12 + $0x196] sm:$0xff] }
 0x25f   : > { %13301 = vmatmul.mubr.msk.bf16.gmra.mrb[4].mxu1 %vm383_vm1, %v5187_v62  ;;  %v5462_v62 = vld [vmem:[%s15070_s12 + $0x180] sm:$0xff] }
 0x260   : > { %13304 = vmatprep.mubr.msk.bf16.mxu1 %vm383_vm1, %v5188_v24  ;;  %v5463_v24 = vld [vmem:[%s15070_s12 + $0x188] sm:$0xff] }
 0x267   : > { %13305 = vmatmul.mubr.msk.bf16.gmra.mrb[8].mxu1 %vm383_vm1, %v5189_v2  ;;  %v16452_v2 = vpack.c.bf16 %v5463_v24, %v5462_v62  ;;  %v6125_v62 = vsel %vm432_vm0, %v16378_v51, 0 }
 0x268   : > { %13308 = vmatprep.mubr.msk.bf16.mxu1 %vm383_vm1, %v5190_v15  ;;  %v16456_v15 = vpop.f32.mrb[13].mxu0 }
 0x269   : > { %17769 = vst [vmem:[#allocation11_spill] sm:$0xff] %v16456_v15  ;;  %v16462_v13 = vpop.f32.mrb[14].mxu0  ;;  %v6048_v15 = vld [vmem:[%s15070_s12 + $0x16e] sm:$0xff] }
 0x26a   : > { %17770 = vst [vmem:[#allocation12_spill] sm:$0xff] %v16462_v13 }
 0x26f   : > { %13309 = vmatmul.mubr.msk.bf16.gmra.mrb[12].mxu1 %vm383_vm1, %v5191_v40  ;;  %v5467_v40 = vld [vmem:[%s15070_s12 + $0x1c8] sm:$0xff] }
 0x270   : > { %13314 = vmatprep.mubr.msk.bf16.mxu1 %vm383_vm1, %v5470_v12  ;;  %v16466_v12 = vpop.f32.mrb[15].mxu0  ;;  %v16472_v50 = vpack.c.bf16 %v5467_v40, %v5466_v3  ;;  %v5739_v3 = vld [vmem:[%s15070_s12 + $0x6f] sm:$0xff]  ;;  %v5740_v40 = vld [vmem:[%s15070_s12 + $0x87] sm:$0xff] }
 0x271   : > { %17771 = vst [vmem:[#allocation13_spill] sm:$0xff] %v16466_v12  ;;  %v16468_v55 = vpop.f32.mrb[16].mxu0 }
 0x272   : > { %17772 = vst [vmem:[#allocation15_spill] sm:$0xff] %v16468_v55  ;;  %v16476_v42 = vpop.f32.mrb[17].mxu0 }
 0x273   : > { %17773 = vst [vmem:[#allocation16_spill] sm:$0xff] %v16476_v42 }
 0x277   : > { %13315 = vmatmul.mubr.msk.bf16.vlgmr.msra.gmra.mrb[16].mxu1 %vm383_vm1, %v5471_v4  ;;  %v5468_v4 = vld [vmem:[%s15070_s12 + $0x1e0] sm:$0xff] }
 0x278   : > { %13347 = vmatpush3.bf16.msra.mxu1 %v5831_v47  ;;  %13318 = vmatprep.mubr.msk.bf16.mxu1 %vm383_vm1, %v5472_v33  ;;  %v5469_v33 = vld [vmem:[%s15070_s12 + $0x1e8] sm:$0xff]  ;;  %v16482_v47 = vpop.f32.mrb[18].mxu0 }
 0x279   : > { %14955 = vmatprep.subr.msk.bf16.mxu1 %vm432_vm0, %v16378_v51  ;;  %17774 = vst [vmem:[#allocation18_spill] sm:$0xff] %v16482_v47  ;;  %v16486_v56 = vpop.f32.mrb[19].mxu0  ;;  %v5741_v51 = vld [vmem:[%s15070_s12 + $0x8f] sm:$0xff] }
 0x27a   : > { %17775 = vst [vmem:[#allocation14_spill] sm:$0xff] %v16486_v56  ;;  %v16488_v6 = vpop.f32.mrb[20].mxu0  ;;  %v6047_v47 = vld [vmem:[%s15070_s12 + $0x156] sm:$0xff] }
 0x27b   : > { %17776 = vst [vmem:[#allocation17_spill] sm:$0xff] %v16488_v6  ;;  %v6043_v6 = vld [vmem:[%s15070_s12 + $0x116] sm:$0xff] }
 0x27f   : > { %13319 = vmatmul.mubr.msk.bf16.gmra.mrb[20].mxu1 %vm383_vm1, %v5473_v1  ;;  %v16490_v1 = vpack.c.bf16 %v5469_v33, %v5468_v4  ;;  %v5767_v4 = vpack.c.bf16 %v5739_v3, %v5738_v16  ;;  %v5768_v33 = vpack.c.bf16 %v5741_v51, %v5740_v40  ;;  %v5750_v40 = vld [vmem:[%s15070_s12 + $0x127] sm:$0xff]  ;;  %v5751_v51 = vld [vmem:[%s15070_s12 + $0x12f] sm:$0xff] }
 0x280   : > { %13322 = vmatprep.mubr.msk.bf16.mxu1 %vm383_vm1, %v5474_v27  ;;  %v16492_v27 = vpop.f32.mrb[21].mxu0 }
 0x281   : > { %17777 = vst [vmem:[#allocation3_spill] sm:$0xff] %v16492_v27  ;;  %v16494_v9 = vpop.f32.mrb[22].mxu0  ;;  %v6042_v27 = vld [vmem:[%s15070_s12 + $0x10e] sm:$0xff] }
 0x282   : > { %17778 = vst [vmem:[#allocation19_spill] sm:$0xff] %v16494_v9  ;;  %v16496_v45 = vpop.f32.mrb[23].mxu0 }
 0x283   : > { %17779 = vst [vmem:[#allocation20_spill] sm:$0xff] %v16496_v45  ;;  %v16498_v52 = vpop.f32.mrb[24].mxu0 }
 0x284   : > { %17780 = vst [vmem:[#allocation21_spill] sm:$0xff] %v16498_v52  ;;  %v6039_v52 = vld [vmem:[%s15070_s12 + $0xd6] sm:$0xff] }
 0x287   : > { %13323 = vmatmul.mubr.msk.bf16.gmra.mrb[24].mxu1 %vm383_vm1, %v5475_v57  ;;  %v16502_v57 = vpop.f32.mrb[25].mxu0 }
 0x288   : > { %13326 = vmatprep.mubr.msk.bf16.mxu1 %vm383_vm1, %v5476_v58  ;;  %17781 = vst [vmem:[#allocation22_spill] sm:$0xff] %v16502_v57  ;;  %v5734_v58 = vld [vmem:[%s15070_s12 + $0x27] sm:$0xff]  ;;  %v16507_v37 = vpop.f32.mrb[26].mxu0 }
 0x289   : > { %17782 = vst [vmem:[#allocation23_spill] sm:$0xff] %v16507_v37  ;;  %v16511_v7 = vpop.f32.mrb[27].mxu0  ;;  %v5765_v25 = vpack.c.bf16 %v5735_v21, %v5734_v58  ;;  %v5745_v58 = vld [vmem:[%s15070_s12 + $0xcf] sm:$0xff]  ;;  %v5769_v21 = vpack.c.bf16 %v5743_v38, %v5742_v46 }
 0x28a   : > { %17783 = vst [vmem:[#allocation24_spill] sm:$0xff] %v16511_v7  ;;  %v16513_v23 = vpop.f32.mrb[28].mxu0  ;;  %v6037_v37 = vld [vmem:[%s15070_s12 + $0xb6] sm:$0xff]  ;;  %v6038_v57 = vld [vmem:[%s15070_s12 + $0xce] sm:$0xff] }
 0x28b   : > { %17784 = vst [vmem:[#allocation25_spill] sm:$0xff] %v16513_v23  ;;  %v16515_v5 = vpop.f32.mrb[29].mxu0 }
 0x28c   : > { %17785 = vst [vmem:[#allocation26_spill] sm:$0xff] %v16515_v5  ;;  %v16517_v30 = vpop.f32.mrb[30].mxu0 }
 0x28d   : > { %17786 = vst [vmem:[#allocation27_spill] sm:$0xff] %v16517_v30  ;;  %v16521_v24 = vpop.f32.mrb[31].mxu0  ;;  %v16609_v30 = vld [vmem:[%s17707_s1 + $0x2a] sm:$0x3] }
 0x28e   : > { %17787 = vst [vmem:[#allocation28_spill] sm:$0xff] %v16521_v24  ;;  %v6713_v49 = vsel %vm432_vm0, %v16609_v30, 0 }
 0x28f   : > { %13327 = vmatmul.mubr.msk.bf16.gmra.mrb[28].mxu1 %vm383_vm1, %v16410_v59 }
 0x290   : > { %13330 = vmatprep.mubr.msk.bf16.mxu1 %vm383_vm1, %v16412_v60 }
 0x297   : > { %13331 = vmatmul.mubr.msk.bf16.gmra.mrb[0].mxu1 %vm383_vm1, %v16430_v35 }
 0x298   : > { %13334 = vmatprep.mubr.msk.bf16.mxu1 %vm383_vm1, %v16432_v41 }
 0x29f   : > { %13335 = vmatmul.mubr.msk.bf16.gmra.mrb[4].mxu1 %vm383_vm1, %v16450_v17 }
 0x2a0   : > { %13338 = vmatprep.mubr.msk.bf16.mxu1 %vm383_vm1, %v16452_v2 }
 0x2a7   : > { %13339 = vmatmul.mubr.msk.bf16.gmra.mrb[8].mxu1 %vm383_vm1, %v16470_v22 }
 0x2a8   : > { %13342 = vmatprep.mubr.msk.bf16.mxu1 %vm383_vm1, %v16472_v50 }
 0x2af   : > { %13343 = vmatmul.mubr.msk.bf16.gmra.mrb[12].mxu1 %vm383_vm1, %v16490_v1 }
 0x2b0   : > { %13348 = vmatprep.mubr.msk.bf16.mxu1 %vm383_vm1, %v5764_v0  ;;  %v5744_v0 = vld [vmem:[%s15070_s12 + $0xc7] sm:$0xff] }
 0x2b1   : > { %v5770_v44 = vpack.c.bf16 %v5745_v58, %v5744_v0 }
 0x2b7   : > { %13349 = vmatmul.mubr.msk.bf16.vlgmr.msra.gmra.mrb[16].mxu1 %vm383_vm1, %v5765_v25  ;;  %v5747_v25 = vld [vmem:[%s15070_s12 + $0xef] sm:$0xff] }
 0x2b8   : > { %13381 = vmatpush3.bf16.msra.mxu1 %v6125_v62  ;;  %13352 = vmatprep.mubr.msk.bf16.mxu1 %vm383_vm1, %v5766_v18  ;;  %v5748_v18 = vld [vmem:[%s15070_s12 + $0x107] sm:$0xff]  ;;  %v5749_v62 = vld [vmem:[%s15070_s12 + $0x10f] sm:$0xff]  ;;  %v5771_v16 = vpack.c.bf16 %v5747_v25, %v5746_v26 }
 0x2b9   : > { %14956 = vmatprep.subr.msk.bf16.mxu1 %vm432_vm0, %v16526_v11  ;;  %v5772_v3 = vpack.c.bf16 %v5749_v62, %v5748_v18 }
 0x2bf   : > { %13353 = vmatmul.mubr.msk.bf16.gmra.mrb[20].mxu1 %vm383_vm1, %v5767_v4  ;;  %v5773_v4 = vpack.c.bf16 %v5751_v51, %v5750_v40  ;;  %v6031_v40 = vld [vmem:[%s15070_s12 + $0x56] sm:$0xff] }
 0x2c0   : > { %13356 = vmatprep.mubr.msk.bf16.mxu1 %vm383_vm1, %v5768_v33 }
 0x2c7   : > { %13357 = vmatmul.mubr.msk.bf16.gmra.mrb[24].mxu1 %vm383_vm1, %v5769_v21 }
 0x2c8   : > { %13360 = vmatprep.mubr.msk.bf16.mxu1 %vm383_vm1, %v5770_v44 }
 0x2cf   : > { %13361 = vmatmul.mubr.msk.bf16.gmra.mrb[28].mxu1 %vm383_vm1, %v5771_v16 }
 0x2d0   : > { %13364 = vmatprep.mubr.msk.bf16.mxu1 %vm383_vm1, %v5772_v3  ;;  %v6030_v3 = vld [vmem:[%s15070_s12 + $0x4e] sm:$0xff] }
 0x2d5   : > { %v16555_v33 = vpop.f32.mrb[48].mxu0 }
 0x2d6   : > { %v16557_v46 = vpop.f32.mrb[49].mxu0 }
 0x2d7   : > { %13365 = vmatmul.mubr.msk.bf16.gmra.mrb[0].mxu1 %vm383_vm1, %v5773_v4  ;;  %v16559_v38 = vpop.f32.mrb[50].mxu0 }
 0x2d8   : > { %13368 = vmatprep.mubr.msk.bf16.mxu1 %vm383_vm1, %v16282_v48  ;;  %v16561_v0 = vpop.f32.mrb[51].mxu0 }
 0x2dd   : > { %v16567_v58 = vpop.f32.mrb[52].mxu0 }
 0x2de   : > { %v16569_v21 = vpop.f32.mrb[53].mxu0 }
 0x2df   : > { %13369 = vmatmul.mubr.msk.bf16.gmra.mrb[4].mxu1 %vm383_vm1, %v16295_v10  ;;  %v16571_v48 = vpop.f32.mrb[54].mxu0  ;;  %v6026_v10 = vld [vmem:[%s15070_s12 + $0xe] sm:$0xff] }
 0x2e0   : > { %13372 = vmatprep.mubr.msk.bf16.mxu1 %vm383_vm1, %v16163_v32  ;;  %v16573_v44 = vpop.f32.mrb[55].mxu0  ;;  %v6027_v32 = vld [vmem:[%s15070_s12 + $0x16] sm:$0xff] }
 0x2e1   : > { %v6058_v18 = vpack.c.bf16 %v6027_v32, %v6026_v10  ;;  %v6060_v32 = vpack.c.bf16 %v6031_v40, %v6030_v3  ;;  %v6034_v3 = vld [vmem:[%s15070_s12 + $0x8e] sm:$0xff] }
 0x2e5   : > { %v16581_v26 = vpop.f32.mrb[56].mxu0 }
 0x2e6   : > { %v16583_v25 = vpop.f32.mrb[57].mxu0 }
 0x2e7   : > { %13373 = vmatmul.mubr.msk.bf16.gmra.mrb[8].mxu1 %vm383_vm1, %v16180_v28  ;;  %v16585_v62 = vpop.f32.mrb[58].mxu0  ;;  %v6028_v28 = vld [vmem:[%s15070_s12 + $0x2e] sm:$0xff] }
 0x2e8   : > { %13376 = vmatprep.mubr.msk.bf16.mxu1 %vm383_vm1, %v16183_v29  ;;  %v16587_v16 = vpop.f32.mrb[59].mxu0  ;;  %v6029_v29 = vld [vmem:[%s15070_s12 + $0x36] sm:$0xff] }
 0x2e9   : > { %v6059_v4 = vpack.c.bf16 %v6029_v29, %v6028_v28  ;;  %v6032_v28 = vld [vmem:[%s15070_s12 + $0x6e] sm:$0xff]  ;;  %v6033_v29 = vld [vmem:[%s15070_s12 + $0x76] sm:$0xff] }
 0x2ea   : > { %v6061_v5 = vpack.c.bf16 %v6033_v29, %v6032_v28 }
 0x2ed   : > { %v16596_v51 = vpop.f32.mrb[60].mxu0 }
 0x2ee   : > { %v16598_v10 = vpop.f32.mrb[61].mxu0 }
 0x2ef   : > { %13377 = vmatmul.mubr.msk.bf16.gmra.mrb[12].mxu1 %vm383_vm1, %v16213_v31  ;;  %v16600_v24 = vpop.f32.mrb[62].mxu0  ;;  %v6419_v31 = vsel %vm432_vm0, %v16526_v11, 0  ;;  %v6035_v11 = vld [vmem:[%s15070_s12 + $0x96] sm:$0xff] }
 0x2f0   : > { %13382 = vmatprep.mubr.msk.bf16.mxu1 %vm383_vm1, %v6058_v18  ;;  %v16604_v18 = vpop.f32.mrb[63].mxu0 }
 0x2f5   : > { %v16619_v40 = vpop.f32.mrb[32].mxu0 }
 0x2f6   : > { %v16621_v23 = vpop.f32.mrb[33].mxu0 }
 0x2f7   : > { %13383 = vmatmul.mubr.msk.bf16.vlgmr.msra.gmra.mrb[16].mxu1 %vm383_vm1, %v6059_v4  ;;  %v6062_v4 = vpack.c.bf16 %v6035_v11, %v6034_v3  ;;  %v16623_v7 = vpop.f32.mrb[34].mxu0  ;;  %v6064_v11 = vpack.c.bf16 %v6039_v52, %v6038_v57  ;;  %v16653_v57 = vpack.c.bf16 %v6043_v6, %v6042_v27 }
 0x2f8   : > { %13415 = vmatpush3.bf16.msra.mxu1 %v6419_v31  ;;  %13386 = vmatprep.mubr.msk.bf16.mxu1 %vm383_vm1, %v6060_v32  ;;  %v16625_v31 = vpop.f32.mrb[35].mxu0  ;;  %v6036_v32 = vld [vmem:[%s15070_s12 + $0xae] sm:$0xff] }
 0x2f9   : > { %14957 = vmatprep.subr.msk.bf16.mxu1 %vm432_vm0, %v16609_v30  ;;  %v6063_v29 = vpack.c.bf16 %v6037_v37, %v6036_v32  ;;  %v11676_v30 = vld [vmem:[%s15070_s12 + $0x260] sm:$0xff] }
 0x2fd   : > { %v16633_v28 = vpop.f32.mrb[36].mxu0 }
 0x2fe   : > { %v16635_v3 = vpop.f32.mrb[37].mxu0 }
 0x2ff   : > { %13387 = vmatmul.mubr.msk.bf16.gmra.mrb[20].mxu1 %vm383_vm1, %v6061_v5  ;;  %v16637_v45 = vpop.f32.mrb[38].mxu0  ;;  %v6040_v5 = vld [vmem:[%s15070_s12 + $0xee] sm:$0xff] }
 0x300   : > { %13390 = vmatprep.mubr.msk.bf16.mxu1 %vm383_vm1, %v6062_v4  ;;  %v16639_v9 = vpop.f32.mrb[39].mxu0  ;;  %v6041_v4 = vld [vmem:[%s15070_s12 + $0xf6] sm:$0xff] }
 0x301   : > { %v16649_v32 = vpack.c.bf16 %v6041_v4, %v6040_v5  ;;  %v6045_v5 = vld [vmem:[%s15070_s12 + $0x136] sm:$0xff]  ;;  %v6046_v4 = vld [vmem:[%s15070_s12 + $0x14e] sm:$0xff] }
 0x302   : > { %v16673_v55 = vpack.c.bf16 %v6047_v47, %v6046_v4  ;;  %v6052_v4 = vld [vmem:[%s15070_s12 + $0x1ae] sm:$0xff] }
 0x303   : > { %v6071_v34 = vpack.c.bf16 %v6053_v54, %v6052_v4 }
 0x305   : > { %v16647_v37 = vpop.f32.mrb[40].mxu0 }
 0x306   : > { %v16651_v52 = vpop.f32.mrb[41].mxu0 }
 0x307   : > { %13391 = vmatmul.mubr.msk.bf16.gmra.mrb[24].mxu1 %vm383_vm1, %v6063_v29  ;;  %v16655_v56 = vpop.f32.mrb[42].mxu0 }
 0x308   : > { %13394 = vmatprep.mubr.msk.bf16.mxu1 %vm383_vm1, %v6064_v11  ;;  %v16657_v29 = vpop.f32.mrb[43].mxu0  ;;  %v6044_v11 = vld [vmem:[%s15070_s12 + $0x12e] sm:$0xff] }
 0x309   : > { %v16669_v27 = vpack.c.bf16 %v6045_v5, %v6044_v11  ;;  %v6049_v11 = vld [vmem:[%s15070_s12 + $0x176] sm:$0xff]  ;;  %v6050_v5 = vld [vmem:[%s15070_s12 + $0x18e] sm:$0xff] }
 0x30a   : > { %v16687_v61 = vpack.c.bf16 %v6049_v11, %v6048_v15  ;;  %v16689_v47 = vpack.c.bf16 %v6051_v43, %v6050_v5  ;;  %v6056_v43 = vld [vmem:[%s15070_s12 + $0x1ee] sm:$0xff]  ;;  %v6057_v15 = vld [vmem:[%s15070_s12 + $0x1f6] sm:$0xff] }
 0x30b   : > { %v16706_v11 = vpack.c.bf16 %v6057_v15, %v6056_v43  ;;  %v11677_v5 = vld [vmem:[%s15070_s12 + $0x268] sm:$0xff]  ;;  %v11678_v15 = vld [vmem:[%s15070_s12 + $0x280] sm:$0xff] }
 0x30c   : > { %v16752_v43 = vpack.c.bf16 %v11677_v5, %v11676_v30  ;;  %v7008_v5 = vsel %vm432_vm0, %v11782_v8, 0 }
 0x30d   : > { %v16667_v6 = vpop.f32.mrb[44].mxu0 }
 0x30e   : > { %v16671_v42 = vpop.f32.mrb[45].mxu0 }
 0x30f   : > { %13395 = vmatmul.mubr.msk.bf16.gmra.mrb[28].mxu1 %vm383_vm1, %v16649_v32  ;;  %v16675_v12 = vpop.f32.mrb[46].mxu0 }
 0x310   : > { %13398 = vmatprep.mubr.msk.bf16.mxu1 %vm383_vm1, %v16653_v57  ;;  %v16677_v13 = vpop.f32.mrb[47].mxu0 }
 0x317   : > { %13399 = vmatmul.mubr.msk.bf16.gmra.mrb[0].mxu1 %vm383_vm1, %v16669_v27 }
 0x318   : > { %13402 = vmatprep.mubr.msk.bf16.mxu1 %vm383_vm1, %v16673_v55 }
 0x31f   : > { %13403 = vmatmul.mubr.msk.bf16.gmra.mrb[4].mxu1 %vm383_vm1, %v16687_v61 }
 0x320   : > { %13406 = vmatprep.mubr.msk.bf16.mxu1 %vm383_vm1, %v16689_v47 }
 0x327   : > { %13407 = vmatmul.mubr.msk.bf16.gmra.mrb[8].mxu1 %vm383_vm1, %v6071_v34 }
 0x328   : > { %13410 = vmatprep.mubr.msk.bf16.mxu1 %vm383_vm1, %v16699_v19 }
 0x32f   : > { %13411 = vmatmul.mubr.msk.bf16.gmra.mrb[12].mxu1 %vm383_vm1, %v16706_v11 }
 0x330   : > { %13416 = vmatprep.mubr.msk.bf16.mxu1 %vm383_vm1, %v16410_v59  ;;  %v11670_v59 = vld [vmem:[%s15070_s12 + $0x200] sm:$0xff] }
 0x337   : > { %13417 = vmatmul.mubr.msk.bf16.vlgmr.msra.gmra.mrb[16].mxu1 %vm383_vm1, %v16412_v60  ;;  %v11671_v60 = vld [vmem:[%s15070_s12 + $0x208] sm:$0xff] }
 0x338   : > { %13449 = vmatpush3.bf16.msra.mxu1 %v6713_v49  ;;  %13420 = vmatprep.mubr.msk.bf16.mxu1 %vm383_vm1, %v16430_v35  ;;  %v11672_v35 = vld [vmem:[%s15070_s12 + $0x220] sm:$0xff]  ;;  %v16738_v54 = vpack.c.bf16 %v11671_v60, %v11670_v59  ;;  %v11679_v49 = vld [vmem:[%s15070_s12 + $0x288] sm:$0xff] }
 0x339   : > { %14958 = vmatprep.subr.msk.bf16.mxu1 %vm432_vm0, %v11782_v8  ;;  %v11680_v59 = vld [vmem:[%s15070_s12 + $0x2a0] sm:$0xff]  ;;  %v11681_v60 = vld [vmem:[%s15070_s12 + $0x2a8] sm:$0xff] }
 0x33f   : > { %13421 = vmatmul.mubr.msk.bf16.gmra.mrb[20].mxu1 %vm383_vm1, %v16432_v41  ;;  %v11673_v41 = vld [vmem:[%s15070_s12 + $0x228] sm:$0xff] }
 0x340   : > { %13424 = vmatprep.mubr.msk.bf16.mxu1 %vm383_vm1, %v16450_v17  ;;  %v16740_v17 = vpack.c.bf16 %v11673_v41, %v11672_v35  ;;  %v6365_v35 = vpack.c.bf16 %v11679_v49, %v11678_v15  ;;  %v6366_v41 = vpack.c.bf16 %v11681_v60, %v11680_v59  ;;  %v11831_v15 = vld [vmem:[%s17707_s1 + $0x2e] sm:$0x3]  ;;  %v11726_v59 = vld [vmem:[%s15070_s12 + $0x276] sm:$0xff] }
 0x341   : > { %v11725_v49 = vld [vmem:[%s15070_s12 + $0x26e] sm:$0xff] }
 0x347   : > { %13425 = vmatmul.mubr.msk.bf16.gmra.mrb[24].mxu1 %vm383_vm1, %v16452_v2  ;;  %v11674_v2 = vld [vmem:[%s15070_s12 + $0x240] sm:$0xff] }
 0x348   : > { %13428 = vmatprep.mubr.msk.bf16.mxu1 %vm383_vm1, %v16470_v22  ;;  %v11675_v22 = vld [vmem:[%s15070_s12 + $0x248] sm:$0xff] }
 0x349   : > { %v16750_v4 = vpack.c.bf16 %v11675_v22, %v11674_v2  ;;  %v11682_v2 = vld [vmem:[%s15070_s12 + $0x2c0] sm:$0xff]  ;;  %v11683_v22 = vld [vmem:[%s15070_s12 + $0x2c8] sm:$0xff] }
 0x34a   : > { %v6367_v30 = vpack.c.bf16 %v11683_v22, %v11682_v2  ;;  %v16807_v2 = vpack.c.bf16 %v11726_v59, %v11725_v49  ;;  %v11727_v22 = vld [vmem:[%s15070_s12 + $0x28e] sm:$0xff]  ;;  %v7302_v59 = vsel %vm432_vm0, %v11831_v15, 0 }
 0x34f   : > { %13429 = vmatmul.mubr.msk.bf16.gmra.mrb[28].mxu1 %vm383_vm1, %v16472_v50 }
 0x350   : > { %13432 = vmatprep.mubr.msk.bf16.mxu1 %vm383_vm1, %v16490_v1 }
 0x357   : > { %13433 = vmatmul.mubr.msk.bf16.gmra.mrb[0].mxu1 %vm383_vm1, %v16738_v54 }
 0x358   : > { %13436 = vmatprep.mubr.msk.bf16.mxu1 %vm383_vm1, %v16740_v17 }
 0x35f   : > { %13437 = vmatmul.mubr.msk.bf16.gmra.mrb[4].mxu1 %vm383_vm1, %v16750_v4 }
 0x360   : > { %13440 = vmatprep.mubr.msk.bf16.mxu1 %vm383_vm1, %v16752_v43 }
 0x367   : > { %13441 = vmatmul.mubr.msk.bf16.gmra.mrb[8].mxu1 %vm383_vm1, %v6365_v35 }
 0x368   : > { %13444 = vmatprep.mubr.msk.bf16.mxu1 %vm383_vm1, %v6366_v41 }
 0x36f   : > { %13445 = vmatmul.mubr.msk.bf16.gmra.mrb[12].mxu1 %vm383_vm1, %v6367_v30 }
 0x370   : > { %13450 = vmatprep.mubr.msk.bf16.mxu1 %vm383_vm1, %v16649_v32  ;;  %v11719_v32 = vld [vmem:[%s15070_s12 + $0x20e] sm:$0xff] }
 0x377   : > { %13451 = vmatmul.mubr.msk.bf16.vlgmr.msra.gmra.mrb[16].mxu1 %vm383_vm1, %v16653_v57  ;;  %v11720_v57 = vld [vmem:[%s15070_s12 + $0x216] sm:$0xff] }
 0x378   : > { %13483 = vmatpush3.bf16.msra.mxu1 %v7008_v5  ;;  %13454 = vmatprep.mubr.msk.bf16.mxu1 %vm383_vm1, %v16669_v27  ;;  %v11722_v27 = vld [vmem:[%s15070_s12 + $0x236] sm:$0xff] }
 0x379   : > { %14959 = vmatprep.subr.msk.bf16.mxu1 %vm432_vm0, %v11831_v15  ;;  %v11728_v5 = vld [vmem:[%s15070_s12 + $0x296] sm:$0xff] }
 0x37f   : > { %13455 = vmatmul.mubr.msk.bf16.gmra.mrb[20].mxu1 %vm383_vm1, %v16673_v55  ;;  %v11721_v55 = vld [vmem:[%s15070_s12 + $0x22e] sm:$0xff] }
 0x380   : > { %13458 = vmatprep.mubr.msk.bf16.mxu1 %vm383_vm1, %v16687_v61  ;;  %v16793_v61 = vpack.c.bf16 %v11720_v57, %v11719_v32  ;;  %v16795_v8 = vpack.c.bf16 %v11722_v27, %v11721_v55  ;;  %v11729_v32 = vld [vmem:[%s15070_s12 + $0x2ae] sm:$0xff]  ;;  %v11730_v57 = vld [vmem:[%s15070_s12 + $0x2b6] sm:$0xff]  ;;  %v16817_v55 = vpack.c.bf16 %v11728_v5, %v11727_v22 }
 0x381   : > { %v16819_v27 = vpack.c.bf16 %v11730_v57, %v11729_v32  ;;  %v11880_v22 = vld [vmem:[%s17707_s1 + $0x30] sm:$0x3]  ;;  %v11776_v57 = vld [vmem:[%s15070_s12 + $0x360] sm:$0xff] }
 0x387   : > { %13459 = vmatmul.mubr.msk.bf16.gmra.mrb[24].mxu1 %vm383_vm1, %v16689_v47  ;;  %v11724_v47 = vld [vmem:[%s15070_s12 + $0x256] sm:$0xff] }
 0x388   : > { %13462 = vmatprep.mubr.msk.bf16.mxu1 %vm383_vm1, %v6071_v34  ;;  %v11723_v34 = vld [vmem:[%s15070_s12 + $0x24e] sm:$0xff] }
 0x389   : > { %v16805_v60 = vpack.c.bf16 %v11724_v47, %v11723_v34  ;;  %v11731_v34 = vld [vmem:[%s15070_s12 + $0x2ce] sm:$0xff]  ;;  %v11732_v47 = vld [vmem:[%s15070_s12 + $0x2d6] sm:$0xff] }
 0x38a   : > { %v16827_v49 = vpack.c.bf16 %v11732_v47, %v11731_v34  ;;  %v11777_v34 = vld [vmem:[%s15070_s12 + $0x368] sm:$0xff]  ;;  %v11778_v47 = vld [vmem:[%s15070_s12 + $0x380] sm:$0xff] }
 0x38f   : > { %13463 = vmatmul.mubr.msk.bf16.gmra.mrb[28].mxu1 %vm383_vm1, %v16699_v19 }
 0x390   : > { %13466 = vmatprep.mubr.msk.bf16.mxu1 %vm383_vm1, %v16706_v11 }
 0x397   : > { %13467 = vmatmul.mubr.msk.bf16.gmra.mrb[0].mxu1 %vm383_vm1, %v16793_v61 }
 0x398   : > { %13470 = vmatprep.mubr.msk.bf16.mxu1 %vm383_vm1, %v16795_v8 }
 0x39f   : > { %13471 = vmatmul.mubr.msk.bf16.gmra.mrb[4].mxu1 %vm383_vm1, %v16805_v60 }
 0x3a0   : > { %13474 = vmatprep.mubr.msk.bf16.mxu1 %vm383_vm1, %v16807_v2 }
 0x3a7   : > { %13475 = vmatmul.mubr.msk.bf16.gmra.mrb[8].mxu1 %vm383_vm1, %v16817_v55 }
 0x3a8   : > { %13478 = vmatprep.mubr.msk.bf16.mxu1 %vm383_vm1, %v16819_v27 }
 0x3af   : > { %13479 = vmatmul.mubr.msk.bf16.gmra.mrb[12].mxu1 %vm383_vm1, %v16827_v49 }
 0x3b0   : > { %13484 = vmatprep.mubr.msk.bf16.mxu1 %vm383_vm1, %v16472_v50  ;;  %v11768_v50 = vld [vmem:[%s15070_s12 + $0x2e0] sm:$0xff] }
 0x3b7   : > { %13485 = vmatmul.mubr.msk.bf16.vlgmr.msra.gmra.mrb[16].mxu1 %vm383_vm1, %v16490_v1  ;;  %v11769_v1 = vld [vmem:[%s15070_s12 + $0x2e8] sm:$0xff] }
 0x3b8   : > { %13517 = vmatpush3.bf16.msra.mxu1 %v7302_v59  ;;  %13488 = vmatprep.mubr.msk.bf16.mxu1 %vm383_vm1, %v16738_v54  ;;  %v11770_v54 = vld [vmem:[%s15070_s12 + $0x300] sm:$0xff]  ;;  %v6950_v15 = vpack.c.bf16 %v11769_v1, %v11768_v50  ;;  %v11779_v59 = vld [vmem:[%s15070_s12 + $0x388] sm:$0xff]  ;;  %v6954_v50 = vpack.c.bf16 %v11777_v34, %v11776_v57 }
 0x3b9   : > { %14960 = vmatprep.subr.msk.bf16.mxu1 %vm432_vm0, %v11880_v22  ;;  %v6955_v1 = vpack.c.bf16 %v11779_v59, %v11778_v47  ;;  %v11804_v57 = vld [vmem:[%s15070_s12 + $0x20f] sm:$0xff]  ;;  %v7596_v59 = vsel %vm432_vm0, %v11880_v22, 0  ;;  %v11809_v22 = vld [vmem:[%s15070_s12 + $0x267] sm:$0xff] }
 0x3bf   : > { %13489 = vmatmul.mubr.msk.bf16.gmra.mrb[20].mxu1 %vm383_vm1, %v16740_v17  ;;  %v11771_v17 = vld [vmem:[%s15070_s12 + $0x308] sm:$0xff] }
 0x3c0   : > { %13492 = vmatprep.mubr.msk.bf16.mxu1 %vm383_vm1, %v16750_v4  ;;  %v6951_v4 = vpack.c.bf16 %v11771_v17, %v11770_v54  ;;  %v11780_v54 = vld [vmem:[%s15070_s12 + $0x3a0] sm:$0xff]  ;;  %v11781_v17 = vld [vmem:[%s15070_s12 + $0x3a8] sm:$0xff] }
 0x3c7   : > { %13493 = vmatmul.mubr.msk.bf16.gmra.mrb[24].mxu1 %vm383_vm1, %v16752_v43  ;;  %v11772_v43 = vld [vmem:[%s15070_s12 + $0x320] sm:$0xff] }
 0x3c8   : > { %13496 = vmatprep.mubr.msk.bf16.mxu1 %vm383_vm1, %v6365_v35  ;;  %v11773_v35 = vld [vmem:[%s15070_s12 + $0x328] sm:$0xff] }
 0x3c9   : > { %v6952_v5 = vpack.c.bf16 %v11773_v35, %v11772_v43  ;;  %v6956_v43 = vpack.c.bf16 %v11781_v17, %v11780_v54  ;;  %v11807_v54 = vld [vmem:[%s15070_s12 + $0x247] sm:$0xff]  ;;  %v11808_v17 = vld [vmem:[%s15070_s12 + $0x24f] sm:$0xff] }
 0x3cf   : > { %13497 = vmatmul.mubr.msk.bf16.gmra.mrb[28].mxu1 %vm383_vm1, %v6366_v41  ;;  %v11774_v41 = vld [vmem:[%s15070_s12 + $0x340] sm:$0xff] }
 0x3d0   : > { %13500 = vmatprep.mubr.msk.bf16.mxu1 %vm383_vm1, %v6367_v30  ;;  %v11775_v30 = vld [vmem:[%s15070_s12 + $0x348] sm:$0xff] }
 0x3d1   : > { %v6953_v32 = vpack.c.bf16 %v11775_v30, %v11774_v41  ;;  %v14971_v41 = vld [vmem:[%s17711_s5 + $0x10] sm:$0xff]   ;;  %v11801_v30 = vld [vmem:[%s15070_s12 + $0x1e7] sm:$0xff] }
 0x3d2   : > { %13584 = vmatprep.subr.bf16.mxu0 %v14971_v41 }
 0x3d3   : > { %13585 = vmatpush3.bf16.msra.mxu0 %v14971_v41  ;;  %v11812_v41 = vld [vmem:[%s15070_s12 + $0x28f] sm:$0xff] }
 0x3d7   : > { %13501 = vmatmul.mubr.msk.bf16.gmra.mrb[0].mxu1 %vm383_vm1, %v6950_v15  ;;  %v11799_v15 = vld [vmem:[%s15070_s12 + $0x1c7] sm:$0xff] }
 0x3d8   : > { %13504 = vmatprep.mubr.msk.bf16.mxu1 %vm383_vm1, %v6951_v4  ;;  %v11800_v4 = vld [vmem:[%s15070_s12 + $0x1cf] sm:$0xff] }
 0x3d9   : > { %v7235_v35 = vpack.c.bf16 %v11800_v4, %v11799_v15  ;;  %v7239_v4 = vpack.c.bf16 %v11808_v17, %v11807_v54  ;;  %v11818_v54 = vld [vmem:[%s15070_s12 + $0x2ef] sm:$0xff]  ;;  %v11819_v17 = vld [vmem:[%s15070_s12 + $0x307] sm:$0xff] }
 0x3df   : > { %13505 = vmatmul.mubr.msk.bf16.gmra.mrb[4].mxu1 %vm383_vm1, %v6952_v5  ;;  %v11802_v5 = vld [vmem:[%s15070_s12 + $0x1ef] sm:$0xff] }
 0x3e0   : > { %13508 = vmatprep.mubr.msk.bf16.mxu1 %vm383_vm1, %v6953_v32  ;;  %v11803_v32 = vld [vmem:[%s15070_s12 + $0x207] sm:$0xff]  ;;  %v7236_v34 = vpack.c.bf16 %v11802_v5, %v11801_v30 }
 0x3e1   : > { %v7237_v47 = vpack.c.bf16 %v11804_v57, %v11803_v32  ;;  %v11813_v32 = vld [vmem:[%s15070_s12 + $0x2a7] sm:$0xff]  ;;  %v11814_v57 = vld [vmem:[%s15070_s12 + $0x2af] sm:$0xff] }
 0x3e7   : > { %13509 = vmatmul.mubr.msk.bf16.gmra.mrb[8].mxu1 %vm383_vm1, %v6954_v50  ;;  %v11805_v50 = vld [vmem:[%s15070_s12 + $0x227] sm:$0xff] }
 0x3e8   : > { %13512 = vmatprep.mubr.msk.bf16.mxu1 %vm383_vm1, %v6955_v1  ;;  %v11806_v1 = vld [vmem:[%s15070_s12 + $0x22f] sm:$0xff] }
 0x3e9   : > { %v7238_v15 = vpack.c.bf16 %v11806_v1, %v11805_v50  ;;  %v11817_v1 = vld [vmem:[%s15070_s12 + $0x2e7] sm:$0xff] }
 0x3ef   : > { %13513 = vmatmul.mubr.msk.bf16.gmra.mrb[12].mxu1 %vm383_vm1, %v6956_v43  ;;  %v11810_v43 = vld [vmem:[%s15070_s12 + $0x26f] sm:$0xff] }
 0x3f0   : > { %13518 = vmatprep.mubr.msk.bf16.mxu1 %vm383_vm1, %v7235_v35  ;;  %v11811_v35 = vld [vmem:[%s15070_s12 + $0x287] sm:$0xff]  ;;  %v7240_v30 = vpack.c.bf16 %v11810_v43, %v11809_v22 }
 0x3f1   : > { %v7241_v5 = vpack.c.bf16 %v11812_v41, %v11811_v35  ;;  %v11821_v43 = vld [vmem:[%s15070_s12 + $0x327] sm:$0xff]  ;;  %v11822_v35 = vld [vmem:[%s15070_s12 + $0x32f] sm:$0xff] }
 0x3f2   : > { %v11823_v41 = vld [vmem:[%s15070_s12 + $0x347] sm:$0xff] }
 0x3f7   : > { %13519 = vmatmul.mubr.msk.bf16.vlgmr.msra.gmra.mrb[16].mxu1 %vm383_vm1, %v7236_v34  ;;  %v11815_v34 = vld [vmem:[%s15070_s12 + $0x2c7] sm:$0xff] }
 0x3f8   : > { %13551 = vmatpush3.bf16.msra.mxu1 %v7596_v59  ;;  %13522 = vmatprep.mubr.msk.bf16.mxu1 %vm383_vm1, %v7237_v47  ;;  %v11816_v47 = vld [vmem:[%s15070_s12 + $0x2cf] sm:$0xff]  ;;  %v7242_v59 = vpack.c.bf16 %v11814_v57, %v11813_v32  ;;  %v11825_v57 = vld [vmem:[%s15070_s12 + $0x367] sm:$0xff] }
 0x3f9   : > { %v7243_v50 = vpack.c.bf16 %v11816_v47, %v11815_v34  ;;  %v11826_v34 = vld [vmem:[%s15070_s12 + $0x36f] sm:$0xff]  ;;  %v11827_v47 = vld [vmem:[%s15070_s12 + $0x387] sm:$0xff] }
 0x3ff   : > { %13523 = vmatmul.mubr.msk.bf16.gmra.mrb[20].mxu1 %vm383_vm1, %v7238_v15  ;;  %v11820_v15 = vld [vmem:[%s15070_s12 + $0x30f] sm:$0xff] }
 0x400   : > { %13526 = vmatprep.mubr.msk.bf16.mxu1 %vm383_vm1, %v7239_v4  ;;  %v7244_v4 = vpack.c.bf16 %v11818_v54, %v11817_v1  ;;  %v7245_v22 = vpack.c.bf16 %v11820_v15, %v11819_v17  ;;  %v11829_v54 = vld [vmem:[%s15070_s12 + $0x3a7] sm:$0xff]  ;;  %v11830_v17 = vld [vmem:[%s15070_s12 + $0x3af] sm:$0xff] }
 0x401   : > { %v7250_v15 = vpack.c.bf16 %v11830_v17, %v11829_v54 }
 0x407   : > { %13527 = vmatmul.mubr.msk.bf16.gmra.mrb[24].mxu1 %vm383_vm1, %v7240_v30  ;;  %v11824_v30 = vld [vmem:[%s15070_s12 + $0x34f] sm:$0xff] }
 0x408   : > { %13530 = vmatprep.mubr.msk.bf16.mxu1 %vm383_vm1, %v7241_v5  ;;  %v7246_v5 = vpack.c.bf16 %v11822_v35, %v11821_v43  ;;  %v7247_v32 = vpack.c.bf16 %v11824_v30, %v11823_v41  ;;  %v11874_v35 = vld [vmem:[%s15070_s12 + $0x36e] sm:$0xff]  ;;  %v11875_v41 = vld [vmem:[%s15070_s12 + $0x376] sm:$0xff] }
 0x409   : > { %v11876_v30 = vld [vmem:[%s15070_s12 + $0x38e] sm:$0xff] }
 0x40f   : > { %13531 = vmatmul.mubr.msk.bf16.gmra.mrb[28].mxu1 %vm383_vm1, %v7242_v59  ;;  %v11828_v59 = vld [vmem:[%s15070_s12 + $0x38f] sm:$0xff] }
 0x410   : > { %13534 = vmatprep.mubr.msk.bf16.mxu1 %vm383_vm1, %v7243_v50  ;;  %v7248_v50 = vpack.c.bf16 %v11826_v34, %v11825_v57  ;;  %v7249_v1 = vpack.c.bf16 %v11828_v59, %v11827_v47  ;;  %v11878_v34 = vld [vmem:[%s15070_s12 + $0x3ae] sm:$0xff]  ;;  %v11879_v47 = vld [vmem:[%s15070_s12 + $0x3b6] sm:$0xff] }
 0x411   : > { %v7544_v59 = vpack.c.bf16 %v11879_v47, %v11878_v34 }
 0x417   : > { %13535 = vmatmul.mubr.msk.bf16.gmra.mrb[0].mxu1 %vm383_vm1, %v7244_v4 }
 0x418   : > { %13538 = vmatprep.mubr.msk.bf16.mxu1 %vm383_vm1, %v7245_v22 }
 0x41f   : > { %13539 = vmatmul.mubr.msk.bf16.gmra.mrb[4].mxu1 %vm383_vm1, %v7246_v5  ;;  %v11877_v5 = vld [vmem:[%s15070_s12 + $0x396] sm:$0xff] }
 0x420   : > { %13542 = vmatprep.mubr.msk.bf16.mxu1 %vm383_vm1, %v7247_v32  ;;  %v7542_v32 = vpack.c.bf16 %v11875_v41, %v11874_v35  ;;  %v7543_v57 = vpack.c.bf16 %v11877_v5, %v11876_v30 }
 0x427   : > { %13543 = vmatmul.mubr.msk.bf16.gmra.mrb[8].mxu1 %vm383_vm1, %v7248_v50  ;;  %v14998_v50 = vmov 0.0  }
 0x428   : > { %13546 = vmatprep.mubr.msk.bf16.mxu1 %vm383_vm1, %v7249_v1  ;;  %281 = vst.msk [vmem:[#allocation2] sm:$0xff] %vm280_vm2, %v14998_v50  ;;  %282 = vst.msk [vmem:[#allocation2 + $0x8] sm:$0xff] %vm280_vm2, %v14998_v50  ;;  %v14972_v1 = vld [vmem:[%s17711_s5 + $0x18] sm:$0xff]  }
 0x429   : > { %286 = vst.msk [vmem:[#allocation2 + $0x198] sm:$0xff] %vm280_vm2, %v14998_v50  ;;  %287 = vst.msk [vmem:[#allocation2 + $0x1a0] sm:$0xff] %vm280_vm2, %v14998_v50  ;;  %13586 = vmatprep.subr.bf16.mxu0 %v14972_v1 }
 0x42a   : > { %291 = vst.msk [vmem:[#allocation2 + $0x18] sm:$0x1] %vm289_vm3, %v14998_v50  ;;  %292 = vst.msk [vmem:[#allocation2 + $0x30] sm:$0x1] %vm289_vm3, %v14998_v50  ;;  %13587 = vmatpush3.bf16.msra.mxu0 %v14972_v1 }
 0x42b   : > { %293 = vst.msk [vmem:[#allocation2 + $0x48] sm:$0x1] %vm289_vm3, %v14998_v50  ;;  %294 = vst.msk [vmem:[#allocation2 + $0x60] sm:$0x1] %vm289_vm3, %v14998_v50 }
 0x42c   : > { %295 = vst.msk [vmem:[#allocation2 + $0x78] sm:$0x1] %vm289_vm3, %v14998_v50  ;;  %296 = vst.msk [vmem:[#allocation2 + $0x90] sm:$0x1] %vm289_vm3, %v14998_v50 }
 0x42d   : > { %297 = vst.msk [vmem:[#allocation2 + $0xa8] sm:$0x1] %vm289_vm3, %v14998_v50  ;;  %298 = vst.msk [vmem:[#allocation2 + $0xc0] sm:$0x1] %vm289_vm3, %v14998_v50 }
 0x42e   : > { %299 = vst.msk [vmem:[#allocation2 + $0xd8] sm:$0x1] %vm289_vm3, %v14998_v50  ;;  %300 = vst.msk [vmem:[#allocation2 + $0xf0] sm:$0x1] %vm289_vm3, %v14998_v50 }
 0x42f   : > { %13547 = vmatmul.mubr.msk.bf16.gmra.mrb[12].mxu1 %vm383_vm1, %v7250_v15  ;;  %301 = vst.msk [vmem:[#allocation2 + $0x108] sm:$0x1] %vm289_vm3, %v14998_v50  ;;  %302 = vst.msk [vmem:[#allocation2 + $0x120] sm:$0x1] %vm289_vm3, %v14998_v50  ;;  %v7915_v54 = vld [vmem:[#allocation2 + $0x1] sm:$0xff] }
 0x430   : > { %13552 = vmatprep.mubr.msk.bf16.mxu1 %vm383_vm1, %v16699_v19  ;;  %v11866_v19 = vld [vmem:[%s15070_s12 + $0x2ee] sm:$0xff]  ;;  %303 = vst.msk [vmem:[#allocation2 + $0x138] sm:$0x1] %vm289_vm3, %v14998_v50  ;;  %304 = vst.msk [vmem:[#allocation2 + $0x150] sm:$0x1] %vm289_vm3, %v14998_v50 }
 0x431   : > { %305 = vst.msk [vmem:[#allocation2 + $0x168] sm:$0x1] %vm289_vm3, %v14998_v50  ;;  %306 = vst.msk [vmem:[#allocation2 + $0x180] sm:$0x1] %vm289_vm3, %v14998_v50 }
 0x432   : > { %309 = vst.msk [vmem:[#allocation2 + $0x29] sm:$0x1] %vm289_vm3, %v14998_v50  ;;  %310 = vst.msk [vmem:[#allocation2 + $0x41] sm:$0x1] %vm289_vm3, %v14998_v50 }
 0x433   : > { %311 = vst.msk [vmem:[#allocation2 + $0x59] sm:$0x1] %vm289_vm3, %v14998_v50  ;;  %312 = vst.msk [vmem:[#allocation2 + $0x71] sm:$0x1] %vm289_vm3, %v14998_v50 }
 0x434   : > { %313 = vst.msk [vmem:[#allocation2 + $0x89] sm:$0x1] %vm289_vm3, %v14998_v50  ;;  %314 = vst.msk [vmem:[#allocation2 + $0xa1] sm:$0x1] %vm289_vm3, %v14998_v50 }
 0x435   : > { %315 = vst.msk [vmem:[#allocation2 + $0xb9] sm:$0x1] %vm289_vm3, %v14998_v50  ;;  %316 = vst.msk [vmem:[#allocation2 + $0xd1] sm:$0x1] %vm289_vm3, %v14998_v50 }
 0x436   : > { %317 = vst.msk [vmem:[#allocation2 + $0xe9] sm:$0x1] %vm289_vm3, %v14998_v50  ;;  %318 = vst.msk [vmem:[#allocation2 + $0x101] sm:$0x1] %vm289_vm3, %v14998_v50 }
 0x437   : > { %13553 = vmatmul.mubr.msk.bf16.vlgmr.msra.gmra.mrb[16].mxu1 %vm383_vm1, %v16706_v11  ;;  %v11867_v11 = vld [vmem:[%s15070_s12 + $0x2f6] sm:$0xff]  ;;  %319 = vst.msk [vmem:[#allocation2 + $0x119] sm:$0x1] %vm289_vm3, %v14998_v50  ;;  %320 = vst.msk [vmem:[#allocation2 + $0x131] sm:$0x1] %vm289_vm3, %v14998_v50 }
 0x438   : > { %13556 = vmatprep.mubr.msk.bf16.mxu1 %vm383_vm1, %v16793_v61  ;;  %v11868_v61 = vld [vmem:[%s15070_s12 + $0x30e] sm:$0xff]  ;;  %321 = vst.msk [vmem:[#allocation2 + $0x149] sm:$0x1] %vm289_vm3, %v14998_v50  ;;  %322 = vst.msk [vmem:[#allocation2 + $0x161] sm:$0x1] %vm289_vm3, %v14998_v50 }
 0x439   : > { %323 = vst.msk [vmem:[#allocation2 + $0x179] sm:$0x1] %vm289_vm3, %v14998_v50  ;;  %324 = vst.msk [vmem:[#allocation2 + $0x191] sm:$0x1] %vm289_vm3, %v14998_v50 }
 0x43a   : > { %290 = vst.msk [vmem:[#allocation2] sm:$0x1] %vm289_vm3, %v14998_v50  ;;  %307 = vst.msk [vmem:[#allocation2 + $0x198] sm:$0x1] %vm289_vm3, %v14998_v50 }
 0x43b   : > { %284 = vst.msk [vmem:[#allocation2 + $0x10] sm:$0x3] %vm283_vm4, %v14998_v50  ;;  %288 = vst.msk [vmem:[#allocation2 + $0x1a8] sm:$0x3] %vm283_vm4, %v14998_v50 }
 0x43c   : > { %308 = vst.msk [vmem:[#allocation2 + $0x11] sm:$0x1] %vm289_vm3, %v14998_v50  ;;  %325 = vst.msk [vmem:[#allocation2 + $0x1a9] sm:$0x1] %vm289_vm3, %v14998_v50 }
 0x43f   : > { %13557 = vmatmul.mubr.msk.bf16.gmra.mrb[20].mxu1 %vm383_vm1, %v16795_v8  ;;  %v11869_v8 = vld [vmem:[%s15070_s12 + $0x316] sm:$0xff] }
 0x440   : > { %13560 = vmatprep.mubr.msk.bf16.mxu1 %vm383_vm1, %v16805_v60  ;;  %v7538_v60 = vpack.c.bf16 %v11867_v11, %v11866_v19  ;;  %v7539_v4 = vpack.c.bf16 %v11869_v8, %v11868_v61  ;;  %v14973_v19 = vld [vmem:[%s17711_s5] sm:$0xff]  }
 0x441   : > { %13620 = vmatprep.subr.bf16.mxu0 %v14973_v19  ;;  %v17013_v61 = vld [vmem:[%s17708_s2] ss:$0 sm:$0xff] }
 0x442   : > { %v7916_v17 = vld [vmem:[#allocation2 + $0x9] sm:$0xff] }
 0x443   : > { %v7947_v15 = vpack.c.bf16 %v7916_v17, %v7915_v54 }
 0x445   : > { %13588 = vmatprep.mubr.msk.bf16.mxu0 %vm280_vm2, %v7947_v15 }
 0x447   : > { %13561 = vmatmul.mubr.msk.bf16.gmra.mrb[24].mxu1 %vm383_vm1, %v16807_v2  ;;  %v11870_v2 = vld [vmem:[%s15070_s12 + $0x32e] sm:$0xff] }
 0x448   : > { %13564 = vmatprep.mubr.msk.bf16.mxu1 %vm383_vm1, %v16817_v55  ;;  %v11871_v55 = vld [vmem:[%s15070_s12 + $0x336] sm:$0xff] }
 0x449   : > { %v7540_v22 = vpack.c.bf16 %v11871_v55, %v11870_v2 }
 0x44f   : > { %13565 = vmatmul.mubr.msk.bf16.gmra.mrb[28].mxu1 %vm383_vm1, %v16819_v27  ;;  %v11872_v27 = vld [vmem:[%s15070_s12 + $0x34e] sm:$0xff] }
 0x450   : > { %13568 = vmatprep.mubr.msk.bf16.mxu1 %vm383_vm1, %v16827_v49  ;;  %v11873_v49 = vld [vmem:[%s15070_s12 + $0x356] sm:$0xff] }
 0x451   : > { %v7541_v43 = vpack.c.bf16 %v11873_v49, %v11872_v27 }
 0x457   : > { %13569 = vmatmul.mubr.msk.bf16.gmra.mrb[0].mxu1 %vm383_vm1, %v7538_v60 }
 0x458   : > { %13572 = vmatprep.mubr.msk.bf16.mxu1 %vm383_vm1, %v7539_v4 }
 0x45f   : > { %13573 = vmatmul.mubr.msk.bf16.gmra.mrb[4].mxu1 %vm383_vm1, %v7540_v22 }
 0x460   : > { %13576 = vmatprep.mubr.msk.bf16.mxu1 %vm383_vm1, %v7541_v43 }
 0x467   : > { %13577 = vmatmul.mubr.msk.bf16.gmra.mrb[8].mxu1 %vm383_vm1, %v7542_v32 }
 0x468   : > { %13580 = vmatprep.mubr.msk.bf16.mxu1 %vm383_vm1, %v7543_v57 }
 0x46f   : > { %13581 = vmatmul.mubr.msk.bf16.gmra.mrb[12].mxu1 %vm383_vm1, %v7544_v59 }
 0x50a   : > { %v13554_v11 = vpop.f32.mrb[16].mxu1 }
 0x50b   : > { %v13910_v8 = vadd.f32 %v13554_v11, %v16619_v40  ;;  %v7632_v60 = vpop.f32.mrb[17].mxu1 }
 0x50c   : > { %v13911_v4 = vadd.f32 %v7632_v60, %v16621_v23  ;;  %v13555_v2 = vpop.f32.mrb[18].mxu1 }
 0x50d   : > { %v7800_v55 = vadd.f32 %v13910_v8, %v17013_v61  ;;  %v13912_v27 = vadd.f32 %v13555_v2, %v16623_v7  ;;  %v7635_v49 = vpop.f32.mrb[19].mxu1 }
 0x50e   : > { %v7798_v22 = vadd.f32 %v13911_v4, %v17013_v61  ;;  %v13913_v43 = vadd.f32 %v7635_v49, %v16625_v31 }
 0x50f   : > { %7833 = vst.msk [vmem:[#allocation2 + $0x31] sm:$0xff] %vm280_vm2, %v7800_v55  ;;  %v7801_v35 = vadd.f32 %v13912_v27, %v17013_v61 }
 0x510   : > { %7831 = vst.msk [vmem:[#allocation2 + $0x19] sm:$0xff] %vm280_vm2, %v7798_v22  ;;  %v7799_v40 = vadd.f32 %v13913_v43, %v17013_v61 }
 0x511   : > { %7834 = vst.msk [vmem:[#allocation2 + $0x39] sm:$0xff] %vm280_vm2, %v7801_v35 }
 0x512   : > { %7832 = vst.msk [vmem:[#allocation2 + $0x21] sm:$0xff] %vm280_vm2, %v7799_v40  ;;  %v13558_v23 = vpop.f32.mrb[20].mxu1 }
 0x513   : > { %v13914_v7 = vadd.f32 %v13558_v23, %v16633_v28  ;;  %v7648_v41 = vpop.f32.mrb[21].mxu1 }
 0x514   : > { %v13915_v30 = vadd.f32 %v7648_v41, %v16635_v3  ;;  %v13559_v5 = vpop.f32.mrb[22].mxu1 }
 0x515   : > { %v7804_v31 = vadd.f32 %v13914_v7, %v17013_v61  ;;  %v13916_v32 = vadd.f32 %v13559_v5, %v16637_v45  ;;  %v7651_v57 = vpop.f32.mrb[23].mxu1 }
 0x516   : > { %v7802_v34 = vadd.f32 %v13915_v30, %v17013_v61  ;;  %v13917_v47 = vadd.f32 %v7651_v57, %v16639_v9  ;;  %v7919_v17 = vld [vmem:[#allocation2 + $0x31] sm:$0xff]  ;;  %v14974_v9 = vld [vmem:[%s17711_s5 + $0x8] sm:$0xff]  }
 0x517   : > { %7837 = vst.msk [vmem:[#allocation2 + $0x61] sm:$0xff] %vm280_vm2, %v7804_v31  ;;  %v7805_v59 = vadd.f32 %v13916_v32, %v17013_v61  ;;  %v7917_v3 = vld [vmem:[#allocation2 + $0x19] sm:$0xff] }
 0x518   : > { %7835 = vst.msk [vmem:[#allocation2 + $0x49] sm:$0xff] %vm280_vm2, %v7802_v34  ;;  %v7803_v28 = vadd.f32 %v13917_v47, %v17013_v61  ;;  %v7920_v50 = vld [vmem:[#allocation2 + $0x39] sm:$0xff] }
 0x519   : > { %7838 = vst.msk [vmem:[#allocation2 + $0x69] sm:$0xff] %vm280_vm2, %v7805_v59  ;;  %v7918_v1 = vld [vmem:[#allocation2 + $0x21] sm:$0xff]  ;;  %v17045_v8 = vpack.c.bf16 %v7920_v50, %v7919_v17 }
 0x51a   : > { %7836 = vst.msk [vmem:[#allocation2 + $0x51] sm:$0xff] %vm280_vm2, %v7803_v28  ;;  %v13562_v45 = vpop.f32.mrb[24].mxu1  ;;  %v17039_v54 = vpack.c.bf16 %v7918_v1, %v7917_v3 }
 0x51b   : > { %v13918_v15 = vadd.f32 %v13562_v45, %v16647_v37  ;;  %v7664_v11 = vpop.f32.mrb[25].mxu1 }
 0x51c   : > { %v13919_v60 = vadd.f32 %v7664_v11, %v16651_v52  ;;  %v13563_v4 = vpop.f32.mrb[26].mxu1  ;;  %13589 = vmatmul.mubr.msk.bf16.vlgmr.msra.gmra.mrb[64].mxu0 %vm280_vm2, %v17039_v54  ;;  %v17059_v52 = vld [vmem:[%s17711_s5 + $0x20] sm:$0xff]  }
 0x51d   : > { %v7808_v2 = vadd.f32 %v13918_v15, %v17013_v61  ;;  %v13920_v55 = vadd.f32 %v13563_v4, %v16655_v56  ;;  %13621 = vmatpush3.bf16.msra.mxu0 %v14973_v19  ;;  %v7667_v27 = vpop.f32.mrb[27].mxu1  ;;  %13592 = vmatprep.mubr.msk.bf16.mxu0 %vm280_vm2, %v17045_v8 }
 0x51e   : > { %v7806_v37 = vadd.f32 %v13919_v60, %v17013_v61  ;;  %v13921_v49 = vadd.f32 %v7667_v27, %v16657_v29  ;;  %13622 = vmatprep.subr.bf16.mxu0 %v14974_v9  ;;  %v7923_v23 = vld [vmem:[#allocation2 + $0x61] sm:$0xff] }
 0x51f   : > { %7841 = vst.msk [vmem:[#allocation2 + $0x91] sm:$0xff] %vm280_vm2, %v7808_v2  ;;  %v7809_v22 = vadd.f32 %v13920_v55, %v17013_v61  ;;  %v7921_v43 = vld [vmem:[#allocation2 + $0x49] sm:$0xff] }
 0x520   : > { %7839 = vst.msk [vmem:[#allocation2 + $0x79] sm:$0xff] %vm280_vm2, %v7806_v37  ;;  %v7807_v56 = vadd.f32 %v13921_v49, %v17013_v61  ;;  %v7924_v19 = vld [vmem:[#allocation2 + $0x69] sm:$0xff] }
 0x521   : > { %7842 = vst.msk [vmem:[#allocation2 + $0x99] sm:$0xff] %vm280_vm2, %v7809_v22  ;;  %v7922_v35 = vld [vmem:[#allocation2 + $0x51] sm:$0xff]  ;;  %13623 = vmatpush3.bf16.msra.mxu0 %v14974_v9  ;;  %v17071_v30 = vpack.c.bf16 %v7924_v19, %v7923_v23 }
 0x522   : > { %7840 = vst.msk [vmem:[#allocation2 + $0x81] sm:$0xff] %vm280_vm2, %v7807_v56  ;;  %v13566_v29 = vpop.f32.mrb[28].mxu1  ;;  %v17067_v40 = vpack.c.bf16 %v7922_v35, %v7921_v43  ;;  %13656 = vmatprep.subr.bf16.mxu0 %v17059_v52 }
 0x523   : > { %v13922_v7 = vadd.f32 %v13566_v29, %v16667_v6  ;;  %v7680_v41 = vpop.f32.mrb[29].mxu1 }
 0x524   : > { %v13923_v5 = vadd.f32 %v7680_v41, %v16671_v42  ;;  %v13567_v31 = vpop.f32.mrb[30].mxu1  ;;  %13593 = vmatmul.mubr.msk.bf16.gmra.mrb[68].mxu0 %vm280_vm2, %v17067_v40 }
 0x525   : > { %v7812_v32 = vadd.f32 %v13922_v7, %v17013_v61  ;;  %v13924_v57 = vadd.f32 %v13567_v31, %v16675_v12  ;;  %v7683_v34 = vpop.f32.mrb[31].mxu1  ;;  %13596 = vmatprep.mubr.msk.bf16.mxu0 %vm280_vm2, %v17071_v30 }
 0x526   : > { %v7810_v47 = vadd.f32 %v13923_v5, %v17013_v61  ;;  %v13925_v6 = vadd.f32 %v7683_v34, %v16677_v13  ;;  %v7927_v45 = vld [vmem:[#allocation2 + $0x91] sm:$0xff] }
 0x527   : > { %7845 = vst.msk [vmem:[#allocation2 + $0xc1] sm:$0xff] %vm280_vm2, %v7812_v32  ;;  %v7813_v42 = vadd.f32 %v13924_v57, %v17013_v61  ;;  %v7925_v12 = vld [vmem:[#allocation2 + $0x79] sm:$0xff] }
 0x528   : > { %7843 = vst.msk [vmem:[#allocation2 + $0xa9] sm:$0xff] %vm280_vm2, %v7810_v47  ;;  %v7811_v59 = vadd.f32 %v13925_v6, %v17013_v61  ;;  %v7928_v28 = vld [vmem:[#allocation2 + $0x99] sm:$0xff] }
 0x529   : > { %7846 = vst.msk [vmem:[#allocation2 + $0xc9] sm:$0xff] %vm280_vm2, %v7813_v42  ;;  %v7926_v50 = vld [vmem:[#allocation2 + $0x81] sm:$0xff]  ;;  %v17091_v9 = vpack.c.bf16 %v7928_v28, %v7927_v45 }
 0x52a   : > { %7844 = vst.msk [vmem:[#allocation2 + $0xb1] sm:$0xff] %vm280_vm2, %v7811_v59  ;;  %v13570_v3 = vpop.f32.mrb[0].mxu1  ;;  %v17088_v1 = vpack.c.bf16 %v7926_v50, %v7925_v12 }
 0x52b   : > { %v13926_v13 = vadd.f32 %v13570_v3, %v16555_v33  ;;  %v7696_v17 = vpop.f32.mrb[1].mxu1 }
 0x52c   : > { %v13927_v15 = vadd.f32 %v7696_v17, %v16557_v46  ;;  %v13571_v11 = vpop.f32.mrb[2].mxu1  ;;  %13597 = vmatmul.mubr.msk.bf16.gmra.mrb[72].mxu0 %vm280_vm2, %v17088_v1 }
 0x52d   : > { %v7816_v60 = vadd.f32 %v13926_v13, %v17013_v61  ;;  %v13928_v4 = vadd.f32 %v13571_v11, %v16559_v38  ;;  %v7699_v2 = vpop.f32.mrb[3].mxu1  ;;  %13600 = vmatprep.mubr.msk.bf16.mxu0 %vm280_vm2, %v17091_v9 }
 0x52e   : > { %v7814_v55 = vadd.f32 %v13927_v15, %v17013_v61  ;;  %v13929_v33 = vadd.f32 %v7699_v2, %v16561_v0  ;;  %v7931_v19 = vld [vmem:[#allocation2 + $0xc1] sm:$0xff] }
 0x52f   : > { %7849 = vst.msk [vmem:[#allocation2 + $0xf1] sm:$0xff] %vm280_vm2, %v7816_v60  ;;  %v7817_v46 = vadd.f32 %v13928_v4, %v17013_v61  ;;  %v7929_v38 = vld [vmem:[#allocation2 + $0xa9] sm:$0xff] }
 0x530   : > { %7847 = vst.msk [vmem:[#allocation2 + $0xd9] sm:$0xff] %vm280_vm2, %v7814_v55  ;;  %v7815_v27 = vadd.f32 %v13929_v33, %v17013_v61  ;;  %v7932_v37 = vld [vmem:[#allocation2 + $0xc9] sm:$0xff] }
 0x531   : > { %7850 = vst.msk [vmem:[#allocation2 + $0xf9] sm:$0xff] %vm280_vm2, %v7817_v46  ;;  %v7930_v49 = vld [vmem:[#allocation2 + $0xb1] sm:$0xff]  ;;  %v17111_v35 = vpack.c.bf16 %v7932_v37, %v7931_v19 }
 0x532   : > { %7848 = vst.msk [vmem:[#allocation2 + $0xe1] sm:$0xff] %vm280_vm2, %v7815_v27  ;;  %v13574_v22 = vpop.f32.mrb[4].mxu1  ;;  %v17108_v56 = vpack.c.bf16 %v7930_v49, %v7929_v38 }
 0x533   : > { %v13930_v0 = vadd.f32 %v13574_v22, %v16567_v58  ;;  %v7712_v43 = vpop.f32.mrb[5].mxu1 }
 0x534   : > { %v13931_v29 = vadd.f32 %v7712_v43, %v16569_v21  ;;  %v13575_v23 = vpop.f32.mrb[6].mxu1  ;;  %13601 = vmatmul.mubr.msk.bf16.gmra.mrb[76].mxu0 %vm280_vm2, %v17108_v56 }
 0x535   : > { %v7820_v7 = vadd.f32 %v13930_v0, %v17013_v61  ;;  %v13932_v41 = vadd.f32 %v13575_v23, %v16571_v48  ;;  %v7715_v5 = vpop.f32.mrb[7].mxu1  ;;  %13604 = vmatprep.mubr.msk.bf16.mxu0 %vm280_vm2, %v17111_v35 }
 0x536   : > { %v7818_v31 = vadd.f32 %v13931_v29, %v17013_v61  ;;  %v13933_v58 = vadd.f32 %v7715_v5, %v16573_v44  ;;  %v7935_v42 = vld [vmem:[#allocation2 + $0xf1] sm:$0xff] }
 0x537   : > { %7853 = vst.msk [vmem:[#allocation2 + $0x121] sm:$0xff] %vm280_vm2, %v7820_v7  ;;  %v7821_v21 = vadd.f32 %v13932_v41, %v17013_v61  ;;  %v7933_v48 = vld [vmem:[#allocation2 + $0xd9] sm:$0xff] }
 0x538   : > { %7851 = vst.msk [vmem:[#allocation2 + $0x109] sm:$0xff] %vm280_vm2, %v7818_v31  ;;  %v7819_v32 = vadd.f32 %v13933_v58, %v17013_v61  ;;  %v7936_v57 = vld [vmem:[#allocation2 + $0xf9] sm:$0xff] }
 0x539   : > { %7854 = vst.msk [vmem:[#allocation2 + $0x129] sm:$0xff] %vm280_vm2, %v7821_v21  ;;  %v7934_v34 = vld [vmem:[#allocation2 + $0xe1] sm:$0xff]  ;;  %v17131_v28 = vpack.c.bf16 %v7936_v57, %v7935_v42  ;;  %v7868_v57 = vld [vmem:[#allocation2 + $0x38] sm:$0xff] }
 0x53a   : > { %7852 = vst.msk [vmem:[#allocation2 + $0x111] sm:$0xff] %vm280_vm2, %v7819_v32  ;;  %v13578_v47 = vpop.f32.mrb[8].mxu1  ;;  %v17128_v6 = vpack.c.bf16 %v7934_v34, %v7933_v48  ;;  %v7866_v32 = vld [vmem:[#allocation2 + $0x20] sm:$0xff]  ;;  %v7865_v48 = vld [vmem:[#allocation2 + $0x18] sm:$0xff]  ;;  %v14976_v42 = vld [vmem:[%s17711_s5 + $0x28] sm:$0xff]  }
 0x53b   : > { %v13934_v44 = vadd.f32 %v13578_v47, %v16581_v26  ;;  %v7728_v59 = vpop.f32.mrb[9].mxu1  ;;  %v17181_v34 = vpack.c.bf16 %v7866_v32, %v7865_v48  ;;  %v7867_v47 = vld [vmem:[#allocation2 + $0x30] sm:$0xff] }
 0x53c   : > { %v13935_v12 = vadd.f32 %v7728_v59, %v16583_v25  ;;  %v13579_v50 = vpop.f32.mrb[10].mxu1  ;;  %13605 = vmatmul.mubr.msk.bf16.gmra.mrb[80].mxu0 %vm280_vm2, %v17128_v6  ;;  %v17196_v59 = vld [vmem:[%s17711_s5 + $0x30] sm:$0xff]  }
 0x53d   : > { %v7824_v3 = vadd.f32 %v13934_v44, %v17013_v61  ;;  %v13936_v45 = vadd.f32 %v13579_v50, %v16585_v62  ;;  %v7731_v13 = vpop.f32.mrb[11].mxu1  ;;  %13608 = vmatprep.mubr.msk.bf16.mxu0 %vm280_vm2, %v17131_v28  ;;  %v17186_v44 = vpack.c.bf16 %v7868_v57, %v7867_v47  ;;  %v7872_v50 = vld [vmem:[#allocation2 + $0x68] sm:$0xff] }
 0x53e   : > { %v7822_v17 = vadd.f32 %v13935_v12, %v17013_v61  ;;  %v13937_v26 = vadd.f32 %v7731_v13, %v16587_v16  ;;  %v7939_v55 = vld [vmem:[#allocation2 + $0x121] sm:$0xff]  ;;  %v7870_v12 = vld [vmem:[#allocation2 + $0x50] sm:$0xff] }
 0x53f   : > { %7857 = vst.msk [vmem:[#allocation2 + $0x151] sm:$0xff] %vm280_vm2, %v7824_v3  ;;  %v7825_v25 = vadd.f32 %v13936_v45, %v17013_v61  ;;  %v7937_v62 = vld [vmem:[#allocation2 + $0x109] sm:$0xff]  ;;  %v7871_v13 = vld [vmem:[#allocation2 + $0x60] sm:$0xff] }
 0x540   : > { %7855 = vst.msk [vmem:[#allocation2 + $0x139] sm:$0xff] %vm280_vm2, %v7822_v17  ;;  %v7823_v15 = vadd.f32 %v13937_v26, %v17013_v61  ;;  %v7940_v11 = vld [vmem:[#allocation2 + $0x129] sm:$0xff]  ;;  %v17201_v17 = vpack.c.bf16 %v7872_v50, %v7871_v13  ;;  %v7876_v26 = vld [vmem:[#allocation2 + $0x98] sm:$0xff] }
 0x541   : > { %7858 = vst.msk [vmem:[#allocation2 + $0x159] sm:$0xff] %vm280_vm2, %v7825_v25  ;;  %v7938_v60 = vld [vmem:[#allocation2 + $0x111] sm:$0xff]  ;;  %v17151_v46 = vpack.c.bf16 %v7940_v11, %v7939_v55  ;;  %v7869_v3 = vld [vmem:[#allocation2 + $0x48] sm:$0xff] }
 0x542   : > { %7856 = vst.msk [vmem:[#allocation2 + $0x141] sm:$0xff] %vm280_vm2, %v7823_v15  ;;  %v13582_v4 = vpop.f32.mrb[12].mxu1  ;;  %v17148_v2 = vpack.c.bf16 %v7938_v60, %v7937_v62  ;;  %v17198_v45 = vpack.c.bf16 %v7870_v12, %v7869_v3  ;;  %v7873_v25 = vld [vmem:[#allocation2 + $0x78] sm:$0xff]  ;;  %v7875_v11 = vld [vmem:[#allocation2 + $0x90] sm:$0xff]  ;;  %v7877_v55 = vld [vmem:[#allocation2 + $0xa8] sm:$0xff] }
 0x543   : > { %v13938_v16 = vadd.f32 %v13582_v4, %v16596_v51  ;;  %v7744_v33 = vpop.f32.mrb[13].mxu1  ;;  %v17209_v62 = vpack.c.bf16 %v7876_v26, %v7875_v11  ;;  %v7878_v60 = vld [vmem:[#allocation2 + $0xb0] sm:$0xff]  ;;  %v7880_v4 = vld [vmem:[#allocation2 + $0xc8] sm:$0xff]  ;;  %v8412_v3 = vld [vmem:[#allocation2 + $0x1a] sm:$0xff] }
 0x544   : > { %v13939_v27 = vadd.f32 %v7744_v33, %v16598_v10  ;;  %v13583_v37 = vpop.f32.mrb[14].mxu1  ;;  %13609 = vmatmul.mubr.msk.bf16.gmra.mrb[84].mxu0 %vm280_vm2, %v17148_v2  ;;  %v7879_v33 = vld [vmem:[#allocation2 + $0xc0] sm:$0xff]  ;;  %v8411_v48 = vld [vmem:[#allocation2 + $0xa] sm:$0xff]  ;;  %v14978_v11 = vld [vmem:[%s17711_s5 + $0x38] sm:$0xff]  }
 0x545   : > { %v7828_v38 = vadd.f32 %v13938_v16, %v17013_v61  ;;  %v13940_v49 = vadd.f32 %v13583_v37, %v16600_v24  ;;  %v7747_v22 = vpop.f32.mrb[15].mxu1  ;;  %13612 = vmatprep.mubr.msk.bf16.mxu0 %vm280_vm2, %v17151_v46  ;;  %v17215_v16 = vpack.c.bf16 %v7878_v60, %v7877_v55  ;;  %v7882_v37 = vld [vmem:[#allocation2 + $0xe0] sm:$0xff]  ;;  %v8416_v55 = vld [vmem:[#allocation2 + $0x4a] sm:$0xff] }
 0x546   : > { %v7826_v19 = vadd.f32 %v13939_v27, %v17013_v61  ;;  %v13941_v51 = vadd.f32 %v7747_v22, %v16604_v18  ;;  %v7943_v7 = vld [vmem:[#allocation2 + $0x151] sm:$0xff]  ;;  %v7863_v18 = vld [vmem:[#allocation2] sm:$0xff]  ;;  %v17217_v27 = vpack.c.bf16 %v7880_v4, %v7879_v33 }
 0x547   : > { %7861 = vst.msk [vmem:[#allocation2 + $0x181] sm:$0xff] %vm280_vm2, %v7828_v38  ;;  %v7829_v10 = vadd.f32 %v13940_v49, %v17013_v61  ;;  %v7941_v24 = vld [vmem:[#allocation2 + $0x139] sm:$0xff]  ;;  %v8410_v57 = vld [vmem:[#allocation2 + $0x2] sm:$0xff] }
 0x548   : > { %7859 = vst.msk [vmem:[#allocation2 + $0x169] sm:$0xff] %vm280_vm2, %v7826_v19  ;;  %v7827_v0 = vadd.f32 %v13941_v51, %v17013_v61  ;;  %v7944_v43 = vld [vmem:[#allocation2 + $0x159] sm:$0xff]  ;;  %v7864_v61 = vld [vmem:[#allocation2 + $0x8] sm:$0xff]  ;;  %v7883_v19 = vld [vmem:[#allocation2 + $0xf0] sm:$0xff]  ;;  %v8442_v12 = vpack.c.bf16 %v8411_v48, %v8410_v57 }
 0x549   : > { %7862 = vst.msk [vmem:[#allocation2 + $0x189] sm:$0xff] %vm280_vm2, %v7829_v10  ;;  %v7942_v29 = vld [vmem:[#allocation2 + $0x141] sm:$0xff]  ;;  %v17170_v41 = vpack.c.bf16 %v7944_v43, %v7943_v7  ;;  %v7895_v58 = vpack.c.bf16 %v7864_v61, %v7863_v18  ;;  %v7884_v38 = vld [vmem:[#allocation2 + $0xf8] sm:$0xff]  ;;  %v7886_v10 = vld [vmem:[#allocation2 + $0x110] sm:$0xff] }
 0x54a   : > { %7860 = vst.msk [vmem:[#allocation2 + $0x171] sm:$0xff] %vm280_vm2, %v7827_v0  ;;  %v17168_v23 = vpack.c.bf16 %v7942_v29, %v7941_v24  ;;  %v7881_v49 = vld [vmem:[#allocation2 + $0xd8] sm:$0xff]  ;;  %v17225_v51 = vpack.c.bf16 %v7884_v38, %v7883_v19  ;;  %v7888_v0 = vld [vmem:[#allocation2 + $0x128] sm:$0xff]  ;;  %v7887_v29 = vld [vmem:[#allocation2 + $0x120] sm:$0xff] }
 0x54b   : > { %v17223_v22 = vpack.c.bf16 %v7882_v37, %v7881_v49  ;;  %v7885_v43 = vld [vmem:[#allocation2 + $0x108] sm:$0xff]  ;;  %v17233_v7 = vpack.c.bf16 %v7888_v0, %v7887_v29  ;;  %v7890_v18 = vld [vmem:[#allocation2 + $0x140] sm:$0xff]  ;;  %v7892_v61 = vld [vmem:[#allocation2 + $0x158] sm:$0xff] }
 0x54c   : > { %13613 = vmatmul.mubr.msk.bf16.gmra.mrb[88].mxu0 %vm280_vm2, %v17168_v23  ;;  %v17231_v24 = vpack.c.bf16 %v7886_v10, %v7885_v43  ;;  %v8413_v13 = vld [vmem:[#allocation2 + $0x22] sm:$0xff]  ;;  %v8415_v26 = vld [vmem:[#allocation2 + $0x3a] sm:$0xff]  ;;  %v8417_v33 = vld [vmem:[#allocation2 + $0x52] sm:$0xff] }
 0x54d   : > { %13616 = vmatprep.mubr.msk.bf16.mxu0 %vm280_vm2, %v17170_v41  ;;  %v14979_v4 = vld [vmem:[%s17711_s5 + $0x40] sm:$0xff]   ;;  %v8419_v38 = vld [vmem:[#allocation2 + $0x6a] sm:$0xff]  ;;  %v17267_v49 = vpack.c.bf16 %v8417_v33, %v8416_v55  ;;  %v8422_v0 = vld [vmem:[#allocation2 + $0x92] sm:$0xff] }
 0x54e   : > { %v8418_v37 = vld [vmem:[#allocation2 + $0x62] sm:$0xff]  ;;  %v8423_v43 = vld [vmem:[#allocation2 + $0x9a] sm:$0xff]  ;;  %v8427_v57 = vld [vmem:[#allocation2 + $0xca] sm:$0xff] }
 0x54f   : > { %v7945_v5 = vld [vmem:[#allocation2 + $0x169] sm:$0xff]  ;;  %v17269_v19 = vpack.c.bf16 %v8419_v38, %v8418_v37  ;;  %v8433_v55 = vld [vmem:[#allocation2 + $0x112] sm:$0xff] }
 0x550   : > { %v8421_v10 = vld [vmem:[#allocation2 + $0x82] sm:$0xff]  ;;  %v8435_v37 = vld [vmem:[#allocation2 + $0x12a] sm:$0xff] }
 0x551   : > { %v7946_v31 = vld [vmem:[#allocation2 + $0x171] sm:$0xff]  ;;  %v8434_v33 = vld [vmem:[#allocation2 + $0x122] sm:$0xff] }
 0x552   : > { %v17176_v21 = vpack.c.bf16 %v7946_v31, %v7945_v5  ;;  %v7889_v5 = vld [vmem:[#allocation2 + $0x138] sm:$0xff]  ;;  %v7894_v47 = vld [vmem:[#allocation2 + $0x170] sm:$0xff] }
 0x553   : > { %v17239_v31 = vpack.c.bf16 %v7890_v18, %v7889_v5  ;;  %v17277_v18 = vpack.c.bf16 %v8423_v43, %v8422_v0  ;;  %v8425_v5 = vld [vmem:[#allocation2 + $0xb2] sm:$0xff]  ;;  %v8437_v0 = vld [vmem:[#allocation2 + $0x142] sm:$0xff] }
 0x554   : > { %13617 = vmatmul.mubr.msk.bf16.gmra.mrb[92].mxu0 %vm280_vm2, %v17176_v21  ;;  %v8438_v43 = vld [vmem:[#allocation2 + $0x152] sm:$0xff] }
 0x555   : > { %13624 = vmatprep.mubr.msk.bf16.mxu0 %vm280_vm2, %v7895_v58  ;;  %v7891_v58 = vld [vmem:[#allocation2 + $0x150] sm:$0xff] }
 0x556   : > { %v17241_v32 = vpack.c.bf16 %v7892_v61, %v7891_v58  ;;  %v8424_v61 = vld [vmem:[#allocation2 + $0xaa] sm:$0xff]  ;;  %v8426_v58 = vld [vmem:[#allocation2 + $0xc2] sm:$0xff] }
 0x557   : > { %v17283_v48 = vpack.c.bf16 %v8425_v5, %v8424_v61  ;;  %v8439_v61 = vld [vmem:[#allocation2 + $0x15a] sm:$0xff] }
 0x55c   : > { %13625 = vmatmul.mubr.msk.bf16.vlgmr.msra.gmra.mrb[64].mxu0 %vm280_vm2, %v17181_v34 }
 0x55d   : > { %13657 = vmatpush3.bf16.msra.mxu0 %v17059_v52  ;;  %13628 = vmatprep.mubr.msk.bf16.mxu0 %vm280_vm2, %v17186_v44  ;;  %v7874_v52 = vld [vmem:[#allocation2 + $0x80] sm:$0xff] }
 0x55e   : > { %13658 = vmatprep.subr.bf16.mxu0 %v14976_v42  ;;  %v17207_v15 = vpack.c.bf16 %v7874_v52, %v7873_v25  ;;  %v8414_v52 = vld [vmem:[#allocation2 + $0x32] sm:$0xff]  ;;  %v17252_v25 = vpack.c.bf16 %v8413_v13, %v8412_v3  ;;  %v8431_v13 = vld [vmem:[#allocation2 + $0xfa] sm:$0xff] }
 0x55f   : > { %v17257_v60 = vpack.c.bf16 %v8415_v26, %v8414_v52  ;;  %v8430_v3 = vld [vmem:[#allocation2 + $0xf2] sm:$0xff] }
 0x560   : > { %v17293_v26 = vpack.c.bf16 %v8431_v13, %v8430_v3  ;;  %v14980_v3 = vld [vmem:[%s17711_s5 + $0x48] sm:$0xff]   ;;  %v14981_v13 = vld [vmem:[%s17711_s5 + $0x50] sm:$0xff]  }
 0x561   : > { %13659 = vmatpush3.bf16.msra.mxu0 %v14976_v42  ;;  %v7893_v42 = vld [vmem:[#allocation2 + $0x168] sm:$0xff] }
 0x562   : > { %13692 = vmatprep.subr.bf16.mxu0 %v17196_v59  ;;  %v17247_v50 = vpack.c.bf16 %v7894_v47, %v7893_v42  ;;  %v17285_v47 = vpack.c.bf16 %v8427_v57, %v8426_v58  ;;  %v8428_v42 = vld [vmem:[#allocation2 + $0xda] sm:$0xff]  ;;  %v17309_v58 = vpack.c.bf16 %v8439_v61, %v8438_v43  ;;  %v8440_v57 = vld [vmem:[#allocation2 + $0x16a] sm:$0xff] }
 0x563   : > { %v9953_v43 = vld [vmem:[#allocation2 + $0xc1] sm:$0xff] }
 0x564   : > { %13629 = vmatmul.mubr.msk.bf16.gmra.mrb[68].mxu0 %vm280_vm2, %v17198_v45 }
 0x565   : > { %13632 = vmatprep.mubr.msk.bf16.mxu0 %vm280_vm2, %v17201_v17 }
 0x56c   : > { %13633 = vmatmul.mubr.msk.bf16.gmra.mrb[72].mxu0 %vm280_vm2, %v17207_v15 }
 0x56d   : > { %13636 = vmatprep.mubr.msk.bf16.mxu0 %vm280_vm2, %v17209_v62 }
 0x574   : > { %13637 = vmatmul.mubr.msk.bf16.gmra.mrb[76].mxu0 %vm280_vm2, %v17215_v16 }
 0x575   : > { %13640 = vmatprep.mubr.msk.bf16.mxu0 %vm280_vm2, %v17217_v27 }
 0x57c   : > { %13641 = vmatmul.mubr.msk.bf16.gmra.mrb[80].mxu0 %vm280_vm2, %v17223_v22 }
 0x57d   : > { %13644 = vmatprep.mubr.msk.bf16.mxu0 %vm280_vm2, %v17225_v51 }
 0x584   : > { %13645 = vmatmul.mubr.msk.bf16.gmra.mrb[84].mxu0 %vm280_vm2, %v17231_v24 }
 0x585   : > { %13648 = vmatprep.mubr.msk.bf16.mxu0 %vm280_vm2, %v17233_v7 }
 0x58c   : > { %13649 = vmatmul.mubr.msk.bf16.gmra.mrb[88].mxu0 %vm280_vm2, %v17239_v31 }
 0x58d   : > { %13652 = vmatprep.mubr.msk.bf16.mxu0 %vm280_vm2, %v17241_v32 }
 0x594   : > { %13653 = vmatmul.mubr.msk.bf16.gmra.mrb[92].mxu0 %vm280_vm2, %v17247_v50 }
 0x595   : > { %13660 = vmatprep.mubr.msk.bf16.mxu0 %vm280_vm2, %v8442_v12  ;;  %v8429_v12 = vld [vmem:[#allocation2 + $0xe2] sm:$0xff] }
 0x596   : > { %v17291_v52 = vpack.c.bf16 %v8429_v12, %v8428_v42  ;;  %v8441_v42 = vld [vmem:[#allocation2 + $0x172] sm:$0xff] }
 0x597   : > { %v17315_v12 = vpack.c.bf16 %v8441_v42, %v8440_v57  ;;  %v9956_v57 = vld [vmem:[#allocation2 + $0xe1] sm:$0xff]  ;;  %v9958_v42 = vld [vmem:[#allocation2 + $0xf9] sm:$0xff] }
 0x59c   : > { %13661 = vmatmul.mubr.msk.bf16.vlgmr.msra.gmra.mrb[64].mxu0 %vm280_vm2, %v17252_v25 }
 0x59d   : > { %13693 = vmatpush3.bf16.msra.mxu0 %v17196_v59  ;;  %13664 = vmatprep.mubr.msk.bf16.mxu0 %vm280_vm2, %v17257_v60  ;;  %v8420_v59 = vld [vmem:[#allocation2 + $0x7a] sm:$0xff] }
 0x59e   : > { %13694 = vmatprep.subr.bf16.mxu0 %v14978_v11  ;;  %v17275_v29 = vpack.c.bf16 %v8421_v10, %v8420_v59  ;;  %v17301_v59 = vpack.c.bf16 %v8435_v37, %v8434_v33  ;;  %v8436_v10 = vld [vmem:[#allocation2 + $0x13a] sm:$0xff]  ;;  %v9954_v37 = vld [vmem:[#allocation2 + $0xc9] sm:$0xff] }
 0x59f   : > { %v17307_v5 = vpack.c.bf16 %v8437_v0, %v8436_v10  ;;  %v14983_v33 = vld [vmem:[%s17711_s5 + $0x60] sm:$0xff]   ;;  %v9951_v10 = vld [vmem:[#allocation2 + $0xa9] sm:$0xff]  ;;  %v9979_v61 = vpack.c.bf16 %v9954_v37, %v9953_v43 }
 0x5a1   : > { %13695 = vmatpush3.bf16.msra.mxu0 %v14978_v11  ;;  %v8432_v11 = vld [vmem:[#allocation2 + $0x10a] sm:$0xff] }
 0x5a2   : > { %13728 = vmatprep.subr.bf16.mxu0 %v14979_v4  ;;  %v17299_v38 = vpack.c.bf16 %v8433_v55, %v8432_v11  ;;  %v14982_v55 = vld [vmem:[%s17711_s5 + $0x58] sm:$0xff]  }
 0x5a4   : > { %13665 = vmatmul.mubr.msk.bf16.gmra.mrb[68].mxu0 %vm280_vm2, %v17267_v49 }
 0x5a5   : > { %13668 = vmatprep.mubr.msk.bf16.mxu0 %vm280_vm2, %v17269_v19 }
 0x5ac   : > { %13669 = vmatmul.mubr.msk.bf16.gmra.mrb[72].mxu0 %vm280_vm2, %v17275_v29 }
 0x5ad   : > { %13672 = vmatprep.mubr.msk.bf16.mxu0 %vm280_vm2, %v17277_v18 }
 0x5b4   : > { %13673 = vmatmul.mubr.msk.bf16.gmra.mrb[76].mxu0 %vm280_vm2, %v17283_v48 }
 0x5b5   : > { %13676 = vmatprep.mubr.msk.bf16.mxu0 %vm280_vm2, %v17285_v47 }
 0x5bc   : > { %13677 = vmatmul.mubr.msk.bf16.gmra.mrb[80].mxu0 %vm280_vm2, %v17291_v52 }
 0x5bd   : > { %13680 = vmatprep.mubr.msk.bf16.mxu0 %vm280_vm2, %v17293_v26 }
 0x5c4   : > { %13681 = vmatmul.mubr.msk.bf16.gmra.mrb[84].mxu0 %vm280_vm2, %v17299_v38 }
 0x5c5   : > { %13684 = vmatprep.mubr.msk.bf16.mxu0 %vm280_vm2, %v17301_v59 }
 0x5cc   : > { %13685 = vmatmul.mubr.msk.bf16.gmra.mrb[88].mxu0 %vm280_vm2, %v17307_v5 }
 0x5cd   : > { %13688 = vmatprep.mubr.msk.bf16.mxu0 %vm280_vm2, %v17309_v58 }
 0x5d4   : > { %13689 = vmatmul.mubr.msk.bf16.gmra.mrb[92].mxu0 %vm280_vm2, %v17315_v12 }
 0x5d5   : > { %13696 = vmatprep.mubr.msk.bf16.mxu0 %vm280_vm2, %v17181_v34  ;;  %v8747_v34 = vld [vmem:[#allocation2 + $0x188] sm:$0xff] }
 0x5dc   : > { %13697 = vmatmul.mubr.msk.bf16.vlgmr.msra.gmra.mrb[64].mxu0 %vm280_vm2, %v17186_v44 }
 0x5dd   : > { %13729 = vmatpush3.bf16.msra.mxu0 %v14979_v4  ;;  %13700 = vmatprep.mubr.msk.bf16.mxu0 %vm280_vm2, %v17198_v45  ;;  %v8746_v4 = vld [vmem:[#allocation2 + $0x180] sm:$0xff] }
 0x5de   : > { %13730 = vmatprep.subr.bf16.mxu0 %v14980_v3  ;;  %v17355_v11 = vpack.c.bf16 %v8747_v34, %v8746_v4  ;;  %v9957_v34 = vld [vmem:[#allocation2 + $0xf1] sm:$0xff] }
 0x5df   : > { %v9981_v4 = vpack.c.bf16 %v9958_v42, %v9957_v34 }
 0x5e1   : > { %13731 = vmatpush3.bf16.msra.mxu0 %v14980_v3  ;;  %v9955_v3 = vld [vmem:[#allocation2 + $0xd9] sm:$0xff] }
 0x5e2   : > { %13764 = vmatprep.subr.bf16.mxu0 %v14981_v13 }
 0x5e4   : > { %13701 = vmatmul.mubr.msk.bf16.gmra.mrb[68].mxu0 %vm280_vm2, %v17201_v17 }
 0x5e5   : > { %13704 = vmatprep.mubr.msk.bf16.mxu0 %vm280_vm2, %v17207_v15 }
 0x5ec   : > { %13705 = vmatmul.mubr.msk.bf16.gmra.mrb[72].mxu0 %vm280_vm2, %v17209_v62 }
 0x5ed   : > { %13708 = vmatprep.mubr.msk.bf16.mxu0 %vm280_vm2, %v17215_v16 }
 0x5f4   : > { %13709 = vmatmul.mubr.msk.bf16.gmra.mrb[76].mxu0 %vm280_vm2, %v17217_v27 }
 0x5f5   : > { %13712 = vmatprep.mubr.msk.bf16.mxu0 %vm280_vm2, %v17223_v22 }
 0x5fc   : > { %13713 = vmatmul.mubr.msk.bf16.gmra.mrb[80].mxu0 %vm280_vm2, %v17225_v51 }
 0x5fd   : > { %13716 = vmatprep.mubr.msk.bf16.mxu0 %vm280_vm2, %v17231_v24 }
 0x604   : > { %13717 = vmatmul.mubr.msk.bf16.gmra.mrb[84].mxu0 %vm280_vm2, %v17233_v7 }
 0x605   : > { %13720 = vmatprep.mubr.msk.bf16.mxu0 %vm280_vm2, %v17239_v31 }
 0x60c   : > { %13721 = vmatmul.mubr.msk.bf16.gmra.mrb[88].mxu0 %vm280_vm2, %v17241_v32 }
 0x60d   : > { %13724 = vmatprep.mubr.msk.bf16.mxu0 %vm280_vm2, %v17247_v50 }
 0x614   : > { %13725 = vmatmul.mubr.msk.bf16.gmra.mrb[92].mxu0 %vm280_vm2, %v17355_v11 }
 0x615   : > { %13732 = vmatprep.mubr.msk.bf16.mxu0 %vm280_vm2, %v17039_v54  ;;  %v9053_v54 = vld [vmem:[#allocation2 + $0x189] sm:$0xff] }
 0x61c   : > { %13733 = vmatmul.mubr.msk.bf16.vlgmr.msra.gmra.mrb[64].mxu0 %vm280_vm2, %v17045_v8  ;;  %v9052_v8 = vld [vmem:[#allocation2 + $0x181] sm:$0xff] }
 0x61d   : > { %13765 = vmatpush3.bf16.msra.mxu0 %v14981_v13  ;;  %13736 = vmatprep.mubr.msk.bf16.mxu0 %vm280_vm2, %v17067_v40  ;;  %v17395_v40 = vpack.c.bf16 %v9053_v54, %v9052_v8  ;;  %v9980_v13 = vpack.c.bf16 %v9956_v57, %v9955_v3  ;;  %v9961_v8 = vld [vmem:[#allocation2 + $0x121] sm:$0xff] }
 0x61e   : > { %13766 = vmatprep.subr.bf16.mxu0 %v14982_v55 }
 0x621   : > { %13767 = vmatpush3.bf16.msra.mxu0 %v14982_v55  ;;  %v9962_v55 = vld [vmem:[#allocation2 + $0x129] sm:$0xff] }
 0x622   : > { %13800 = vmatprep.subr.bf16.mxu0 %v14983_v33 }
 0x624   : > { %13737 = vmatmul.mubr.msk.bf16.gmra.mrb[68].mxu0 %vm280_vm2, %v17071_v30  ;;  %v14984_v30 = vld [vmem:[%s17711_s5 + $0x68] sm:$0xff]  }
 0x625   : > { %13740 = vmatprep.mubr.msk.bf16.mxu0 %vm280_vm2, %v17088_v1  ;;  %v14985_v1 = vld [vmem:[%s17711_s5 + $0x70] sm:$0xff]  }
 0x62c   : > { %13741 = vmatmul.mubr.msk.bf16.gmra.mrb[72].mxu0 %vm280_vm2, %v17091_v9  ;;  %v9358_v9 = vld [vmem:[#allocation2 + $0x182] sm:$0xff] }
 0x62d   : > { %13744 = vmatprep.mubr.msk.bf16.mxu0 %vm280_vm2, %v17108_v56  ;;  %v9359_v56 = vld [vmem:[#allocation2 + $0x18a] sm:$0xff] }
 0x634   : > { %13745 = vmatmul.mubr.msk.bf16.gmra.mrb[76].mxu0 %vm280_vm2, %v17111_v35  ;;  %v17435_v35 = vpack.c.bf16 %v9359_v56, %v9358_v9  ;;  %v9966_v9 = vld [vmem:[#allocation2 + $0x159] sm:$0xff] }
 0x635   : > { %13748 = vmatprep.mubr.msk.bf16.mxu0 %vm280_vm2, %v17128_v6  ;;  %v14986_v6 = vld [vmem:[%s17711_s5 + $0x78] sm:$0xff]  }
 0x636   : > { %v9963_v56 = vld [vmem:[#allocation2 + $0x139] sm:$0xff] }
 0x63c   : > { %13749 = vmatmul.mubr.msk.bf16.gmra.mrb[80].mxu0 %vm280_vm2, %v17131_v28  ;;  %v14987_v28 = vld [vmem:[%s17711_s5 + $0x80] sm:$0xff]  }
 0x63d   : > { %13752 = vmatprep.mubr.msk.bf16.mxu0 %vm280_vm2, %v17148_v2  ;;  %v9665_v2 = vld [vmem:[#allocation2 + $0x198] sm:$0xff] }
 0x644   : > { %13753 = vmatmul.mubr.msk.bf16.gmra.mrb[84].mxu0 %vm280_vm2, %v17151_v46  ;;  %v9666_v46 = vld [vmem:[#allocation2 + $0x1a0] sm:$0xff] }
 0x645   : > { %13756 = vmatprep.mubr.msk.bf16.mxu0 %vm280_vm2, %v17168_v23  ;;  %v9682_v23 = vpack.c.bf16 %v9666_v46, %v9665_v2  ;;  %v9968_v46 = vld [vmem:[#allocation2 + $0x171] sm:$0xff] }
 0x64c   : > { %13757 = vmatmul.mubr.msk.bf16.gmra.mrb[88].mxu0 %vm280_vm2, %v17170_v41  ;;  %v9942_v41 = vld [vmem:[#allocation2 + $0x39] sm:$0xff] }
 0x64d   : > { %13760 = vmatprep.mubr.msk.bf16.mxu0 %vm280_vm2, %v17176_v21  ;;  %v9941_v21 = vld [vmem:[#allocation2 + $0x31] sm:$0xff] }
 0x654   : > { %13761 = vmatmul.mubr.msk.bf16.gmra.mrb[92].mxu0 %vm280_vm2, %v17395_v40 }
 0x655   : > { %13768 = vmatprep.mubr.msk.bf16.mxu0 %vm280_vm2, %v17252_v25  ;;  %v9952_v25 = vld [vmem:[#allocation2 + $0xb1] sm:$0xff] }
 0x656   : > { %v9978_v0 = vpack.c.bf16 %v9952_v25, %v9951_v10 }
 0x65c   : > { %13769 = vmatmul.mubr.msk.bf16.vlgmr.msra.gmra.mrb[64].mxu0 %vm280_vm2, %v17257_v60 }
 0x65d   : > { %13801 = vmatpush3.bf16.msra.mxu0 %v14983_v33  ;;  %13772 = vmatprep.mubr.msk.bf16.mxu0 %vm280_vm2, %v17267_v49  ;;  %v9959_v33 = vld [vmem:[#allocation2 + $0x109] sm:$0xff] }
 0x65e   : > { %13802 = vmatprep.subr.bf16.mxu0 %v14984_v30 }
 0x661   : > { %13803 = vmatpush3.bf16.msra.mxu0 %v14984_v30  ;;  %v9983_v30 = vpack.c.bf16 %v9962_v55, %v9961_v8 }
 0x662   : > { %13836 = vmatprep.subr.bf16.mxu0 %v14985_v1 }
 0x664   : > { %13773 = vmatmul.mubr.msk.bf16.gmra.mrb[68].mxu0 %vm280_vm2, %v17269_v19 }
 0x665   : > { %13776 = vmatprep.mubr.msk.bf16.mxu0 %vm280_vm2, %v17275_v29 }
 0x66c   : > { %13777 = vmatmul.mubr.msk.bf16.gmra.mrb[72].mxu0 %vm280_vm2, %v17277_v18 }
 0x66d   : > { %13780 = vmatprep.mubr.msk.bf16.mxu0 %vm280_vm2, %v17283_v48 }
 0x674   : > { %13781 = vmatmul.mubr.msk.bf16.gmra.mrb[76].mxu0 %vm280_vm2, %v17285_v47 }
 0x675   : > { %13784 = vmatprep.mubr.msk.bf16.mxu0 %vm280_vm2, %v17291_v52 }
 0x67c   : > { %13785 = vmatmul.mubr.msk.bf16.gmra.mrb[80].mxu0 %vm280_vm2, %v17293_v26 }
 0x67d   : > { %13788 = vmatprep.mubr.msk.bf16.mxu0 %vm280_vm2, %v17299_v38 }
 0x684   : > { %13789 = vmatmul.mubr.msk.bf16.gmra.mrb[84].mxu0 %vm280_vm2, %v17301_v59 }
 0x685   : > { %13792 = vmatprep.mubr.msk.bf16.mxu0 %vm280_vm2, %v17307_v5 }
 0x68c   : > { %13793 = vmatmul.mubr.msk.bf16.gmra.mrb[88].mxu0 %vm280_vm2, %v17309_v58 }
 0x68d   : > { %13796 = vmatprep.mubr.msk.bf16.mxu0 %vm280_vm2, %v17315_v12 }
 0x694   : > { %13797 = vmatmul.mubr.msk.bf16.gmra.mrb[92].mxu0 %vm280_vm2, %v17435_v35 }
 0x695   : > { %13804 = vmatprep.mubr.msk.bf16.mxu0 %vm280_vm2, %v17186_v44  ;;  %v9973_v44 = vpack.c.bf16 %v9942_v41, %v9941_v21  ;;  %v9971_v21 = vld [vmem:[#allocation2 + $0x199] sm:$0xff] }
 0x69c   : > { %13805 = vmatmul.mubr.msk.bf16.vlgmr.msra.gmra.mrb[64].mxu0 %vm280_vm2, %v17198_v45  ;;  %v9944_v45 = vld [vmem:[#allocation2 + $0x51] sm:$0xff] }
 0x69d   : > { %13837 = vmatpush3.bf16.msra.mxu0 %v14985_v1  ;;  %13808 = vmatprep.mubr.msk.bf16.mxu0 %vm280_vm2, %v17201_v17  ;;  %v9946_v17 = vld [vmem:[#allocation2 + $0x69] sm:$0xff]  ;;  %v9964_v1 = vld [vmem:[#allocation2 + $0x141] sm:$0xff] }
 0x69e   : > { %13838 = vmatprep.subr.bf16.mxu0 %v14986_v6 }
 0x6a1   : > { %13839 = vmatpush3.bf16.msra.mxu0 %v14986_v6  ;;  %v9984_v6 = vpack.c.bf16 %v9964_v1, %v9963_v56  ;;  %v17790_v1 = vld [vmem:[#allocation4_spill] sm:$0xff] }
 0x6a2   : > { %13872 = vmatprep.subr.bf16.mxu0 %v14987_v28 }
 0x6a4   : > { %13809 = vmatmul.mubr.msk.bf16.gmra.mrb[68].mxu0 %vm280_vm2, %v17207_v15  ;;  %v9943_v15 = vld [vmem:[#allocation2 + $0x49] sm:$0xff] }
 0x6a5   : > { %13812 = vmatprep.mubr.msk.bf16.mxu0 %vm280_vm2, %v17209_v62  ;;  %v9974_v62 = vpack.c.bf16 %v9944_v45, %v9943_v15 }
 0x6ac   : > { %13813 = vmatmul.mubr.msk.bf16.gmra.mrb[72].mxu0 %vm280_vm2, %v17215_v16  ;;  %v9945_v16 = vld [vmem:[#allocation2 + $0x61] sm:$0xff] }
 0x6ad   : > { %13816 = vmatprep.mubr.msk.bf16.mxu0 %vm280_vm2, %v17217_v27  ;;  %v14988_v27 = vld [vmem:[%s17711_s5 + $0x88] sm:$0xff]  }
 0x6b4   : > { %13817 = vmatmul.mubr.msk.bf16.gmra.mrb[76].mxu0 %vm280_vm2, %v17223_v22  ;;  %v9975_v22 = vpack.c.bf16 %v9946_v17, %v9945_v16 }
 0x6b5   : > { %13820 = vmatprep.mubr.msk.bf16.mxu0 %vm280_vm2, %v17225_v51  ;;  %v9948_v51 = vld [vmem:[#allocation2 + $0x81] sm:$0xff] }
 0x6bc   : > { %13821 = vmatmul.mubr.msk.bf16.gmra.mrb[80].mxu0 %vm280_vm2, %v17231_v24  ;;  %v9950_v24 = vld [vmem:[#allocation2 + $0x99] sm:$0xff] }
 0x6bd   : > { %13824 = vmatprep.mubr.msk.bf16.mxu0 %vm280_vm2, %v17233_v7  ;;  %v9947_v7 = vld [vmem:[#allocation2 + $0x79] sm:$0xff] }
 0x6c4   : > { %13825 = vmatmul.mubr.msk.bf16.gmra.mrb[84].mxu0 %vm280_vm2, %v17239_v31  ;;  %v9976_v31 = vpack.c.bf16 %v9948_v51, %v9947_v7 }
 0x6c5   : > { %13828 = vmatprep.mubr.msk.bf16.mxu0 %vm280_vm2, %v17241_v32  ;;  %v9949_v32 = vld [vmem:[#allocation2 + $0x91] sm:$0xff] }
 0x6cc   : > { %13829 = vmatmul.mubr.msk.bf16.gmra.mrb[88].mxu0 %vm280_vm2, %v17247_v50  ;;  %v9977_v50 = vpack.c.bf16 %v9950_v24, %v9949_v32 }
 0x6cd   : > { %13832 = vmatprep.mubr.msk.bf16.mxu0 %vm280_vm2, %v17355_v11  ;;  %v9960_v11 = vld [vmem:[#allocation2 + $0x111] sm:$0xff] }
 0x6ce   : > { %v9982_v54 = vpack.c.bf16 %v9960_v11, %v9959_v33 }
 0x6d4   : > { %13833 = vmatmul.mubr.msk.bf16.gmra.mrb[92].mxu0 %vm280_vm2, %v9682_v23  ;;  %v9967_v23 = vld [vmem:[#allocation2 + $0x169] sm:$0xff] }
 0x6d5   : > { %13840 = vmatprep.mubr.msk.bf16.mxu0 %vm280_vm2, %v9973_v44  ;;  %v9986_v41 = vpack.c.bf16 %v9968_v46, %v9967_v23  ;;  %v9972_v44 = vld [vmem:[#allocation2 + $0x1a1] sm:$0xff] }
 0x6d6   : > { %v9988_v45 = vpack.c.bf16 %v9972_v44, %v9971_v21  ;;  %v17792_v21 = vld [vmem:[#allocation8_spill] sm:$0xff] }
 0x6dc   : > { %13841 = vmatmul.mubr.msk.bf16.vlgmr.msra.gmra.mrb[64].mxu0 %vm280_vm2, %v9974_v62 }
 0x6dd   : > { %13873 = vmatpush3.bf16.msra.mxu0 %v14987_v28  ;;  %13844 = vmatprep.mubr.msk.bf16.mxu0 %vm280_vm2, %v9975_v22  ;;  %v9965_v28 = vld [vmem:[#allocation2 + $0x151] sm:$0xff] }
 0x6de   : > { %13874 = vmatprep.subr.bf16.mxu0 %v14988_v27  ;;  %v9985_v2 = vpack.c.bf16 %v9966_v9, %v9965_v28 }
 0x6e1   : > { %13875 = vmatpush3.bf16.msra.mxu0 %v14988_v27 }
 0x6e4   : > { %13845 = vmatmul.mubr.msk.bf16.gmra.mrb[68].mxu0 %vm280_vm2, %v9976_v31 }
 0x6e5   : > { %13848 = vmatprep.mubr.msk.bf16.mxu0 %vm280_vm2, %v9977_v50 }
 0x6ec   : > { %13849 = vmatmul.mubr.msk.bf16.gmra.mrb[72].mxu0 %vm280_vm2, %v9978_v0 }
 0x6ed   : > { %13852 = vmatprep.mubr.msk.bf16.mxu0 %vm280_vm2, %v9979_v61  ;;  %v17788_v61 = vld [vmem:[#allocation5_spill] sm:$0xff] }
 0x6f4   : > { %13853 = vmatmul.mubr.msk.bf16.gmra.mrb[76].mxu0 %vm280_vm2, %v9980_v13  ;;  %v17789_v13 = vld [vmem:[#allocation6_spill] sm:$0xff] }
 0x6f5   : > { %13856 = vmatprep.mubr.msk.bf16.mxu0 %vm280_vm2, %v9981_v4 }
 0x6fc   : > { %13857 = vmatmul.mubr.msk.bf16.gmra.mrb[80].mxu0 %vm280_vm2, %v9982_v54 }
 0x6fd   : > { %13860 = vmatprep.mubr.msk.bf16.mxu0 %vm280_vm2, %v9983_v30 }
 0x704   : > { %13861 = vmatmul.mubr.msk.bf16.gmra.mrb[84].mxu0 %vm280_vm2, %v9984_v6 }
 0x705   : > { %13864 = vmatprep.mubr.msk.bf16.mxu0 %vm280_vm2, %v9985_v2  ;;  %v17791_v2 = vld [vmem:[#allocation7_spill] sm:$0xff] }
 0x70c   : > { %13865 = vmatmul.mubr.msk.bf16.gmra.mrb[88].mxu0 %vm280_vm2, %v9986_v41 }
 0x70d   : > { %13868 = vmatprep.mubr.msk.bf16.mxu0 %vm280_vm2, %v17395_v40 }
 0x714   : > { %13869 = vmatmul.mubr.msk.bf16.gmra.mrb[92].mxu0 %vm280_vm2, %v9988_v45 }
 0x715   : > { %13876 = vmatprep.mubr.msk.bf16.mxu0 %vm280_vm2, %v17257_v60  ;;  %v10277_v60 = vld [vmem:[#allocation2 + $0x19a] sm:$0xff] }
 0x71c   : > { %13877 = vmatmul.mubr.msk.bf16.vlgmr.msra.gmra.mrb[64].mxu0 %vm280_vm2, %v17267_v49  ;;  %v10278_v49 = vld [vmem:[#allocation2 + $0x1a2] sm:$0xff] }
 0x71d   : > { %13880 = vmatprep.mubr.msk.bf16.mxu0 %vm280_vm2, %v17269_v19  ;;  %v10294_v19 = vpack.c.bf16 %v10278_v49, %v10277_v60  ;;  %v17793_v49 = vld [vmem:[#allocation9_spill] sm:$0xff] }
 0x724   : > { %13881 = vmatmul.mubr.msk.bf16.gmra.mrb[68].mxu0 %vm280_vm2, %v17275_v29  ;;  %v17530_v29 = vld [vmem:[%s17712_s6] ss:$0 sm:$0xff] }
 0x725   : > { %13884 = vmatprep.mubr.msk.bf16.mxu0 %vm280_vm2, %v17277_v18  ;;  %v17535_v18 = vld [vmem:[%s17710_s4] ss:$0 sm:$0xff] }
 0x726   : > { %v471_v40 = vadd.f32 %v17535_v18, %v16397_v20  ;;  %v482_v17 = vadd.f32 %v16402_v53, %v17535_v18  ;;  %v474_v20 = vadd.f32 %v17535_v18, %v16406_v39  ;;  %v495_v32 = vadd.f32 %v16408_v63, %v17535_v18 }
 0x727   : > { %v487_v10 = vadd.f32 %v17535_v18, %v16416_v14  ;;  %v498_v57 = vadd.f32 %v17788_v61, %v17535_v18  ;;  %v490_v63 = vadd.f32 %v17535_v18, %v17789_v13  ;;  %v511_v9 = vadd.f32 %v17790_v1, %v17535_v18 }
 0x728   : > { %v503_v46 = vadd.f32 %v17535_v18, %v17791_v2  ;;  %v514_v44 = vadd.f32 %v17792_v21, %v17535_v18 }
 0x72c   : > { %13885 = vmatmul.mubr.msk.bf16.gmra.mrb[72].mxu0 %vm280_vm2, %v17283_v48 }
 0x72d   : > { %13888 = vmatprep.mubr.msk.bf16.mxu0 %vm280_vm2, %v17285_v47 }
 0x734   : > { %13889 = vmatmul.mubr.msk.bf16.gmra.mrb[76].mxu0 %vm280_vm2, %v17291_v52 }
 0x735   : > { %13892 = vmatprep.mubr.msk.bf16.mxu0 %vm280_vm2, %v17293_v26 }
 0x73c   : > { %13893 = vmatmul.mubr.msk.bf16.gmra.mrb[80].mxu0 %vm280_vm2, %v17299_v38 }
 0x73d   : > { %13896 = vmatprep.mubr.msk.bf16.mxu0 %vm280_vm2, %v17301_v59  ;;  %v479_v59 = vadd.f32 %v16392_v36, %v17535_v18 }
 0x744   : > { %13897 = vmatmul.mubr.msk.bf16.gmra.mrb[84].mxu0 %vm280_vm2, %v17307_v5 }
 0x745   : > { %13900 = vmatprep.mubr.msk.bf16.mxu0 %vm280_vm2, %v17309_v58 }
 0x74c   : > { %13901 = vmatmul.mubr.msk.bf16.gmra.mrb[88].mxu0 %vm280_vm2, %v17315_v12 }
 0x74d   : > { %13904 = vmatprep.mubr.msk.bf16.mxu0 %vm280_vm2, %v17435_v35 }
 0x754   : > { %13905 = vmatmul.mubr.msk.bf16.gmra.mrb[92].mxu0 %vm280_vm2, %v10294_v19  ;;  %v506_v19 = vadd.f32 %v17535_v18, %v17793_v49 }
 0x7ef   : > { %v13878_v48 = vpop.f32.mrb[64].mxu0 }
 0x7f0   : > { %v10562_v47 = vadd.f32 %v13878_v48, %v17530_v29  ;;  %v10394_v52 = vpop.f32.mrb[65].mxu0 }
 0x7f1   : > { %v10560_v26 = vadd.f32 %v17530_v29, %v10394_v52  ;;  %v13879_v38 = vpop.f32.mrb[66].mxu0 }
 0x7f2   : > { %v10594_v5 = vmax.f32 %v10562_v47, 0.0  ;;  %v10563_v58 = vadd.f32 %v13879_v38, %v17530_v29  ;;  %v10397_v12 = vpop.f32.mrb[67].mxu0 }
 0x7f3   : > { %v10592_v35 = vmax.f32 %v10560_v26, 0.0  ;;  %v10561_v36 = vadd.f32 %v17530_v29, %v10397_v12 }
 0x7f4   : > { %v10626_v15 = vadd.f32 %v10594_v5, %v479_v59  ;;  %v10595_v62 = vmax.f32 %v10563_v58, 0.0 }
 0x7f5   : > { %v10624_v16 = vadd.f32 %v10592_v35, %v471_v40  ;;  %v10593_v27 = vmax.f32 %v10561_v36, 0.0  ;;  %v17794_v40 = vld [vmem:[#allocation10_spill] sm:$0xff] }
 0x7f6   : > { %10659 = vst.msk [vmem:[%s17548_s25 + $0x10] sm:$0xff] %vm10656_vm5, %v10626_v15  ;;  %v10627_v22 = vadd.f32 %v10595_v62, %v482_v17  ;;  %v527_v35 = vadd.f32 %v17794_v40, %v17535_v18  ;;  %v17795_v62 = vld [vmem:[#allocation11_spill] sm:$0xff] }
 0x7f7   : > { %10657 = vst.msk [vmem:[%s17548_s25] sm:$0xff] %vm10656_vm5, %v10624_v16  ;;  %v10625_v51 = vadd.f32 %v10593_v27, %v474_v20  ;;  %v13882_v24 = vpop.f32.mrb[68].mxu0  ;;  %v519_v20 = vadd.f32 %v17535_v18, %v17795_v62 }
 0x7f8   : > { %10660 = vst.msk [vmem:[%s17548_s25 + $0x18] sm:$0xff] %vm10656_vm5, %v10627_v22  ;;  %v10566_v7 = vadd.f32 %v13882_v24, %v17530_v29  ;;  %v10410_v31 = vpop.f32.mrb[69].mxu0  ;;  %v17796_v22 = vld [vmem:[#allocation12_spill] sm:$0xff] }
 0x7f9   : > { %10658 = vst.msk [vmem:[%s17548_s25 + $0x8] sm:$0xff] %vm10656_vm5, %v10625_v51  ;;  %v10564_v53 = vadd.f32 %v17530_v29, %v10410_v31  ;;  %v13883_v39 = vpop.f32.mrb[70].mxu0  ;;  %v530_v51 = vadd.f32 %v17796_v22, %v17535_v18  ;;  %v17797_v31 = vld [vmem:[#allocation13_spill] sm:$0xff] }
 0x7fa   : > { %v10598_v50 = vmax.f32 %v10566_v7, 0.0  ;;  %v10567_v25 = vadd.f32 %v13883_v39, %v17530_v29  ;;  %v10413_v37 = vpop.f32.mrb[71].mxu0 }
 0x7fb   : > { %v10596_v0 = vmax.f32 %v10564_v53, 0.0  ;;  %v10565_v43 = vadd.f32 %v17530_v29, %v10413_v37  ;;  %v522_v53 = vadd.f32 %v17535_v18, %v17797_v31 }
 0x7fc   : > { %v10630_v42 = vadd.f32 %v10598_v50, %v495_v32  ;;  %v10599_v3 = vmax.f32 %v10567_v25, 0.0 }
 0x7fd   : > { %v10628_v34 = vadd.f32 %v10596_v0, %v487_v10  ;;  %v10597_v4 = vmax.f32 %v10565_v43, 0.0 }
 0x7fe   : > { %10663 = vst.msk [vmem:[%s17548_s25 + $0x30] sm:$0xff] %vm10656_vm5, %v10630_v42  ;;  %v10631_v11 = vadd.f32 %v10599_v3, %v498_v57  ;;  %v17798_v57 = vld [vmem:[#allocation15_spill] sm:$0xff] }
 0x7ff   : > { %10661 = vst.msk [vmem:[%s17548_s25 + $0x20] sm:$0xff] %vm10656_vm5, %v10628_v34  ;;  %v10629_v14 = vadd.f32 %v10597_v4, %v490_v63  ;;  %v13886_v55 = vpop.f32.mrb[72].mxu0  ;;  %v543_v42 = vadd.f32 %v17798_v57, %v17535_v18  ;;  %v17799_v34 = vld [vmem:[#allocation16_spill] sm:$0xff] }
 0x800   : > { %10664 = vst.msk [vmem:[%s17548_s25 + $0x38] sm:$0xff] %vm10656_vm5, %v10631_v11  ;;  %v10570_v33 = vadd.f32 %v13886_v55, %v17530_v29  ;;  %v10426_v54 = vpop.f32.mrb[73].mxu0  ;;  %v535_v4 = vadd.f32 %v17535_v18, %v17799_v34  ;;  %v17800_v55 = vld [vmem:[#allocation18_spill] sm:$0xff] }
 0x801   : > { %10662 = vst.msk [vmem:[%s17548_s25 + $0x28] sm:$0xff] %vm10656_vm5, %v10629_v14  ;;  %v10568_v8 = vadd.f32 %v17530_v29, %v10426_v54  ;;  %v13887_v30 = vpop.f32.mrb[74].mxu0 }
 0x802   : > { %v10602_v56 = vmax.f32 %v10570_v33, 0.0  ;;  %v10571_v6 = vadd.f32 %v13887_v30, %v17530_v29  ;;  %v10429_v28 = vpop.f32.mrb[75].mxu0  ;;  %v546_v33 = vadd.f32 %v17800_v55, %v17535_v18  ;;  %v17801_v30 = vld [vmem:[#allocation14_spill] sm:$0xff] }
 0x803   : > { %v10600_v23 = vmax.f32 %v10568_v8, 0.0  ;;  %v10569_v41 = vadd.f32 %v17530_v29, %v10429_v28  ;;  %v538_v1 = vadd.f32 %v17535_v18, %v17801_v30 }
 0x804   : > { %v10634_v45 = vadd.f32 %v10602_v56, %v511_v9  ;;  %v10603_v60 = vmax.f32 %v10571_v6, 0.0 }
 0x805   : > { %v10632_v48 = vadd.f32 %v10600_v23, %v503_v46  ;;  %v10601_v47 = vmax.f32 %v10569_v41, 0.0 }
 0x806   : > { %10667 = vst.msk [vmem:[%s17548_s25 + $0x50] sm:$0xff] %vm10656_vm5, %v10634_v45  ;;  %v10635_v52 = vadd.f32 %v10603_v60, %v514_v44  ;;  %v17802_v44 = vld [vmem:[#allocation17_spill] sm:$0xff] }
 0x807   : > { %10665 = vst.msk [vmem:[%s17548_s25 + $0x40] sm:$0xff] %vm10656_vm5, %v10632_v48  ;;  %v10633_v26 = vadd.f32 %v10601_v47, %v506_v19  ;;  %v13890_v38 = vpop.f32.mrb[76].mxu0  ;;  %v559_v45 = vadd.f32 %v17802_v44, %v17535_v18  ;;  %v17803_v48 = vld [vmem:[#allocation3_spill] sm:$0xff] }
 0x808   : > { %10668 = vst.msk [vmem:[%s17548_s25 + $0x58] sm:$0xff] %vm10656_vm5, %v10635_v52  ;;  %v10574_v59 = vadd.f32 %v13890_v38, %v17530_v29  ;;  %v10442_v5 = vpop.f32.mrb[77].mxu0  ;;  %v551_v47 = vadd.f32 %v17535_v18, %v17803_v48  ;;  %v17804_v38 = vld [vmem:[#allocation19_spill] sm:$0xff] }
 0x809   : > { %10666 = vst.msk [vmem:[%s17548_s25 + $0x48] sm:$0xff] %vm10656_vm5, %v10633_v26  ;;  %v10572_v58 = vadd.f32 %v17530_v29, %v10442_v5  ;;  %v13891_v12 = vpop.f32.mrb[78].mxu0 }
 0x80a   : > { %v10606_v36 = vmax.f32 %v10574_v59, 0.0  ;;  %v10575_v17 = vadd.f32 %v13891_v12, %v17530_v29  ;;  %v10445_v15 = vpop.f32.mrb[79].mxu0  ;;  %v562_v59 = vadd.f32 %v17804_v38, %v17535_v18  ;;  %v17805_v12 = vld [vmem:[#allocation20_spill] sm:$0xff] }
 0x80b   : > { %v10604_v16 = vmax.f32 %v10572_v58, 0.0  ;;  %v10573_v27 = vadd.f32 %v17530_v29, %v10445_v15  ;;  %v554_v40 = vadd.f32 %v17535_v18, %v17805_v12 }
 0x80c   : > { %v10638_v24 = vadd.f32 %v10606_v36, %v527_v35  ;;  %v10607_v7 = vmax.f32 %v10575_v17, 0.0 }
 0x80d   : > { %v10636_v39 = vadd.f32 %v10604_v16, %v519_v20  ;;  %v10605_v32 = vmax.f32 %v10573_v27, 0.0 }
 0x80e   : > { %10671 = vst.msk [vmem:[%s17548_s25 + $0x70] sm:$0xff] %vm10656_vm5, %v10638_v24  ;;  %v10639_v50 = vadd.f32 %v10607_v7, %v530_v51  ;;  %v17806_v51 = vld [vmem:[#allocation21_spill] sm:$0xff] }
 0x80f   : > { %10669 = vst.msk [vmem:[%s17548_s25 + $0x60] sm:$0xff] %vm10656_vm5, %v10636_v39  ;;  %v10637_v25 = vadd.f32 %v10605_v32, %v522_v53  ;;  %v13894_v37 = vpop.f32.mrb[80].mxu0  ;;  %v575_v24 = vadd.f32 %v17806_v51, %v17535_v18  ;;  %v17807_v39 = vld [vmem:[#allocation22_spill] sm:$0xff] }
 0x810   : > { %10672 = vst.msk [vmem:[%s17548_s25 + $0x78] sm:$0xff] %vm10656_vm5, %v10639_v50  ;;  %v10578_v10 = vadd.f32 %v13894_v37, %v17530_v29  ;;  %v10458_v0 = vpop.f32.mrb[81].mxu0  ;;  %v567_v32 = vadd.f32 %v17535_v18, %v17807_v39  ;;  %v17808_v37 = vld [vmem:[#allocation23_spill] sm:$0xff] }
 0x811   : > { %10670 = vst.msk [vmem:[%s17548_s25 + $0x68] sm:$0xff] %vm10656_vm5, %v10637_v25  ;;  %v10576_v43 = vadd.f32 %v17530_v29, %v10458_v0  ;;  %v13895_v61 = vpop.f32.mrb[82].mxu0 }
 0x812   : > { %v10610_v3 = vmax.f32 %v10578_v10, 0.0  ;;  %v10579_v13 = vadd.f32 %v13895_v61, %v17530_v29  ;;  %v10461_v63 = vpop.f32.mrb[83].mxu0  ;;  %v578_v10 = vadd.f32 %v17808_v37, %v17535_v18  ;;  %v17809_v61 = vld [vmem:[#allocation24_spill] sm:$0xff] }
 0x813   : > { %v10608_v11 = vmax.f32 %v10576_v43, 0.0  ;;  %v10577_v14 = vadd.f32 %v17530_v29, %v10461_v63  ;;  %v570_v57 = vadd.f32 %v17535_v18, %v17809_v61 }
 0x814   : > { %v10642_v54 = vadd.f32 %v10610_v3, %v543_v42  ;;  %v10611_v8 = vmax.f32 %v10579_v13, 0.0 }
 0x815   : > { %v10640_v9 = vadd.f32 %v10608_v11, %v535_v4  ;;  %v10609_v56 = vmax.f32 %v10577_v14, 0.0 }
 0x816   : > { %10675 = vst.msk [vmem:[%s17548_s25 + $0x90] sm:$0xff] %vm10656_vm5, %v10642_v54  ;;  %v10643_v6 = vadd.f32 %v10611_v8, %v546_v33  ;;  %v17810_v33 = vld [vmem:[#allocation25_spill] sm:$0xff] }
 0x817   : > { %10673 = vst.msk [vmem:[%s17548_s25 + $0x80] sm:$0xff] %vm10656_vm5, %v10640_v9  ;;  %v10641_v28 = vadd.f32 %v10609_v56, %v538_v1  ;;  %v13898_v2 = vpop.f32.mrb[84].mxu0  ;;  %v591_v54 = vadd.f32 %v17810_v33, %v17535_v18  ;;  %v17811_v9 = vld [vmem:[#allocation26_spill] sm:$0xff] }
 0x818   : > { %10676 = vst.msk [vmem:[%s17548_s25 + $0x98] sm:$0xff] %vm10656_vm5, %v10643_v6  ;;  %v10582_v46 = vadd.f32 %v13898_v2, %v17530_v29  ;;  %v10474_v23 = vpop.f32.mrb[85].mxu0  ;;  %v583_v56 = vadd.f32 %v17535_v18, %v17811_v9  ;;  %v17812_v2 = vld [vmem:[#allocation27_spill] sm:$0xff] }
 0x819   : > { %10674 = vst.msk [vmem:[%s17548_s25 + $0x88] sm:$0xff] %vm10656_vm5, %v10641_v28  ;;  %v10580_v41 = vadd.f32 %v17530_v29, %v10474_v23  ;;  %v13899_v21 = vpop.f32.mrb[86].mxu0 }
 0x81a   : > { %v10614_v60 = vmax.f32 %v10582_v46, 0.0  ;;  %v10583_v49 = vadd.f32 %v13899_v21, %v17530_v29  ;;  %v10477_v19 = vpop.f32.mrb[87].mxu0  ;;  %v594_v46 = vadd.f32 %v17812_v2, %v17535_v18  ;;  %v17813_v21 = vld [vmem:[#allocation28_spill] sm:$0xff] }
 0x81b   : > { %v10612_v52 = vmax.f32 %v10580_v41, 0.0  ;;  %v10581_v26 = vadd.f32 %v17530_v29, %v10477_v19  ;;  %v586_v44 = vadd.f32 %v17535_v18, %v17813_v21 }
 0x81c   : > { %v10646_v5 = vadd.f32 %v10614_v60, %v559_v45  ;;  %v10615_v58 = vmax.f32 %v10583_v49, 0.0 }
 0x81d   : > { %v10644_v35 = vadd.f32 %v10612_v52, %v551_v47  ;;  %v10613_v36 = vmax.f32 %v10581_v26, 0.0 }
 0x81e   : > { %10679 = vst.msk [vmem:[%s17548_s25 + $0xb0] sm:$0xff] %vm10656_vm5, %v10646_v5  ;;  %v10647_v17 = vadd.f32 %v10615_v58, %v562_v59 }
 0x81f   : > { %10677 = vst.msk [vmem:[%s17548_s25 + $0xa0] sm:$0xff] %vm10656_vm5, %v10644_v35  ;;  %v10645_v15 = vadd.f32 %v10613_v36, %v554_v40  ;;  %v13902_v62 = vpop.f32.mrb[88].mxu0 }
 0x820   : > { %10680 = vst.msk [vmem:[%s17548_s25 + $0xb8] sm:$0xff] %vm10656_vm5, %v10647_v17  ;;  %v10586_v20 = vadd.f32 %v13902_v62, %v17530_v29  ;;  %v10490_v16 = vpop.f32.mrb[89].mxu0 }
 0x821   : > { %10678 = vst.msk [vmem:[%s17548_s25 + $0xa8] sm:$0xff] %vm10656_vm5, %v10645_v15  ;;  %v10584_v27 = vadd.f32 %v17530_v29, %v10490_v16  ;;  %v13903_v22 = vpop.f32.mrb[90].mxu0 }
 0x822   : > { %v10618_v7 = vmax.f32 %v10586_v20, 0.0  ;;  %v10587_v31 = vadd.f32 %v13903_v22, %v17530_v29  ;;  %v10493_v53 = vpop.f32.mrb[91].mxu0 }
 0x823   : > { %v10616_v50 = vmax.f32 %v10584_v27, 0.0  ;;  %v10585_v25 = vadd.f32 %v17530_v29, %v10493_v53 }
 0x824   : > { %v10650_v0 = vadd.f32 %v10618_v7, %v575_v24  ;;  %v10619_v43 = vmax.f32 %v10587_v31, 0.0 }
 0x825   : > { %v10648_v42 = vadd.f32 %v10616_v50, %v567_v32  ;;  %v10617_v3 = vmax.f32 %v10585_v25, 0.0 }
 0x826   : > { %10683 = vst.msk [vmem:[%s17548_s25 + $0xd0] sm:$0xff] %vm10656_vm5, %v10650_v0  ;;  %v10651_v13 = vadd.f32 %v10619_v43, %v578_v10 }
 0x827   : > { %10681 = vst.msk [vmem:[%s17548_s25 + $0xc0] sm:$0xff] %vm10656_vm5, %v10648_v42  ;;  %v10649_v63 = vadd.f32 %v10617_v3, %v570_v57  ;;  %v13906_v34 = vpop.f32.mrb[92].mxu0 }
 0x828   : > { %10684 = vst.msk [vmem:[%s17548_s25 + $0xd8] sm:$0xff] %vm10656_vm5, %v10651_v13  ;;  %v10590_v4 = vadd.f32 %v13906_v34, %v17530_v29  ;;  %v10506_v11 = vpop.f32.mrb[93].mxu0 }
 0x829   : > { %10682 = vst.msk [vmem:[%s17548_s25 + $0xc8] sm:$0xff] %vm10656_vm5, %v10649_v63  ;;  %v10588_v14 = vadd.f32 %v17530_v29, %v10506_v11  ;;  %v13907_v55 = vpop.f32.mrb[94].mxu0 }
 0x82a   : > { %v10622_v8 = vmax.f32 %v10590_v4, 0.0  ;;  %v10591_v30 = vadd.f32 %v13907_v55, %v17530_v29  ;;  %v10509_v1 = vpop.f32.mrb[95].mxu0 }
 0x82b   : > { %v10620_v6 = vmax.f32 %v10588_v14, 0.0  ;;  %v10589_v28 = vadd.f32 %v17530_v29, %v10509_v1 }
 0x82c   : > { %v10654_v23 = vadd.f32 %v10622_v8, %v591_v54  ;;  %v10623_v41 = vmax.f32 %v10591_v30, 0.0 }
 0x82d   : > { %v10652_v45 = vadd.f32 %v10620_v6, %v583_v56  ;;  %v10621_v60 = vmax.f32 %v10589_v28, 0.0 }
 0x82e   : > { %10687 = vst.msk [vmem:[%s17548_s25 + $0xf0] sm:$0xff] %vm10656_vm5, %v10654_v23  ;;  %v10655_v49 = vadd.f32 %v10623_v41, %v594_v46 }
 0x82f   : > { %10685 = vst.msk [vmem:[%s17548_s25 + $0xe0] sm:$0xff] %vm10656_vm5, %v10652_v45  ;;  %v10653_v19 = vadd.f32 %v10621_v60, %v586_v44 }
 0x830   : > { %10688 = vst.msk [vmem:[%s17548_s25 + $0xf8] sm:$0xff] %vm10656_vm5, %v10655_v49 }
 0x831   : > { %10686 = vst.msk [vmem:[%s17548_s25 + $0xe8] sm:$0xff] %vm10656_vm5, %v10653_v19 }
 0x832 PF: > { %s17_s24 = sadd.s32 1, %s14996_s24  }
 0x833   : > { %p14_p4 = scmp.ge.s32.totalorder %s17_s24, 4  }
 0x835   :  { %16 = sbr.rel (!%p14_p4) target bundleno = 1 (0x1), region = 119 }

</bundles_post_ra>
